<compile_context>
chip_gen: v5e
topology: v5e:2x2
jax: 0.10.0
libtpu: 0.0.40
codegen_flags: <defaults>
</compile_context>

<pallas_src>
import jax
import jax.numpy as jnp
from jax.experimental import pallas as pl
from jax.experimental.pallas import tpu as pltpu

LATENT_DIM = 10
H, W = 3, 100                 # spatial size forced by fc1 = Linear(3*25*64, 20)
POS = 3 * 25                  # 75 bottleneck positions per image
FLAT = POS * 64               # 4800


# ----------------------------- Pallas kernels ------------------------------ #

def _encoder_kernel(x4_ref, w1_ref, b1_ref, w2_ref, b2_ref, h2_ref):
    """conv1 (MXU, zero-padded 2-tap rows) + relu + conv2 (MXU) + relu.

    x4:  (M, 4)  rows = (b, h, w2); the 4 lanes are the 4 input pixels feeding
                 one conv2 output position.
    w1:  (4, 64) bf16; b1: (1, 64) f32 = tile(bias, 2)
    w2:  (64, 64) bf16, (k*32+cin, cout) packing; b2: (1, 64) f32
    out: (M, 64) conv2 activations in bf16 (consumer casts to bf16 anyway).
    """
    h1 = jnp.dot(x4_ref[...].astype(jnp.bfloat16), w1_ref[...],
                 preferred_element_type=jnp.float32) + b1_ref[...]
    h1 = jnp.maximum(h1, 0.0)
    h2 = jnp.dot(h1.astype(jnp.bfloat16), w2_ref[...],
                 preferred_element_type=jnp.float32) + b2_ref[...]
    h2_ref[...] = jnp.maximum(h2, 0.0).astype(jnp.bfloat16)


def _latent_decoder_kernel(flat_ref, eps_ref, sel_ref, wfc1_ref, bfc1_ref,
                           wfc2r_ref, bfc2r_ref, w3_ref, b3_ref,
                           w4_ref, b4_ref, out_ref):
    """fc1 (merged mean/logvar) + reparameterize + fc2 (rows layout) +
    conv3 + relu + conv4 + 27*sigmoid.

    flat:  (B, 4800) bf16 NHWC-flattened encoder output (fc1 rows pre-permuted).
    eps:   (B, 10) f32 Gaussian noise.
    sel:   (M, B) bf16 0/1 batch-row selector (expands z to rows layout on MXU).
    wfc1:  (4800, 20) bf16: cols 0:10 mean, cols 10:20 = 0.5*logvar weights.
    bfc1:  (1, 20) f32 with 0.5 and the spec's 1e-6 folded into cols 10:20.
    wfc2r: (10, M, 64) f32 batch-tiled fc2 weight slabs in decoder rows layout.
    bfc2r: (M, 64) f32 batch-tiled fc2 bias in rows layout.
    w3:    (64, 64) bf16, (cin, k*32+cout) packing; b3: (1, 64) f32.
    w4:    (64, 4)  bf16 block-diagonal; b4: (1, 4) f32.
    out:   (M, 4) f32 — the 4 output pixels of each (b, h, w2) group.
    """
    # fc1: single merged MXU matmul; LHS streamed once.
    mlv = jnp.dot(flat_ref[...], wfc1_ref[...],
                  preferred_element_type=jnp.float32) + bfc1_ref[...]
    mean = mlv[:, :LATENT_DIM]
    std = jnp.exp(mlv[:, LATENT_DIM:])               # exp on the EUP slot
    z = mean + eps_ref[...] * std                    # (B, 10) f32

    # Expand z (B,10) -> rows layout (M,10) with a tiny selector matmul (MXU);
    # avoids any sublane repeat / relayout.
    z_rows = jnp.dot(sel_ref[...], z.astype(jnp.bfloat16),
                     preferred_element_type=jnp.float32)

    # fc2 emitted directly in decoder (rows, cin-lane) layout: 10 f32 VPU
    # broadcast MACs against batch-tiled (M, 64) weight slabs.  No (B, 4800)
    # intermediate, no HBM round trip, no relayout.
    d = bfc2r_ref[...]
    for l in range(LATENT_DIM):
        d = d + z_rows[:, l:l + 1] * wfc2r_ref[l]
    d = jnp.maximum(d, 0.0)

    # conv3 (transpose conv) on the MXU, then relu.
    d3 = jnp.dot(d.astype(jnp.bfloat16), w3_ref[...],
                 preferred_element_type=jnp.float32) + b3_ref[...]
    d3 = jnp.maximum(d3, 0.0)
    # conv4 (transpose conv) as a block-diagonal (64, 4) matmul; 27*sigmoid.
    o = jnp.dot(d3.astype(jnp.bfloat16), w4_ref[...],
                preferred_element_type=jnp.float32) + b4_ref[...]
    out_ref[...] = 27.0 * jax.nn.sigmoid(o)


# --------------------------- pallas_call wrappers --------------------------- #

def _full_specs(arrays):
    # One full-array VMEM block per operand (everything is tiny at B=2).
    # For large batch, switch to a leading row-tiled "parallel" grid axis
    # (rows multiple of 8) with constant index_maps for the weights so they
    # stay resident — required before B≈400–800 on v7x (64 MiB VMEM), and it
    # also lets the second v7x TensorCore share the rows.
    return [pl.BlockSpec(a.shape, lambda i, nd=a.ndim: (0,) * nd) for a in arrays]


def _call(kernel, args, out_shape, out_dtype):
    return pl.pallas_call(
        kernel,
        out_shape=jax.ShapeDtypeStruct(out_shape, out_dtype),
        grid=(1,),
        in_specs=_full_specs(args),
        out_specs=pl.BlockSpec(out_shape, lambda i: (0,) * len(out_shape)),
        compiler_params=pltpu.CompilerParams(dimension_semantics=("arbitrary",)),
    )(*args)


# ------------------------- parameter construction -------------------------- #

def init_params(key, batch_size):
    """Synthetic parameters with PyTorch layer shapes, repacked for the kernels.

    All layout permutations (NCHW flatten order, transpose-conv output packing,
    conv4 block-diagonalization, fc1 mean/logvar merge with 0.5 & 1e-6 folded,
    fc2 rows-layout batch-tiled slabs, batch-row selector) are done ONCE here
    so the per-forward path contains no transposes.

    Returns (kernel_params, raw_pytorch_weights).
    """
    ks = jax.random.split(key, 12)

    def n(k, shape, scale=0.05):
        return scale * jax.random.normal(k, shape, dtype=jnp.float32)

    # PyTorch shapes: Conv2d (Cout, Cin, kH, kW); ConvTranspose2d (Cin, Cout, kH, kW);
    # Linear (out, in).
    w1 = n(ks[0], (32, 1, 1, 2));   b1 = n(ks[1], (32,), 0.01)
    w2 = n(ks[2], (64, 32, 1, 2));  b2 = n(ks[3], (64,), 0.01)
    w3 = n(ks[4], (64, 32, 1, 2));  b3 = n(ks[5], (32,), 0.01)
    w4 = n(ks[6], (32, 1, 1, 2));   b4 = n(ks[7], (1,), 0.01)
    wfc1 = n(ks[8], (2 * LATENT_DIM, FLAT)); bfc1 = n(ks[9], (2 * LATENT_DIM,), 0.01)
    wfc2 = n(ks[10], (FLAT, LATENT_DIM));    bfc2 = n(ks[11], (FLAT,), 0.01)

    raw = dict(w1=w1, b1=b1, w2=w2, b2=b2, w3=w3, b3=b3, w4=w4, b4=b4,
               wfc1=wfc1, bfc1=bfc1, wfc2=wfc2, bfc2=bfc2)

    B = batch_size
    M = B * POS
    p = {}

    # conv1 -> 4 zero-padded rows: row j multiplies input pixel j of each
    # 4-pixel group; columns = (k, cout) of the packed conv1 output.  Used as
    # a single (M,4)@(4,64) MXU matmul.
    w1e = w1[:, 0, 0, 0]                     # tap 0 weights (32,)
    w1o = w1[:, 0, 0, 1]                     # tap 1 weights (32,)
    z32 = jnp.zeros((32,), jnp.float32)
    p["w1_rows"] = jnp.stack([
        jnp.concatenate([w1e, z32]), jnp.concatenate([w1o, z32]),
        jnp.concatenate([z32, w1e]), jnp.concatenate([z32, w1o]),
    ]).astype(jnp.bfloat16)                  # (4, 64)
    p["b1"] = jnp.tile(b1, 2).reshape(1, 64)

    # conv2: (k*32+cin, cout) matmul packing, bf16 for the MXU.
    p["w2"] = (jnp.transpose(w2[:, :, 0, :], (2, 1, 0))
               .reshape(64, 64).astype(jnp.bfloat16))
    p["b2"] = b2.reshape(1, 64)

    # fc1: rows permuted from PyTorch's (c, h, w2) flatten order to the
    # kernels' natural (h, w2, c) order; mean/logvar columns merged into ONE
    # (4800, 20) weight, with the reference's `0.5 *` and `1e-6 +` folded into
    # the logvar half so the kernel computes std = exp(...) directly.
    wfc1_p = (wfc1.reshape(2 * LATENT_DIM, 64, 3, 25)
              .transpose(2, 3, 1, 0).reshape(FLAT, 2 * LATENT_DIM))
    p["wfc1"] = jnp.concatenate(
        [wfc1_p[:, :LATENT_DIM], 0.5 * wfc1_p[:, LATENT_DIM:]],
        axis=1).astype(jnp.bfloat16)                         # (4800, 20)
    p["bfc1"] = jnp.concatenate(
        [bfc1[:LATENT_DIM], 0.5 * (bfc1[LATENT_DIM:] + 1e-6)]
    ).reshape(1, 2 * LATENT_DIM)                             # (1, 20)

    # Batch-row selector: z_rows = sel @ z expands (B,10) -> (M,10) on the MXU.
    p["sel"] = (jnp.arange(M)[:, None] // POS
                == jnp.arange(B)[None, :]).astype(jnp.bfloat16)   # (M, B)

    # fc2 repacked as 10 batch-tiled (M, 64) rows-layout slabs (one per latent
    # dim): slab[l][(b, h*25+w2), c] = Wfc2[c*75 + h*25 + w2, l].  The decoder
    # input is produced directly in (rows, cin-lane) layout — f32 for the VPU.
    wfc2_rows = (wfc2.reshape(64, 3, 25, LATENT_DIM)
                 .transpose(3, 1, 2, 0).reshape(LATENT_DIM, POS, 64))
    p["wfc2_rows"] = jnp.tile(wfc2_rows, (1, B, 1))          # (10, M, 64) f32
    bfc2_rows = bfc2.reshape(64, 3, 25).transpose(1, 2, 0).reshape(POS, 64)
    p["bfc2_rows"] = jnp.tile(bfc2_rows, (B, 1))             # (M, 64) f32

    # conv3 (transpose conv): (cin, k*32+cout) packing.
    p["w3"] = (jnp.transpose(w3[:, :, 0, :], (0, 2, 1))
               .reshape(64, 64).astype(jnp.bfloat16))
    p["b3"] = jnp.tile(b3, 2).reshape(1, 64)

    # conv4 (transpose conv) as a block-diagonal (64, 4) matmul.
    w4m = w4[:, 0, 0, :]                     # (32, 2)
    w4blk = jnp.zeros((64, 4), jnp.float32)
    w4blk = w4blk.at[0:32, 0:2].set(w4m)
    w4blk = w4blk.at[32:64, 2:4].set(w4m)
    p["w4"] = w4blk.astype(jnp.bfloat16)
    p["b4"] = jnp.tile(b4, 4).reshape(1, 4)
    return p, raw


# ------------------------------- forward ----------------------------------- #

def convnet_forward(params, x, eps):
    """x: NCHW float32 [B, 1, 3, 100]; eps: [B, LATENT_DIM] Gaussian noise."""
    B = x.shape[0]
    assert x.shape == (B, 1, H, W)
    M = B * POS
    assert params["sel"].shape == (M, B), "params packed for a different batch"

    # The only host ops between kernels are contiguous (zero-copy) reshapes.
    x4 = x.reshape(M, 4)                          # rows=(b,h,w2), lanes=4 pixels
    h2 = _call(_encoder_kernel,
               (x4, params["w1_rows"], params["b1"], params["w2"], params["b2"]),
               (M, 64), jnp.bfloat16)             # conv1+conv2, bf16 intermediate
    flat = h2.reshape(B, FLAT)                    # NHWC flatten, still bf16
    out4 = _call(_latent_decoder_kernel,
                 (flat, eps, params["sel"], params["wfc1"], params["bfc1"],
                  params["wfc2_rows"], params["bfc2_rows"],
                  params["w3"], params["b3"], params["w4"], params["b4"]),
                 (M, 4), jnp.float32)             # fc1+reparam+fc2+conv3+conv4
    return out4.reshape(B, 1, H, W)               # NCHW output


# --------------------- pure-JAX reference (PyTorch semantics) --------------- #

def _ref_conv_s2(x, w, b):
    # Conv2d, kernel (1,2), stride (1,2), no padding.  w: (Cout, Cin, 1, 2).
    y = (jnp.einsum('bihw,oi->bohw', x[:, :, :, 0::2], w[:, :, 0, 0])
         + jnp.einsum('bihw,oi->bohw', x[:, :, :, 1::2], w[:, :, 0, 1]))
    return y + b[None, :, None, None]


def _ref_deconv_s2(x, w, b):
    # ConvTranspose2d, kernel (1,2), stride (1,2).  w: (Cin, Cout, 1, 2).
    y0 = jnp.einsum('bihw,io->bohw', x, w[:, :, 0, 0])
    y1 = jnp.einsum('bihw,io->bohw', x, w[:, :, 0, 1])
    B, Co, Hh, Ww = y0.shape
    y = jnp.stack([y0, y1], axis=-1).reshape(B, Co, Hh, 2 * Ww)
    return y + b[None, :, None, None]


def reference_forward(raw, x, eps):
    h1 = jax.nn.relu(_ref_conv_s2(x, raw["w1"], raw["b1"]))
    h2 = jax.nn.relu(_ref_conv_s2(h1, raw["w2"], raw["b2"]))
    out = h2.reshape(x.shape[0], -1) @ raw["wfc1"].T + raw["bfc1"]
    mean = out[:, :LATENT_DIM]
    logvar = 1e-6 + out[:, LATENT_DIM:]
    z = mean + eps * jnp.exp(0.5 * logvar)
    d = jax.nn.relu(z @ raw["wfc2"].T + raw["bfc2"])
    d = d.reshape(x.shape[0], 64, 3, 25)
    d3 = jax.nn.relu(_ref_deconv_s2(d, raw["w3"], raw["b3"]))
    o = _ref_deconv_s2(d3, raw["w4"], raw["b4"])
    return 27.0 * jax.nn.sigmoid(o)


# --------------------------------- main ------------------------------------ #

if __name__ == "__main__":
    key = jax.random.PRNGKey(0)
    k_params, k_x, k_eps = jax.random.split(key, 3)

    B = 2   # small batch; spatial (3, 100) is forced by fc1 = Linear(3*25*64, 20)
    params, raw = init_params(k_params, B)
    x = jax.random.normal(k_x, (B, 1, H, W), dtype=jnp.float32)
    eps = jax.random.normal(k_eps, (B, LATENT_DIM), dtype=jnp.float32)

    out = jax.jit(convnet_forward)(params, x, eps)
    jax.block_until_ready(out)

    assert out.shape == (B, 1, H, W), out.shape
    assert out.dtype == jnp.float32

    # Validate against the pure-JAX/XLA f32 reference with a loose tolerance
    # (bf16 MXU operands, f32 accumulation).
    ref = jax.jit(reference_forward)(raw, x, eps)
    err = float(jnp.max(jnp.abs(out - ref)))
    assert err < 5e-2, f"max abs diff vs reference too large: {err}"

    print("KERNEL_OK")
</pallas_src>

<mosaic_0001>
module attributes {stable_mosaic.version = 11 : i64} {
  func.func @_encoder_kernel(%arg0: i32, %arg1: memref<150x4xf32, #tpu.memory_space<vmem>>, %arg2: memref<4x64xbf16, #tpu.memory_space<vmem>>, %arg3: memref<1x64xf32, #tpu.memory_space<vmem>>, %arg4: memref<64x64xbf16, #tpu.memory_space<vmem>>, %arg5: memref<1x64xf32, #tpu.memory_space<vmem>>, %arg6: memref<150x64xbf16, #tpu.memory_space<vmem>>) attributes {dimension_semantics = [#tpu.dimension_semantics<arbitrary>], iteration_bounds = array<i64: 1>, scalar_prefetch = 0 : i64, scratch_operands = 0 : i64, tpu.core_type = #tpu.core_type<tc>, window_params = [{pipeline_mode = #tpu.pipeline_mode<synchronous>, transform_indices = @transform_0, window_bounds = array<i64: 150, 4>}, {pipeline_mode = #tpu.pipeline_mode<synchronous>, transform_indices = @transform_1, window_bounds = array<i64: 4, 64>}, {pipeline_mode = #tpu.pipeline_mode<synchronous>, transform_indices = @transform_2, window_bounds = array<i64: 1, 64>}, {pipeline_mode = #tpu.pipeline_mode<synchronous>, transform_indices = @transform_3, window_bounds = array<i64: 64, 64>}, {pipeline_mode = #tpu.pipeline_mode<synchronous>, transform_indices = @transform_4, window_bounds = array<i64: 1, 64>}, {pipeline_mode = #tpu.pipeline_mode<synchronous>, transform_indices = @transform_5, window_bounds = array<i64: 150, 64>}]} {
    %c0 = arith.constant 0 : index
    %c0_0 = arith.constant 0 : index
    %0 = vector.load %arg1[%c0, %c0_0] : memref<150x4xf32, #tpu.memory_space<vmem>>, vector<150x4xf32>
    %1 = arith.truncf %0 : vector<150x4xf32> to vector<150x4xbf16>
    %c0_1 = arith.constant 0 : index
    %c0_2 = arith.constant 0 : index
    %2 = vector.load %arg2[%c0_1, %c0_2] : memref<4x64xbf16, #tpu.memory_space<vmem>>, vector<4x64xbf16>
    %cst = arith.constant dense<0.000000e+00> : vector<150x64xf32>
    %3 = tpu.matmul %1, %2, %cst {dimension_numbers = #tpu.dot_dimension_numbers<[1], [0], [0], [1], [0, 0, 1, 1], [], []>} : vector<150x4xbf16>, vector<4x64xbf16>, vector<150x64xf32> -> vector<150x64xf32>
    %c0_3 = arith.constant 0 : index
    %c0_4 = arith.constant 0 : index
    %4 = vector.load %arg3[%c0_3, %c0_4] : memref<1x64xf32, #tpu.memory_space<vmem>>, vector<1x64xf32>
    %5 = vector.broadcast %4 : vector<1x64xf32> to vector<150x64xf32>
    %6 = arith.addf %3, %5 : vector<150x64xf32>
    %cst_5 = arith.constant 0.000000e+00 : f32
    %7 = vector.broadcast %cst_5 : f32 to vector<150x64xf32>
    %8 = arith.maximumf %6, %7 : vector<150x64xf32>
    %9 = arith.truncf %8 : vector<150x64xf32> to vector<150x64xbf16>
    %c0_6 = arith.constant 0 : index
    %c0_7 = arith.constant 0 : index
    %10 = vector.load %arg4[%c0_6, %c0_7] : memref<64x64xbf16, #tpu.memory_space<vmem>>, vector<64x64xbf16>
    %cst_8 = arith.constant dense<0.000000e+00> : vector<150x64xf32>
    %11 = tpu.matmul %9, %10, %cst_8 {dimension_numbers = #tpu.dot_dimension_numbers<[1], [0], [0], [1], [0, 0, 1, 1], [], []>} : vector<150x64xbf16>, vector<64x64xbf16>, vector<150x64xf32> -> vector<150x64xf32>
    %c0_9 = arith.constant 0 : index
    %c0_10 = arith.constant 0 : index
    %12 = vector.load %arg5[%c0_9, %c0_10] : memref<1x64xf32, #tpu.memory_space<vmem>>, vector<1x64xf32>
    %13 = vector.broadcast %12 : vector<1x64xf32> to vector<150x64xf32>
    %14 = arith.addf %11, %13 : vector<150x64xf32>
    %cst_11 = arith.constant 0.000000e+00 : f32
    %15 = vector.broadcast %cst_11 : f32 to vector<150x64xf32>
    %16 = arith.maximumf %14, %15 : vector<150x64xf32>
    %17 = arith.truncf %16 : vector<150x64xf32> to vector<150x64xbf16>
    %c0_12 = arith.constant 0 : index
    %c0_13 = arith.constant 0 : index
    %18 = vector.load %arg6[%c0_12, %c0_13] : memref<150x64xbf16, #tpu.memory_space<vmem>>, vector<150x64xbf16>
    tpu.vector_store %arg6[%c0_12, %c0_13], %17 {strides = array<i32>} : memref<150x64xbf16, #tpu.memory_space<vmem>>, vector<150x64xbf16>,
    return
  }
  func.func @transform_0(%arg0: i32) -> (i32, i32) {
    %c0_i32 = arith.constant 0 : i32
    %c0_i32_0 = arith.constant 0 : i32
    %c0_i32_1 = arith.constant 0 : i32
    return %c0_i32, %c0_i32_0 : i32, i32
  }
  func.func @transform_1(%arg0: i32) -> (i32, i32) {
    %c0_i32 = arith.constant 0 : i32
    %c0_i32_0 = arith.constant 0 : i32
    %c0_i32_1 = arith.constant 0 : i32
    return %c0_i32, %c0_i32_0 : i32, i32
  }
  func.func @transform_2(%arg0: i32) -> (i32, i32) {
    %c0_i32 = arith.constant 0 : i32
    %c0_i32_0 = arith.constant 0 : i32
    %c0_i32_1 = arith.constant 0 : i32
    return %c0_i32, %c0_i32_0 : i32, i32
  }
  func.func @transform_3(%arg0: i32) -> (i32, i32) {
    %c0_i32 = arith.constant 0 : i32
    %c0_i32_0 = arith.constant 0 : i32
    %c0_i32_1 = arith.constant 0 : i32
    return %c0_i32, %c0_i32_0 : i32, i32
  }
  func.func @transform_4(%arg0: i32) -> (i32, i32) {
    %c0_i32 = arith.constant 0 : i32
    %c0_i32_0 = arith.constant 0 : i32
    %c0_i32_1 = arith.constant 0 : i32
    return %c0_i32, %c0_i32_0 : i32, i32
  }
  func.func @transform_5(%arg0: i32) -> (i32, i32) {
    %c0_i32 = arith.constant 0 : i32
    %c0_i32_0 = arith.constant 0 : i32
    %c0_i32_1 = arith.constant 0 : i32
    return %c0_i32, %c0_i32_0 : i32, i32
  }
}

module attributes {stable_mosaic.version = 11 : i64} {
  func.func @_latent_decoder_kernel(%arg0: i32, %arg1: memref<2x4800xbf16, #tpu.memory_space<vmem>>, %arg2: memref<2x10xf32, #tpu.memory_space<vmem>>, %arg3: memref<150x2xbf16, #tpu.memory_space<vmem>>, %arg4: memref<4800x20xbf16, #tpu.memory_space<vmem>>, %arg5: memref<1x20xf32, #tpu.memory_space<vmem>>, %arg6: memref<10x150x64xf32, #tpu.memory_space<vmem>>, %arg7: memref<150x64xf32, #tpu.memory_space<vmem>>, %arg8: memref<64x64xbf16, #tpu.memory_space<vmem>>, %arg9: memref<1x64xf32, #tpu.memory_space<vmem>>, %arg10: memref<64x4xbf16, #tpu.memory_space<vmem>>, %arg11: memref<1x4xf32, #tpu.memory_space<vmem>>, %arg12: memref<150x4xf32, #tpu.memory_space<vmem>>) attributes {dimension_semantics = [#tpu.dimension_semantics<arbitrary>], iteration_bounds = array<i64: 1>, scalar_prefetch = 0 : i64, scratch_operands = 0 : i64, tpu.core_type = #tpu.core_type<tc>, window_params = [{pipeline_mode = #tpu.pipeline_mode<synchronous>, transform_indices = @transform_0, window_bounds = array<i64: 2, 4800>}, {pipeline_mode = #tpu.pipeline_mode<synchronous>, transform_indices = @transform_1, window_bounds = array<i64: 2, 10>}, {pipeline_mode = #tpu.pipeline_mode<synchronous>, transform_indices = @transform_2, window_bounds = array<i64: 150, 2>}, {pipeline_mode = #tpu.pipeline_mode<synchronous>, transform_indices = @transform_3, window_bounds = array<i64: 4800, 20>}, {pipeline_mode = #tpu.pipeline_mode<synchronous>, transform_indices = @transform_4, window_bounds = array<i64: 1, 20>}, {pipeline_mode = #tpu.pipeline_mode<synchronous>, transform_indices = @transform_5, window_bounds = array<i64: 10, 150, 64>}, {pipeline_mode = #tpu.pipeline_mode<synchronous>, transform_indices = @transform_6, window_bounds = array<i64: 150, 64>}, {pipeline_mode = #tpu.pipeline_mode<synchronous>, transform_indices = @transform_7, window_bounds = array<i64: 64, 64>}, {pipeline_mode = #tpu.pipeline_mode<synchronous>, transform_indices = @transform_8, window_bounds = array<i64: 1, 64>}, {pipeline_mode = #tpu.pipeline_mode<synchronous>, transform_indices = @transform_9, window_bounds = array<i64: 64, 4>}, {pipeline_mode = #tpu.pipeline_mode<synchronous>, transform_indices = @transform_10, window_bounds = array<i64: 1, 4>}, {pipeline_mode = #tpu.pipeline_mode<synchronous>, transform_indices = @transform_11, window_bounds = array<i64: 150, 4>}]} {
    %c0 = arith.constant 0 : index
    %c0_0 = arith.constant 0 : index
    %0 = vector.load %arg1[%c0, %c0_0] : memref<2x4800xbf16, #tpu.memory_space<vmem>>, vector<2x4800xbf16>
    %c0_1 = arith.constant 0 : index
    %c0_2 = arith.constant 0 : index
    %1 = vector.load %arg4[%c0_1, %c0_2] : memref<4800x20xbf16, #tpu.memory_space<vmem>>, vector<4800x20xbf16>
    %cst = arith.constant dense<0.000000e+00> : vector<2x20xf32>
    %2 = tpu.matmul %0, %1, %cst {dimension_numbers = #tpu.dot_dimension_numbers<[1], [0], [0], [1], [0, 0, 1, 1], [], []>} : vector<2x4800xbf16>, vector<4800x20xbf16>, vector<2x20xf32> -> vector<2x20xf32>
    %c0_3 = arith.constant 0 : index
    %c0_4 = arith.constant 0 : index
    %3 = vector.load %arg5[%c0_3, %c0_4] : memref<1x20xf32, #tpu.memory_space<vmem>>, vector<1x20xf32>
    %4 = vector.broadcast %3 : vector<1x20xf32> to vector<2x20xf32>
    %5 = arith.addf %2, %4 : vector<2x20xf32>
    %6 = vector.extract_strided_slice %5 {offsets = [0, 0], sizes = [2, 10], strides = [1, 1]} : vector<2x20xf32> to vector<2x10xf32>
    %7 = vector.extract_strided_slice %5 {offsets = [0, 10], sizes = [2, 10], strides = [1, 1]} : vector<2x20xf32> to vector<2x10xf32>
    %8 = math.exp %7 : vector<2x10xf32>
    %c0_5 = arith.constant 0 : index
    %c0_6 = arith.constant 0 : index
    %9 = vector.load %arg2[%c0_5, %c0_6] : memref<2x10xf32, #tpu.memory_space<vmem>>, vector<2x10xf32>
    %10 = arith.mulf %9, %8 : vector<2x10xf32>
    %11 = arith.addf %6, %10 : vector<2x10xf32>
    %c0_7 = arith.constant 0 : index
    %c0_8 = arith.constant 0 : index
    %12 = vector.load %arg3[%c0_7, %c0_8] : memref<150x2xbf16, #tpu.memory_space<vmem>>, vector<150x2xbf16>
    %13 = arith.truncf %11 : vector<2x10xf32> to vector<2x10xbf16>
    %cst_9 = arith.constant dense<0.000000e+00> : vector<150x10xf32>
    %14 = tpu.matmul %12, %13, %cst_9 {dimension_numbers = #tpu.dot_dimension_numbers<[1], [0], [0], [1], [0, 0, 1, 1], [], []>} : vector<150x2xbf16>, vector<2x10xbf16>, vector<150x10xf32> -> vector<150x10xf32>
    %c0_10 = arith.constant 0 : index
    %c0_11 = arith.constant 0 : index
    %15 = vector.load %arg7[%c0_10, %c0_11] : memref<150x64xf32, #tpu.memory_space<vmem>>, vector<150x64xf32>
    %16 = vector.extract_strided_slice %14 {offsets = [0, 0], sizes = [150, 1], strides = [1, 1]} : vector<150x10xf32> to vector<150x1xf32>
    %c0_12 = arith.constant 0 : index
    %c0_13 = arith.constant 0 : index
    %c0_14 = arith.constant 0 : index
    %17 = vector.load %arg6[%c0_12, %c0_13, %c0_14] : memref<10x150x64xf32, #tpu.memory_space<vmem>>, vector<1x150x64xf32>
    %18 = vector.shape_cast %17 : vector<1x150x64xf32> to vector<150x64xf32>
    %19 = vector.broadcast %16 : vector<150x1xf32> to vector<150x64xf32>
    %20 = arith.mulf %19, %18 : vector<150x64xf32>
    %21 = arith.addf %15, %20 : vector<150x64xf32>
    %22 = vector.extract_strided_slice %14 {offsets = [0, 1], sizes = [150, 1], strides = [1, 1]} : vector<150x10xf32> to vector<150x1xf32>
    %c1 = arith.constant 1 : index
    %c0_15 = arith.constant 0 : index
    %c0_16 = arith.constant 0 : index
    %23 = vector.load %arg6[%c1, %c0_15, %c0_16] : memref<10x150x64xf32, #tpu.memory_space<vmem>>, vector<1x150x64xf32>
    %24 = vector.shape_cast %23 : vector<1x150x64xf32> to vector<150x64xf32>
    %25 = vector.broadcast %22 : vector<150x1xf32> to vector<150x64xf32>
    %26 = arith.mulf %25, %24 : vector<150x64xf32>
    %27 = arith.addf %21, %26 : vector<150x64xf32>
    %28 = vector.extract_strided_slice %14 {offsets = [0, 2], sizes = [150, 1], strides = [1, 1]} : vector<150x10xf32> to vector<150x1xf32>
    %c2 = arith.constant 2 : index
    %c0_17 = arith.constant 0 : index
    %c0_18 = arith.constant 0 : index
    %29 = vector.load %arg6[%c2, %c0_17, %c0_18] : memref<10x150x64xf32, #tpu.memory_space<vmem>>, vector<1x150x64xf32>
    %30 = vector.shape_cast %29 : vector<1x150x64xf32> to vector<150x64xf32>
    %31 = vector.broadcast %28 : vector<150x1xf32> to vector<150x64xf32>
    %32 = arith.mulf %31, %30 : vector<150x64xf32>
    %33 = arith.addf %27, %32 : vector<150x64xf32>
    %34 = vector.extract_strided_slice %14 {offsets = [0, 3], sizes = [150, 1], strides = [1, 1]} : vector<150x10xf32> to vector<150x1xf32>
    %c3 = arith.constant 3 : index
    %c0_19 = arith.constant 0 : index
    %c0_20 = arith.constant 0 : index
    %35 = vector.load %arg6[%c3, %c0_19, %c0_20] : memref<10x150x64xf32, #tpu.memory_space<vmem>>, vector<1x150x64xf32>
    %36 = vector.shape_cast %35 : vector<1x150x64xf32> to vector<150x64xf32>
    %37 = vector.broadcast %34 : vector<150x1xf32> to vector<150x64xf32>
    %38 = arith.mulf %37, %36 : vector<150x64xf32>
    %39 = arith.addf %33, %38 : vector<150x64xf32>
    %40 = vector.extract_strided_slice %14 {offsets = [0, 4], sizes = [150, 1], strides = [1, 1]} : vector<150x10xf32> to vector<150x1xf32>
    %c4 = arith.constant 4 : index
    %c0_21 = arith.constant 0 : index
    %c0_22 = arith.constant 0 : index
    %41 = vector.load %arg6[%c4, %c0_21, %c0_22] : memref<10x150x64xf32, #tpu.memory_space<vmem>>, vector<1x150x64xf32>
    %42 = vector.shape_cast %41 : vector<1x150x64xf32> to vector<150x64xf32>
    %43 = vector.broadcast %40 : vector<150x1xf32> to vector<150x64xf32>
    %44 = arith.mulf %43, %42 : vector<150x64xf32>
    %45 = arith.addf %39, %44 : vector<150x64xf32>
    %46 = vector.extract_strided_slice %14 {offsets = [0, 5], sizes = [150, 1], strides = [1, 1]} : vector<150x10xf32> to vector<150x1xf32>
    %c5 = arith.constant 5 : index
    %c0_23 = arith.constant 0 : index
    %c0_24 = arith.constant 0 : index
    %47 = vector.load %arg6[%c5, %c0_23, %c0_24] : memref<10x150x64xf32, #tpu.memory_space<vmem>>, vector<1x150x64xf32>
    %48 = vector.shape_cast %47 : vector<1x150x64xf32> to vector<150x64xf32>
    %49 = vector.broadcast %46 : vector<150x1xf32> to vector<150x64xf32>
    %50 = arith.mulf %49, %48 : vector<150x64xf32>
    %51 = arith.addf %45, %50 : vector<150x64xf32>
    %52 = vector.extract_strided_slice %14 {offsets = [0, 6], sizes = [150, 1], strides = [1, 1]} : vector<150x10xf32> to vector<150x1xf32>
    %c6 = arith.constant 6 : index
    %c0_25 = arith.constant 0 : index
    %c0_26 = arith.constant 0 : index
    %53 = vector.load %arg6[%c6, %c0_25, %c0_26] : memref<10x150x64xf32, #tpu.memory_space<vmem>>, vector<1x150x64xf32>
    %54 = vector.shape_cast %53 : vector<1x150x64xf32> to vector<150x64xf32>
    %55 = vector.broadcast %52 : vector<150x1xf32> to vector<150x64xf32>
    %56 = arith.mulf %55, %54 : vector<150x64xf32>
    %57 = arith.addf %51, %56 : vector<150x64xf32>
    %58 = vector.extract_strided_slice %14 {offsets = [0, 7], sizes = [150, 1], strides = [1, 1]} : vector<150x10xf32> to vector<150x1xf32>
    %c7 = arith.constant 7 : index
    %c0_27 = arith.constant 0 : index
    %c0_28 = arith.constant 0 : index
    %59 = vector.load %arg6[%c7, %c0_27, %c0_28] : memref<10x150x64xf32, #tpu.memory_space<vmem>>, vector<1x150x64xf32>
    %60 = vector.shape_cast %59 : vector<1x150x64xf32> to vector<150x64xf32>
    %61 = vector.broadcast %58 : vector<150x1xf32> to vector<150x64xf32>
    %62 = arith.mulf %61, %60 : vector<150x64xf32>
    %63 = arith.addf %57, %62 : vector<150x64xf32>
    %64 = vector.extract_strided_slice %14 {offsets = [0, 8], sizes = [150, 1], strides = [1, 1]} : vector<150x10xf32> to vector<150x1xf32>
    %c8 = arith.constant 8 : index
    %c0_29 = arith.constant 0 : index
    %c0_30 = arith.constant 0 : index
    %65 = vector.load %arg6[%c8, %c0_29, %c0_30] : memref<10x150x64xf32, #tpu.memory_space<vmem>>, vector<1x150x64xf32>
    %66 = vector.shape_cast %65 : vector<1x150x64xf32> to vector<150x64xf32>
    %67 = vector.broadcast %64 : vector<150x1xf32> to vector<150x64xf32>
    %68 = arith.mulf %67, %66 : vector<150x64xf32>
    %69 = arith.addf %63, %68 : vector<150x64xf32>
    %70 = vector.extract_strided_slice %14 {offsets = [0, 9], sizes = [150, 1], strides = [1, 1]} : vector<150x10xf32> to vector<150x1xf32>
    %c9 = arith.constant 9 : index
    %c0_31 = arith.constant 0 : index
    %c0_32 = arith.constant 0 : index
    %71 = vector.load %arg6[%c9, %c0_31, %c0_32] : memref<10x150x64xf32, #tpu.memory_space<vmem>>, vector<1x150x64xf32>
    %72 = vector.shape_cast %71 : vector<1x150x64xf32> to vector<150x64xf32>
    %73 = vector.broadcast %70 : vector<150x1xf32> to vector<150x64xf32>
    %74 = arith.mulf %73, %72 : vector<150x64xf32>
    %75 = arith.addf %69, %74 : vector<150x64xf32>
    %cst_33 = arith.constant 0.000000e+00 : f32
    %76 = vector.broadcast %cst_33 : f32 to vector<150x64xf32>
    %77 = arith.maximumf %75, %76 : vector<150x64xf32>
    %78 = arith.truncf %77 : vector<150x64xf32> to vector<150x64xbf16>
    %c0_34 = arith.constant 0 : index
    %c0_35 = arith.constant 0 : index
    %79 = vector.load %arg8[%c0_34, %c0_35] : memref<64x64xbf16, #tpu.memory_space<vmem>>, vector<64x64xbf16>
    %cst_36 = arith.constant dense<0.000000e+00> : vector<150x64xf32>
    %80 = tpu.matmul %78, %79, %cst_36 {dimension_numbers = #tpu.dot_dimension_numbers<[1], [0], [0], [1], [0, 0, 1, 1], [], []>} : vector<150x64xbf16>, vector<64x64xbf16>, vector<150x64xf32> -> vector<150x64xf32>
    %c0_37 = arith.constant 0 : index
    %c0_38 = arith.constant 0 : index
    %81 = vector.load %arg9[%c0_37, %c0_38] : memref<1x64xf32, #tpu.memory_space<vmem>>, vector<1x64xf32>
    %82 = vector.broadcast %81 : vector<1x64xf32> to vector<150x64xf32>
    %83 = arith.addf %80, %82 : vector<150x64xf32>
    %cst_39 = arith.constant 0.000000e+00 : f32
    %84 = vector.broadcast %cst_39 : f32 to vector<150x64xf32>
    %85 = arith.maximumf %83, %84 : vector<150x64xf32>
    %86 = arith.truncf %85 : vector<150x64xf32> to vector<150x64xbf16>
    %c0_40 = arith.constant 0 : index
    %c0_41 = arith.constant 0 : index
    %87 = vector.load %arg10[%c0_40, %c0_41] : memref<64x4xbf16, #tpu.memory_space<vmem>>, vector<64x4xbf16>
    %cst_42 = arith.constant dense<0.000000e+00> : vector<150x4xf32>
    %88 = tpu.matmul %86, %87, %cst_42 {dimension_numbers = #tpu.dot_dimension_numbers<[1], [0], [0], [1], [0, 0, 1, 1], [], []>} : vector<150x64xbf16>, vector<64x4xbf16>, vector<150x4xf32> -> vector<150x4xf32>
    %c0_43 = arith.constant 0 : index
    %c0_44 = arith.constant 0 : index
    %89 = vector.load %arg11[%c0_43, %c0_44] : memref<1x4xf32, #tpu.memory_space<vmem>>, vector<1x4xf32>
    %90 = vector.broadcast %89 : vector<1x4xf32> to vector<150x4xf32>
    %91 = arith.addf %88, %90 : vector<150x4xf32>
    %92 = arith.negf %91 : vector<150x4xf32>
    %93 = math.exp %92 : vector<150x4xf32>
    %cst_45 = arith.constant 1.000000e+00 : f32
    %94 = vector.broadcast %cst_45 : f32 to vector<150x4xf32>
    %95 = arith.addf %94, %93 : vector<150x4xf32>
    %96 = arith.divf %94, %95 : vector<150x4xf32>
    %cst_46 = arith.constant 2.700000e+01 : f32
    %97 = vector.broadcast %cst_46 : f32 to vector<150x4xf32>
    %98 = arith.mulf %97, %96 : vector<150x4xf32>
    %c0_47 = arith.constant 0 : index
    %c0_48 = arith.constant 0 : index
    %99 = vector.load %arg12[%c0_47, %c0_48] : memref<150x4xf32, #tpu.memory_space<vmem>>, vector<150x4xf32>
    tpu.vector_store %arg12[%c0_47, %c0_48], %98 {strides = array<i32>} : memref<150x4xf32, #tpu.memory_space<vmem>>, vector<150x4xf32>,
    return
  }
  func.func @transform_0(%arg0: i32) -> (i32, i32) {
    %c0_i32 = arith.constant 0 : i32
    %c0_i32_0 = arith.constant 0 : i32
    %c0_i32_1 = arith.constant 0 : i32
    return %c0_i32, %c0_i32_0 : i32, i32
  }
  func.func @transform_1(%arg0: i32) -> (i32, i32) {
    %c0_i32 = arith.constant 0 : i32
    %c0_i32_0 = arith.constant 0 : i32
    %c0_i32_1 = arith.constant 0 : i32
    return %c0_i32, %c0_i32_0 : i32, i32
  }
  func.func @transform_2(%arg0: i32) -> (i32, i32) {
    %c0_i32 = arith.constant 0 : i32
    %c0_i32_0 = arith.constant 0 : i32
    %c0_i32_1 = arith.constant 0 : i32
    return %c0_i32, %c0_i32_0 : i32, i32
  }
  func.func @transform_3(%arg0: i32) -> (i32, i32) {
    %c0_i32 = arith.constant 0 : i32
    %c0_i32_0 = arith.constant 0 : i32
    %c0_i32_1 = arith.constant 0 : i32
    return %c0_i32, %c0_i32_0 : i32, i32
  }
  func.func @transform_4(%arg0: i32) -> (i32, i32) {
    %c0_i32 = arith.constant 0 : i32
    %c0_i32_0 = arith.constant 0 : i32
    %c0_i32_1 = arith.constant 0 : i32
    return %c0_i32, %c0_i32_0 : i32, i32
  }
  func.func @transform_5(%arg0: i32) -> (i32, i32, i32) {
    %c0_i32 = arith.constant 0 : i32
    %c0_i32_0 = arith.constant 0 : i32
    %c0_i32_1 = arith.constant 0 : i32
    %c0_i32_2 = arith.constant 0 : i32
    return %c0_i32, %c0_i32_0, %c0_i32_1 : i32, i32, i32
  }
  func.func @transform_6(%arg0: i32) -> (i32, i32) {
    %c0_i32 = arith.constant 0 : i32
    %c0_i32_0 = arith.constant 0 : i32
    %c0_i32_1 = arith.constant 0 : i32
    return %c0_i32, %c0_i32_0 : i32, i32
  }
  func.func @transform_7(%arg0: i32) -> (i32, i32) {
    %c0_i32 = arith.constant 0 : i32
    %c0_i32_0 = arith.constant 0 : i32
    %c0_i32_1 = arith.constant 0 : i32
    return %c0_i32, %c0_i32_0 : i32, i32
  }
  func.func @transform_8(%arg0: i32) -> (i32, i32) {
    %c0_i32 = arith.constant 0 : i32
    %c0_i32_0 = arith.constant 0 : i32
    %c0_i32_1 = arith.constant 0 : i32
    return %c0_i32, %c0_i32_0 : i32, i32
  }
  func.func @transform_9(%arg0: i32) -> (i32, i32) {
    %c0_i32 = arith.constant 0 : i32
    %c0_i32_0 = arith.constant 0 : i32
    %c0_i32_1 = arith.constant 0 : i32
    return %c0_i32, %c0_i32_0 : i32, i32
  }
  func.func @transform_10(%arg0: i32) -> (i32, i32) {
    %c0_i32 = arith.constant 0 : i32
    %c0_i32_0 = arith.constant 0 : i32
    %c0_i32_1 = arith.constant 0 : i32
    return %c0_i32, %c0_i32_0 : i32, i32
  }
  func.func @transform_11(%arg0: i32) -> (i32, i32) {
    %c0_i32 = arith.constant 0 : i32
    %c0_i32_0 = arith.constant 0 : i32
    %c0_i32_1 = arith.constant 0 : i32
    return %c0_i32, %c0_i32_0 : i32, i32
  }
}

</mosaic_0001>

<bundles_post_ra>
// kernel: convnet_forward.2
= control target key start
LH: loop header
LB: loop body
LE: loop exit
PB: predicated region body
PF: predicated region fallthrough
CT: control target
= control target key end

     0   :  { %10 = vsyncpa [#allocation3], 0  ;;  %s822_s0 = inlined_call_operand.vmem [shape: f32[150,4], index: 0, kind: input, shape index: {}]   ;;  %s823_s1 = inlined_call_operand.hbm [shape: bf16[4,64], index: 1, kind: input, shape index: {}]   ;;  %s824_s2 = inlined_call_operand.hbm [shape: f32[1,64], index: 2, kind: input, shape index: {}]   ;;  %s825_s3 = inlined_call_operand.hbm [shape: bf16[64,64], index: 3, kind: input, shape index: {}]   ;;  %s826_s4 = inlined_call_operand.hbm [shape: f32[1,64], index: 4, kind: input, shape index: {}]   ;;  %s827_s5 = inlined_call_operand.vmem [shape: bf16[150,64], index: 5, kind: output, shape index: {}]  }
   0x1   :  { %11 = vsyncpa [#allocation5], 0  ;;  %s31_s20 = sshll.u32 %s824_s2, 4  ;;  %s32_s20 = int_to_ptr.hbm [resolvable:$true] %s31_s20 }
   0x2   :  { %12 = vsyncpa [#allocation8], 0  ;;  %s580_s21 = smov [#allocation4]   ;;  %s20_s25 = sshll.u32 %s823_s1, 4  ;;  %s21_s25 = int_to_ptr.hbm [resolvable:$true] %s20_s25 }
   0x3   :  { %s33_s22 = sshll.u32 %s580_s21, 4  ;;  %s581_s26 = smov [#allocation2]   ;;  %s34_s22 = int_to_ptr.vmem [resolvable:$true] %s33_s22 }
   0x4   :  { %36 = dma.hbm_to_vmem [thread:$0]  %s32_s20, 16, %s34_s22, [#allocation5]  }
   0x5   :  { %s22_s27 = sshll.u32 %s581_s26, 4  ;;  %s41_s30 = sshll.u32 %s825_s3, 4  ;;  %s23_s27 = int_to_ptr.vmem [resolvable:$true] %s22_s27  ;;  %s42_s30 = int_to_ptr.hbm [resolvable:$true] %s41_s30 }
   0x6   :  { %25 = dma.hbm_to_vmem [thread:$0]  %s21_s25, 32, %s23_s27, [#allocation3]  }
   0x7   :  { %s582_s2 = smov [#allocation6]   ;;  %s55_s9 = sshll.u32 %s826_s4, 4  ;;  %s56_s9 = int_to_ptr.hbm [resolvable:$true] %s55_s9 }
   0x8   :  { %s43_s6 = sshll.u32 %s582_s2, 4  ;;  %s583_s10 = smov 64   ;;  %s44_s6 = int_to_ptr.vmem [resolvable:$true] %s43_s6 }
   0x9   :  { %s584_s1 = smov 4   ;;  %s585_s11 = smov [#allocation7]  }
   0xa   :  { %49 = dma.hbm_to_vmem [thread:$0]  %s42_s30, 512, %s44_s6, [#allocation5], %s583_s10, %s583_s10, %s584_s1  }
   0xb   :  { %s57_s12 = sshll.u32 %s585_s11, 4  ;;  %s58_s12 = int_to_ptr.vmem [resolvable:$true] %s57_s12 }
   0xc   :  { %60 = dma.hbm_to_vmem [thread:$0]  %s56_s9, 16, %s58_s12, [#allocation8]  }
   0xd   :  { %574 = dma.done.wait [#allocation3], 32  }
   0xe   :  { %575 = vsyncadd [#allocation3], 4294967264 }
   0xf   :  { %576 = dma.done.wait [#allocation5], 528  }
  0x10   :  { %577 = vsyncadd [#allocation5], 4294966768 }
  0x11   :  { %578 = dma.done.wait [#allocation8], 16  }
  0x12   :  { %579 = vsyncadd [#allocation8], 4294967280  ;;  %vm143_vm0 = vcmask 1041408   ;;  %v107_v0 = vld [vmem:[#allocation2] sm:$0x3]  ;;  %v79_v2 = vld [vmem:[%s822_s0 + $0x8] sm:$0xff] }
  0x13   :  { %v78_v1 = vld [vmem:[%s822_s0] sm:$0xff]  ;;  %v145_v3 = vsel %vm143_vm0, %v107_v0, 0  ;;  %vm112_vm1 = vcmask 31744   ;;  %v80_v5 = vld [vmem:[%s822_s0 + $0x10] sm:$0xff]  ;;  %v81_v6 = vld [vmem:[%s822_s0 + $0x18] sm:$0xff]  ;;  %vm270_vm2 = vcmask 523264  }
  0x14   :  { %v97_v4 = vpack.c.bf16 %v79_v2, %v78_v1  ;;  %154 = vmatpush.bf16.msra.mxu0 %v145_v3  ;;  %465 = vmatpush.bf16.msra.mxu3 %v145_v3  ;;  %v98_v7 = vpack.c.bf16 %v81_v6, %v80_v5  ;;  %v82_v8 = vld [vmem:[%s822_s0 + $0x20] sm:$0xff]  ;;  %v83_v9 = vld [vmem:[%s822_s0 + $0x28] sm:$0xff]  ;;  %v84_v11 = vld [vmem:[%s822_s0 + $0x30] sm:$0xff]  ;;  %vm397_vm3 = vcmask 519168   ;;  %vm416_vm4 = vcmask 518144  }
  0x15   :  { %v99_v10 = vpack.c.bf16 %v83_v9, %v82_v8  ;;  %v85_v12 = vld [vmem:[%s822_s0 + $0x38] sm:$0xff]  ;;  %v90_v14 = vld [vmem:[%s822_s0 + $0x60] sm:$0xff]  ;;  %v91_v15 = vld [vmem:[%s822_s0 + $0x68] sm:$0xff] }
  0x16   :  { %v100_v13 = vpack.c.bf16 %v85_v12, %v84_v11  ;;  %v103_v16 = vpack.c.bf16 %v91_v15, %v90_v14  ;;  %v86_v17 = vld [vmem:[%s822_s0 + $0x40] sm:$0xff]  ;;  %v87_v18 = vld [vmem:[%s822_s0 + $0x48] sm:$0xff]  ;;  %v92_v19 = vld [vmem:[%s822_s0 + $0x70] sm:$0xff] }
  0x17   :  { %425 = vmatmul.msk.bf16.vlgmr.msra.gmra.mxu0 %vm112_vm1, %v97_v4  ;;  %v93_v20 = vld [vmem:[%s822_s0 + $0x78] sm:$0xff]  ;;  %v101_v21 = vpack.c.bf16 %v87_v18, %v86_v17  ;;  %v88_v23 = vld [vmem:[%s822_s0 + $0x50] sm:$0xff]  ;;  %v94_v25 = vld [vmem:[%s822_s0 + $0x80] sm:$0xff] }
  0x18   :  { %431 = vmatmul.msk.bf16.vlgmr.msra.gmra.mxu3 %vm112_vm1, %v103_v16  ;;  %v104_v22 = vpack.c.bf16 %v93_v20, %v92_v19  ;;  %v89_v24 = vld [vmem:[%s822_s0 + $0x58] sm:$0xff]  ;;  %v95_v26 = vld [vmem:[%s822_s0 + $0x88] sm:$0xff]  ;;  %v96_v33 = vld [vmem:[%s822_s0 + $0x90] sm:$0x3f] }
  0x19   :  { %v102_v27 = vpack.c.bf16 %v89_v24, %v88_v23  ;;  %v105_v28 = vpack.c.bf16 %v95_v26, %v94_v25  ;;  %v464_v29 = vld [vmem:[#allocation6 + $0x18] sm:$0xff]  ;;  %v463_v30 = vld [vmem:[#allocation6 + $0x10] sm:$0xff]  ;;  %v462_v31 = vld [vmem:[#allocation6 + $0x8] sm:$0xff]  ;;  %v106_v34 = vpack.c.bf16 %v96_v33, %v96_v33 }
  0x1a   :  { %305 = vmatpush.bf16.msra.mxu1 %v464_v29  ;;  %466 = vmatpush.bf16.msra.mxu2 %v464_v29  ;;  %v461_v32 = vld [vmem:[#allocation6] sm:$0xff]  ;;  %v695_v36 = vld [vmem:[#allocation4] ss:$0 sm:$0xff] }
  0x1e   :  { %306 = vmatpush.bf16.msra.mxu1 %v463_v30  ;;  %467 = vmatpush.bf16.msra.mxu2 %v463_v30 }
  0x22   :  { %307 = vmatpush.bf16.msra.mxu1 %v462_v31  ;;  %468 = vmatpush.bf16.msra.mxu2 %v462_v31 }
  0x26   :  { %308 = vmatpush.bf16.msra.mxu1 %v461_v32  ;;  %469 = vmatpush.bf16.msra.mxu2 %v461_v32 }
  0x27   :  { %426 = vmatmul.msk.bf16.gmra.mxu0 %vm112_vm1, %v98_v7 }
  0x28   :  { %432 = vmatmul.msk.bf16.gmra.mxu3 %vm112_vm1, %v104_v22 }
  0x37   :  { %427 = vmatmul.msk.bf16.gmra.mxu0 %vm112_vm1, %v99_v10 }
  0x38   :  { %433 = vmatmul.msk.bf16.gmra.mxu3 %vm112_vm1, %v105_v28 }
  0x47   :  { %428 = vmatmul.msk.bf16.gmra.mxu0 %vm112_vm1, %v100_v13 }
  0x48   :  { %434 = vmatmul.msk.bf16.gmra.mxu3 %vm112_vm1, %v106_v34 }
  0x57   :  { %429 = vmatmul.msk.bf16.gmra.mxu0 %vm112_vm1, %v101_v21 }
  0x67   :  { %430 = vmatmul.msk.bf16.gmra.mxu0 %vm112_vm1, %v102_v27 }
  0x94   :  { %v156_v35 = vpop.f32.mrf.mxu0 }
  0x95   :  { %v157_v37 = vadd.f32 %v695_v36, %v156_v35 }
  0x97   :  { %v205_v40 = vmax.f32 %v157_v37, 0.0  ;;  %v723_v37 = vld [vmem:[#allocation7] ss:$0 sm:$0xff] }
  0x9b   :  { %v186_v60 = vpop.f32.mrf.mxu3 }
  0x9c   :  { %v158_v38 = vpop.f32.mrf.mxu0  ;;  %v187_v19 = vadd.f32 %v695_v36, %v186_v60 }
  0x9d   :  { %v159_v39 = vadd.f32 %v695_v36, %v158_v38 }
  0x9e   :  { %v217_v22 = vmax.f32 %v187_v19, 0.0 }
  0x9f   :  { %v206_v41 = vmax.f32 %v159_v39, 0.0 }
  0xa1   :  { %v224_v42 = vpack.c.bf16 %v206_v41, %v205_v40 }
  0xa3   :  { %451 = vmatmul.msk.bf16.vlgmr.msra.gmra.mxu1 %vm270_vm2, %v224_v42  ;;  %v188_v2 = vpop.f32.mrf.mxu3 }
  0xa4   :  { %v161_v43 = vpop.f32.mrf.mxu0  ;;  %v189_v20 = vadd.f32 %v695_v36, %v188_v2 }
  0xa5   :  { %v162_v44 = vadd.f32 %v695_v36, %v161_v43 }
  0xa6   :  { %v218_v23 = vmax.f32 %v189_v20, 0.0 }
  0xa7   :  { %v207_v47 = vmax.f32 %v162_v44, 0.0 }
  0xa8   :  { %v230_v24 = vpack.c.bf16 %v218_v23, %v217_v22 }
  0xab   :  { %v191_v6 = vpop.f32.mrf.mxu3 }
  0xac   :  { %v163_v45 = vpop.f32.mrf.mxu0  ;;  %v192_v26 = vadd.f32 %v695_v36, %v191_v6 }
  0xad   :  { %v164_v46 = vadd.f32 %v695_v36, %v163_v45 }
  0xae   :  { %v219_v29 = vmax.f32 %v192_v26, 0.0 }
  0xaf   :  { %v208_v48 = vmax.f32 %v164_v46, 0.0 }
  0xb1   :  { %v225_v49 = vpack.c.bf16 %v208_v48, %v207_v47 }
  0xb3   :  { %452 = vmatmul.msk.bf16.gmra.mxu1 %vm270_vm2, %v225_v49  ;;  %v193_v11 = vpop.f32.mrf.mxu3 }
  0xb4   :  { %v166_v50 = vpop.f32.mrf.mxu0  ;;  %v194_v27 = vadd.f32 %v695_v36, %v193_v11 }
  0xb5   :  { %v167_v51 = vadd.f32 %v695_v36, %v166_v50 }
  0xb6   :  { %v220_v30 = vmax.f32 %v194_v27, 0.0 }
  0xb7   :  { %v209_v54 = vmax.f32 %v167_v51, 0.0 }
  0xb8   :  { %v231_v31 = vpack.c.bf16 %v220_v30, %v219_v29 }
  0xbb   :  { %v196_v18 = vpop.f32.mrf.mxu3 }
  0xbc   :  { %v168_v52 = vpop.f32.mrf.mxu0  ;;  %v197_v32 = vadd.f32 %v695_v36, %v196_v18 }
  0xbd   :  { %v169_v53 = vadd.f32 %v695_v36, %v168_v52 }
  0xbe   :  { %v221_v34 = vmax.f32 %v197_v32, 0.0 }
  0xbf   :  { %v210_v55 = vmax.f32 %v169_v53, 0.0 }
  0xc1   :  { %v226_v56 = vpack.c.bf16 %v210_v55, %v209_v54 }
  0xc3   :  { %453 = vmatmul.msk.bf16.gmra.mxu1 %vm270_vm2, %v226_v56  ;;  %v198_v21 = vpop.f32.mrf.mxu3 }
  0xc4   :  { %v171_v57 = vpop.f32.mrf.mxu0  ;;  %v199_v33 = vadd.f32 %v695_v36, %v198_v21 }
  0xc5   :  { %v172_v58 = vadd.f32 %v695_v36, %v171_v57 }
  0xc6   :  { %v222_v35 = vmax.f32 %v199_v33, 0.0 }
  0xc7   :  { %v211_v62 = vmax.f32 %v172_v58, 0.0 }
  0xc8   :  { %v232_v39 = vpack.c.bf16 %v222_v35, %v221_v34 }
  0xcb   :  { %v201_v25 = vpop.f32.mrf.mxu3 }
  0xcc   :  { %v173_v59 = vpop.f32.mrf.mxu0  ;;  %v202_v43 = vadd.f32 %v695_v36, %v201_v25 }
  0xcd   :  { %v174_v61 = vadd.f32 %v695_v36, %v173_v59 }
  0xce   :  { %v223_v46 = vmax.f32 %v202_v43, 0.0 }
  0xcf   :  { %v212_v63 = vmax.f32 %v174_v61, 0.0 }
  0xd0   :  { %v233_v49 = vpack.c.bf16 %v223_v46, %v223_v46 }
  0xd1   :  { %v227_v0 = vpack.c.bf16 %v212_v63, %v211_v62 }
  0xd3   :  { %454 = vmatmul.msk.bf16.gmra.mxu1 %vm270_vm2, %v227_v0  ;;  %v203_v28 = vpop.f32.mrf.mxu3 }
  0xd4   :  { %v176_v1 = vpop.f32.mrf.mxu0 }
  0xd5   :  { %v177_v3 = vadd.f32 %v695_v36, %v176_v1 }
  0xd7   :  { %v213_v7 = vmax.f32 %v177_v3, 0.0 }
  0xdc   :  { %v178_v4 = vpop.f32.mrf.mxu0 }
  0xdd   :  { %v179_v5 = vadd.f32 %v695_v36, %v178_v4 }
  0xdf   :  { %v214_v8 = vmax.f32 %v179_v5, 0.0 }
  0xe1   :  { %v228_v9 = vpack.c.bf16 %v214_v8, %v213_v7 }
  0xe3   :  { %455 = vmatmul.msk.bf16.gmra.mxu1 %vm270_vm2, %v228_v9 }
  0xe4   :  { %v181_v10 = vpop.f32.mrf.mxu0 }
  0xe5   :  { %v182_v12 = vadd.f32 %v695_v36, %v181_v10 }
  0xe7   :  { %v215_v15 = vmax.f32 %v182_v12, 0.0 }
  0xec   :  { %v183_v13 = vpop.f32.mrf.mxu0 }
  0xed   :  { %v184_v14 = vadd.f32 %v695_v36, %v183_v13 }
  0xef   :  { %v216_v16 = vmax.f32 %v184_v14, 0.0 }
  0xf1   :  { %v229_v17 = vpack.c.bf16 %v216_v16, %v215_v15 }
  0xf3   :  { %456 = vmatmul.msk.bf16.vlgmr.msra.gmra.mxu2 %vm270_vm2, %v229_v17 }
 0x103   :  { %457 = vmatmul.msk.bf16.gmra.mxu2 %vm270_vm2, %v230_v24 }
 0x113   :  { %458 = vmatmul.msk.bf16.gmra.mxu2 %vm270_vm2, %v231_v31 }
 0x120   :  { %v310_v38 = vpop.f32.mrf.mxu1 }
 0x121   :  { %v311_v40 = vadd.f32 %v723_v37, %v310_v38 }
 0x123   :  { %v359_v41 = vmax.f32 %v311_v40, 0.0  ;;  %459 = vmatmul.msk.bf16.gmra.mxu2 %vm270_vm2, %v232_v39 }
 0x125   :  { %v378_v42 = vpack.c.bf16 %v359_v41, %v359_v41 }
 0x127   :  { %398 = vst.msk [vmem:[%s827_s5] sm:$0xf] %vm397_vm3, %v378_v42 }
 0x128   :  { %v312_v44 = vpop.f32.mrf.mxu1 }
 0x129   :  { %v313_v45 = vadd.f32 %v723_v37, %v312_v44 }
 0x12b   :  { %v360_v47 = vmax.f32 %v313_v45, 0.0 }
 0x12d   :  { %v379_v48 = vpack.c.bf16 %v360_v47, %v360_v47 }
 0x12f   :  { %399 = vst.msk [vmem:[%s827_s5 + $0x4] sm:$0xf] %vm397_vm3, %v379_v48 }
 0x130   :  { %v315_v50 = vpop.f32.mrf.mxu1 }
 0x131   :  { %v316_v51 = vadd.f32 %v723_v37, %v315_v50 }
 0x133   :  { %v361_v52 = vmax.f32 %v316_v51, 0.0  ;;  %460 = vmatmul.msk.bf16.gmra.mxu2 %vm270_vm2, %v233_v49 }
 0x135   :  { %v380_v53 = vpack.c.bf16 %v361_v52, %v361_v52 }
 0x137   :  { %400 = vst.msk [vmem:[%s827_s5 + $0x8] sm:$0xf] %vm397_vm3, %v380_v53 }
 0x138   :  { %v317_v36 = vpop.f32.mrf.mxu1 }
 0x139   :  { %v318_v54 = vadd.f32 %v723_v37, %v317_v36 }
 0x13b   :  { %v362_v55 = vmax.f32 %v318_v54, 0.0 }
 0x13d   :  { %v381_v56 = vpack.c.bf16 %v362_v55, %v362_v55 }
 0x13f   :  { %401 = vst.msk [vmem:[%s827_s5 + $0xc] sm:$0xf] %vm397_vm3, %v381_v56 }
 0x140   :  { %v320_v57 = vpop.f32.mrf.mxu1 }
 0x141   :  { %v321_v58 = vadd.f32 %v723_v37, %v320_v57 }
 0x143   :  { %v363_v59 = vmax.f32 %v321_v58, 0.0 }
 0x145   :  { %v382_v60 = vpack.c.bf16 %v363_v59, %v363_v59 }
 0x147   :  { %402 = vst.msk [vmem:[%s827_s5 + $0x10] sm:$0xf] %vm397_vm3, %v382_v60 }
 0x148   :  { %v322_v61 = vpop.f32.mrf.mxu1 }
 0x149   :  { %v323_v62 = vadd.f32 %v723_v37, %v322_v61 }
 0x14b   :  { %v364_v63 = vmax.f32 %v323_v62, 0.0 }
 0x14d   :  { %v383_v0 = vpack.c.bf16 %v364_v63, %v364_v63 }
 0x14f   :  { %403 = vst.msk [vmem:[%s827_s5 + $0x14] sm:$0xf] %vm397_vm3, %v383_v0 }
 0x150   :  { %v325_v1 = vpop.f32.mrf.mxu1 }
 0x151   :  { %v326_v2 = vadd.f32 %v723_v37, %v325_v1 }
 0x153   :  { %v365_v3 = vmax.f32 %v326_v2, 0.0 }
 0x155   :  { %v384_v4 = vpack.c.bf16 %v365_v3, %v365_v3 }
 0x157   :  { %404 = vst.msk [vmem:[%s827_s5 + $0x18] sm:$0xf] %vm397_vm3, %v384_v4 }
 0x158   :  { %v327_v5 = vpop.f32.mrf.mxu1 }
 0x159   :  { %v328_v6 = vadd.f32 %v723_v37, %v327_v5 }
 0x15b   :  { %v366_v7 = vmax.f32 %v328_v6, 0.0 }
 0x15d   :  { %v385_v8 = vpack.c.bf16 %v366_v7, %v366_v7 }
 0x15f   :  { %405 = vst.msk [vmem:[%s827_s5 + $0x1c] sm:$0xf] %vm397_vm3, %v385_v8 }
 0x160   :  { %v330_v9 = vpop.f32.mrf.mxu1 }
 0x161   :  { %v331_v10 = vadd.f32 %v723_v37, %v330_v9 }
 0x163   :  { %v367_v11 = vmax.f32 %v331_v10, 0.0 }
 0x165   :  { %v386_v12 = vpack.c.bf16 %v367_v11, %v367_v11 }
 0x167   :  { %406 = vst.msk [vmem:[%s827_s5 + $0x20] sm:$0xf] %vm397_vm3, %v386_v12 }
 0x168   :  { %v332_v13 = vpop.f32.mrf.mxu1 }
 0x169   :  { %v333_v14 = vadd.f32 %v723_v37, %v332_v13 }
 0x16b   :  { %v368_v15 = vmax.f32 %v333_v14, 0.0 }
 0x16d   :  { %v387_v16 = vpack.c.bf16 %v368_v15, %v368_v15 }
 0x16f   :  { %407 = vst.msk [vmem:[%s827_s5 + $0x24] sm:$0xf] %vm397_vm3, %v387_v16 }
 0x176   :  { %v335_v17 = vpop.f32.mrf.mxu2 }
 0x177   :  { %v336_v18 = vadd.f32 %v723_v37, %v335_v17 }
 0x179   :  { %v369_v19 = vmax.f32 %v336_v18, 0.0 }
 0x17b   :  { %v388_v20 = vpack.c.bf16 %v369_v19, %v369_v19 }
 0x17d   :  { %408 = vst.msk [vmem:[%s827_s5 + $0x28] sm:$0xf] %vm397_vm3, %v388_v20 }
 0x17e   :  { %v337_v21 = vpop.f32.mrf.mxu2 }
 0x17f   :  { %v338_v22 = vadd.f32 %v723_v37, %v337_v21 }
 0x181   :  { %v370_v23 = vmax.f32 %v338_v22, 0.0 }
 0x183   :  { %v389_v24 = vpack.c.bf16 %v370_v23, %v370_v23 }
 0x185   :  { %409 = vst.msk [vmem:[%s827_s5 + $0x2c] sm:$0xf] %vm397_vm3, %v389_v24 }
 0x186   :  { %v340_v25 = vpop.f32.mrf.mxu2 }
 0x187   :  { %v341_v26 = vadd.f32 %v723_v37, %v340_v25 }
 0x189   :  { %v371_v27 = vmax.f32 %v341_v26, 0.0 }
 0x18b   :  { %v390_v28 = vpack.c.bf16 %v371_v27, %v371_v27 }
 0x18d   :  { %410 = vst.msk [vmem:[%s827_s5 + $0x30] sm:$0xf] %vm397_vm3, %v390_v28 }
 0x18e   :  { %v342_v29 = vpop.f32.mrf.mxu2 }
 0x18f   :  { %v343_v30 = vadd.f32 %v723_v37, %v342_v29 }
 0x191   :  { %v372_v31 = vmax.f32 %v343_v30, 0.0 }
 0x193   :  { %v391_v32 = vpack.c.bf16 %v372_v31, %v372_v31 }
 0x195   :  { %411 = vst.msk [vmem:[%s827_s5 + $0x34] sm:$0xf] %vm397_vm3, %v391_v32 }
 0x196   :  { %v345_v33 = vpop.f32.mrf.mxu2 }
 0x197   :  { %v346_v34 = vadd.f32 %v723_v37, %v345_v33 }
 0x199   :  { %v373_v35 = vmax.f32 %v346_v34, 0.0 }
 0x19b   :  { %v392_v38 = vpack.c.bf16 %v373_v35, %v373_v35 }
 0x19d   :  { %412 = vst.msk [vmem:[%s827_s5 + $0x38] sm:$0xf] %vm397_vm3, %v392_v38 }
 0x19e   :  { %v347_v39 = vpop.f32.mrf.mxu2 }
 0x19f   :  { %v348_v40 = vadd.f32 %v723_v37, %v347_v39 }
 0x1a1   :  { %v374_v41 = vmax.f32 %v348_v40, 0.0 }
 0x1a3   :  { %v393_v42 = vpack.c.bf16 %v374_v41, %v374_v41 }
 0x1a5   :  { %413 = vst.msk [vmem:[%s827_s5 + $0x3c] sm:$0xf] %vm397_vm3, %v393_v42 }
 0x1a6   :  { %v350_v43 = vpop.f32.mrf.mxu2 }
 0x1a7   :  { %v351_v44 = vadd.f32 %v723_v37, %v350_v43 }
 0x1a9   :  { %v375_v45 = vmax.f32 %v351_v44, 0.0 }
 0x1ab   :  { %v394_v46 = vpack.c.bf16 %v375_v45, %v375_v45 }
 0x1ad   :  { %414 = vst.msk [vmem:[%s827_s5 + $0x40] sm:$0xf] %vm397_vm3, %v394_v46 }
 0x1ae   :  { %v352_v47 = vpop.f32.mrf.mxu2 }
 0x1af   :  { %v353_v48 = vadd.f32 %v723_v37, %v352_v47 }
 0x1b1   :  { %v376_v49 = vmax.f32 %v353_v48, 0.0 }
 0x1b3   :  { %v395_v50 = vpack.c.bf16 %v376_v49, %v376_v49 }
 0x1b5   :  { %415 = vst.msk [vmem:[%s827_s5 + $0x44] sm:$0xf] %vm397_vm3, %v395_v50 }
 0x1b6   :  { %v355_v51 = vpop.f32.mrf.mxu2 }
 0x1b7   :  { %v356_v52 = vadd.f32 %v723_v37, %v355_v51 }
 0x1b9   :  { %v377_v53 = vmax.f32 %v356_v52, 0.0 }
 0x1bb   :  { %v396_v36 = vpack.c.bf16 %v377_v53, %v377_v53 }
 0x1bd   :  { %417 = vst.msk [vmem:[%s827_s5 + $0x48] sm:$0x7] %vm416_vm4, %v396_v36 }
 0x1be   :  { %v357_v54 = vpop.f32.mrf.mxu2 }
 0x1bf   :  { %422 = vsyncpa [#allocation3], 1 }
 0x1c0   :  { %423 = vsyncpa [#allocation5], 1 }
 0x1c1   :  { %424 = vsyncpa [#allocation8], 1 }

// kernel: convnet_forward.3
= control target key start
LH: loop header
LB: loop body
LE: loop exit
PB: predicated region body
PF: predicated region fallthrough
CT: control target
= control target key end

     0   :  { %vm2533_vm0 = vcmask 523264   ;;  %vm3138_vm1 = vcmask 1040384   ;;  %vm3107_vm2 = vcmask 15360   ;;  %vm5263_vm7 = vcmask 31744   ;;  %s9918_s3 = inlined_call_operand.vmem [shape: bf16[4800,20], index: 3, kind: input, shape index: {}]   ;;  %s9919_s0 = inlined_call_operand.vmem [shape: bf16[2,4800], index: 0, kind: input, shape index: {}]   ;;  %s9920_s4 = inlined_call_operand.vmem [shape: f32[1,20], index: 4, kind: input, shape index: {}]   ;;  %s9921_s1 = inlined_call_operand.vmem [shape: f32[2,10], index: 1, kind: input, shape index: {}]   ;;  %s9922_s2 = inlined_call_operand.vmem [shape: bf16[150,2], index: 2, kind: input, shape index: {}]   ;;  %s9923_s7 = inlined_call_operand.vmem [shape: bf16[64,64], index: 7, kind: input, shape index: {}]   ;;  %s9924_s5 = inlined_call_operand.vmem [shape: f32[10,150,64], index: 5, kind: input, shape index: {}]   ;;  %s9925_s6 = inlined_call_operand.vmem [shape: f32[150,64], index: 6, kind: input, shape index: {}]   ;;  %s9926_s8 = inlined_call_operand.vmem [shape: f32[1,64], index: 8, kind: input, shape index: {}]   ;;  %s9927_s9 = inlined_call_operand.vmem [shape: bf16[64,4], index: 9, kind: input, shape index: {}]   ;;  %s9928_s10 = inlined_call_operand.vmem [shape: f32[1,4], index: 10, kind: input, shape index: {}]   ;;  %s9929_s11 = inlined_call_operand.vmem [shape: f32[150,4], index: 11, kind: output, shape index: {}]  }
   0x1   :  { %v6784_v0 = vld [vmem:[%s9918_s3 + $0x38] sm:$0xff]  ;;  %v6783_v1 = vld [vmem:[%s9918_s3 + $0x30] sm:$0xff]  ;;  %v39_v2 = vld [vmem:[%s9919_s0] sm:$0xff] }
   0x2   :  { %2536 = vmatpush.bf16.msra.mxu0 %v6784_v0  ;;  %v6782_v3 = vld [vmem:[%s9918_s3 + $0x28] sm:$0xff]  ;;  %649 = vst [vmem:[#allocation1] ss:$9 sm:$0xff] %v39_v2  ;;  %v6781_v4 = vld [vmem:[%s9918_s3 + $0x20] sm:$0xff]  ;;  %v6780_v5 = vld [vmem:[%s9918_s3 + $0x18] sm:$0xff] }
   0x3   :  { %v6779_v6 = vld [vmem:[%s9918_s3 + $0x10] sm:$0xff]  ;;  %v6778_v7 = vld [vmem:[%s9918_s3 + $0x8] sm:$0xff]  ;;  %v6777_v8 = vld [vmem:[%s9918_s3] sm:$0xff] }
   0x4   :  { %v6792_v9 = vld [vmem:[%s9918_s3 + $0x78] sm:$0xff]  ;;  %v6791_v11 = vld [vmem:[%s9918_s3 + $0x70] sm:$0xff]  ;;  %v6790_v12 = vld [vmem:[%s9918_s3 + $0x68] sm:$0xff] }
   0x5   :  { %v6789_v13 = vld [vmem:[%s9918_s3 + $0x60] sm:$0xff]  ;;  %v6788_v14 = vld [vmem:[%s9918_s3 + $0x58] sm:$0xff]  ;;  %v6787_v15 = vld [vmem:[%s9918_s3 + $0x50] sm:$0xff] }
   0x6   :  { %2537 = vmatpush.bf16.msra.mxu0 %v6783_v1  ;;  %v6786_v16 = vld [vmem:[%s9918_s3 + $0x48] sm:$0xff]  ;;  %v6785_v17 = vld [vmem:[%s9918_s3 + $0x40] sm:$0xff]  ;;  %v6800_v18 = vld [vmem:[%s9918_s3 + $0xb8] sm:$0xff] }
   0x7   :  { %v6799_v20 = vld [vmem:[%s9918_s3 + $0xb0] sm:$0xff]  ;;  %v6798_v21 = vld [vmem:[%s9918_s3 + $0xa8] sm:$0xff]  ;;  %v6797_v22 = vld [vmem:[%s9918_s3 + $0xa0] sm:$0xff] }
   0x8   :  { %v6796_v23 = vld [vmem:[%s9918_s3 + $0x98] sm:$0xff]  ;;  %v6795_v24 = vld [vmem:[%s9918_s3 + $0x90] sm:$0xff]  ;;  %v6794_v25 = vld [vmem:[%s9918_s3 + $0x88] sm:$0xff] }
   0x9   :  { %v650_v10 = vld [vmem:[#allocation1] sm:$0xff]  ;;  %v651_v19 = vld [vmem:[#allocation1 + $0x9] sm:$0xff]  ;;  %v6832_v26 = vld [vmem:[%s9918_s3 + $0x1b8] sm:$0xff] }
   0xa   :  { %2538 = vmatpush.bf16.msra.mxu0 %v6782_v3  ;;  %2614 = vmatpush.bf16.msra.mxu2 %v6832_v26  ;;  %v6793_v27 = vld [vmem:[%s9918_s3 + $0x80] sm:$0xff]  ;;  %v6840_v28 = vld [vmem:[%s9918_s3 + $0x1f8] sm:$0xff]  ;;  %v6831_v31 = vld [vmem:[%s9918_s3 + $0x1b0] sm:$0xff] }
   0xb   :  { %v6808_v29 = vld [vmem:[%s9918_s3 + $0xf8] sm:$0xff]  ;;  %2627 = vmatpush.bf16.msra.mxu3 %v6840_v28  ;;  %v6839_v33 = vld [vmem:[%s9918_s3 + $0x1f0] sm:$0xff]  ;;  %v6830_v36 = vld [vmem:[%s9918_s3 + $0x1a8] sm:$0xff] }
   0xc   :  { %v6824_v30 = vld [vmem:[%s9918_s3 + $0x178] sm:$0xff]  ;;  %v6807_v34 = vld [vmem:[%s9918_s3 + $0xf0] sm:$0xff]  ;;  %v6838_v37 = vld [vmem:[%s9918_s3 + $0x1e8] sm:$0xff] }
   0xd   :  { %v652_v32 = vld [vmem:[#allocation1 + $0x12] sm:$0xff]  ;;  %2601 = vmatpush.bf16.msra.mxu1 %v6824_v30  ;;  %v6806_v38 = vld [vmem:[%s9918_s3 + $0xe8] sm:$0xff]  ;;  %v6829_v40 = vld [vmem:[%s9918_s3 + $0x1a0] sm:$0xff] }
   0xe   :  { %2539 = vmatpush.bf16.msra.mxu0 %v6781_v4  ;;  %2615 = vmatpush.bf16.msra.mxu2 %v6831_v31  ;;  %v6823_v35 = vld [vmem:[%s9918_s3 + $0x170] sm:$0xff]  ;;  %v6822_v39 = vld [vmem:[%s9918_s3 + $0x168] sm:$0xff]  ;;  %v6837_v41 = vld [vmem:[%s9918_s3 + $0x1e0] sm:$0xff] }
   0xf   :  { %2628 = vmatpush.bf16.msra.mxu3 %v6839_v33  ;;  %v6805_v42 = vld [vmem:[%s9918_s3 + $0xe0] sm:$0xff]  ;;  %v6828_v44 = vld [vmem:[%s9918_s3 + $0x198] sm:$0xff]  ;;  %v6827_v48 = vld [vmem:[%s9918_s3 + $0x190] sm:$0xff] }
  0x10   :  { %v6821_v43 = vld [vmem:[%s9918_s3 + $0x160] sm:$0xff]  ;;  %v6836_v45 = vld [vmem:[%s9918_s3 + $0x1d8] sm:$0xff]  ;;  %v6835_v49 = vld [vmem:[%s9918_s3 + $0x1d0] sm:$0xff] }
  0x11   :  { %2602 = vmatpush.bf16.msra.mxu1 %v6823_v35  ;;  %v6804_v46 = vld [vmem:[%s9918_s3 + $0xd8] sm:$0xff]  ;;  %v6803_v50 = vld [vmem:[%s9918_s3 + $0xd0] sm:$0xff]  ;;  %v6826_v52 = vld [vmem:[%s9918_s3 + $0x188] sm:$0xff] }
  0x12   :  { %2540 = vmatpush.bf16.msra.mxu0 %v6780_v5  ;;  %2616 = vmatpush.bf16.msra.mxu2 %v6830_v36  ;;  %v6820_v47 = vld [vmem:[%s9918_s3 + $0x158] sm:$0xff]  ;;  %v6819_v51 = vld [vmem:[%s9918_s3 + $0x150] sm:$0xff]  ;;  %v6834_v53 = vld [vmem:[%s9918_s3 + $0x1c8] sm:$0xff] }
  0x13   :  { %2629 = vmatpush.bf16.msra.mxu3 %v6838_v37  ;;  %v6802_v54 = vld [vmem:[%s9918_s3 + $0xc8] sm:$0xff]  ;;  %v6825_v56 = vld [vmem:[%s9918_s3 + $0x180] sm:$0xff]  ;;  %v6864_v57 = vld [vmem:[%s9918_s3 + $0x2b8] sm:$0xff] }
  0x14   :  { %v6818_v55 = vld [vmem:[%s9918_s3 + $0x148] sm:$0xff]  ;;  %v6833_v58 = vld [vmem:[%s9918_s3 + $0x1c0] sm:$0xff]  ;;  %v6872_v60 = vld [vmem:[%s9918_s3 + $0x2f8] sm:$0xff] }
  0x15   :  { %2603 = vmatpush.bf16.msra.mxu1 %v6822_v39  ;;  %v6801_v59 = vld [vmem:[%s9918_s3 + $0xc0] sm:$0xff]  ;;  %v6816_v61 = vld [vmem:[%s9918_s3 + $0x138] sm:$0xff]  ;;  %v40_v0 = vld [vmem:[%s9919_s0 + $0x8] sm:$0xff] }
  0x16   :  { %2541 = vmatpush.bf16.msra.mxu0 %v6779_v6  ;;  %2617 = vmatpush.bf16.msra.mxu2 %v6829_v40  ;;  %v656_v62 = vld [vmem:[#allocation1 + $0x36] sm:$0xff]  ;;  %v6817_v63 = vld [vmem:[%s9918_s3 + $0x140] sm:$0xff]  ;;  %v655_v6 = vld [vmem:[#allocation1 + $0x2d] sm:$0xff] }
  0x17   :  { %2630 = vmatpush.bf16.msra.mxu3 %v6837_v41  ;;  %v6856_v1 = vld [vmem:[%s9918_s3 + $0x278] sm:$0xff]  ;;  %v6863_v2 = vld [vmem:[%s9918_s3 + $0x2b0] sm:$0xff]  ;;  %v7639_v5 = vld [vmem:[#allocation1 + $0x24] sm:$0xff] }
  0x18   :  { %v653_v3 = vld [vmem:[#allocation1 + $0x1b] sm:$0xff]  ;;  %v6858_v26 = vld [vmem:[%s9918_s3 + $0x288] sm:$0xff]  ;;  %v6895_v40 = vld [vmem:[%s9918_s3 + $0x3b0] sm:$0xff] }
  0x19   :  { %2604 = vmatpush.bf16.msra.mxu1 %v6821_v43  ;;  %v657_v4 = vld [vmem:[#allocation1 + $0x3f] sm:$0xff]  ;;  %v6810_v28 = vld [vmem:[%s9918_s3 + $0x108] sm:$0xff]  ;;  %v6903_v41 = vld [vmem:[%s9918_s3 + $0x3f0] sm:$0xff] }
  0x1a   :  { %2542 = vmatpush.bf16.msra.mxu0 %v6778_v7  ;;  %2618 = vmatpush.bf16.msra.mxu2 %v6828_v44  ;;  %v6871_v7 = vld [vmem:[%s9918_s3 + $0x2f0] sm:$0xff]  ;;  %659 = vst [vmem:[#allocation1] ss:$9 sm:$0xff] %v40_v0  ;;  %v6857_v30 = vld [vmem:[%s9918_s3 + $0x280] sm:$0xff]  ;;  %v6896_v31 = vld [vmem:[%s9918_s3 + $0x3b8] sm:$0xff] }
  0x1b   :  { %2631 = vmatpush.bf16.msra.mxu3 %v6836_v45  ;;  %v6809_v33 = vld [vmem:[%s9918_s3 + $0x100] sm:$0xff]  ;;  %v6848_v35 = vld [vmem:[%s9918_s3 + $0x238] sm:$0xff]  ;;  %v6887_v44 = vld [vmem:[%s9918_s3 + $0x370] sm:$0xff] }
  0x1c   :  { %v6849_v37 = vld [vmem:[%s9918_s3 + $0x240] sm:$0xff]  ;;  %v6894_v45 = vld [vmem:[%s9918_s3 + $0x3a8] sm:$0xff] }
  0x1d   :  { %2605 = vmatpush.bf16.msra.mxu1 %v6820_v47  ;;  %v6846_v47 = vld [vmem:[%s9918_s3 + $0x228] sm:$0xff] }
  0x1e   :  { %2543 = vmatpush.bf16.msra.mxu0 %v6777_v8  ;;  %2619 = vmatpush.bf16.msra.mxu2 %v6827_v48  ;;  %v6815_v8 = vld [vmem:[%s9918_s3 + $0x130] sm:$0xff]  ;;  %v6886_v48 = vld [vmem:[%s9918_s3 + $0x368] sm:$0xff] }
  0x1f   :  { %2632 = vmatpush.bf16.msra.mxu3 %v6835_v49  ;;  %v6893_v49 = vld [vmem:[%s9918_s3 + $0x3a0] sm:$0xff]  ;;  %v6898_v0 = vld [vmem:[%s9918_s3 + $0x3c8] sm:$0xff] }
  0x21   :  { %2544 = vmatmul.bf16.vlgmr.msra.gmra.mxu0 %v650_v10  ;;  %2606 = vmatpush.bf16.msra.mxu1 %v6819_v51  ;;  %v6862_v10 = vld [vmem:[%s9918_s3 + $0x2a8] sm:$0xff]  ;;  %v662_v36 = vld [vmem:[#allocation1 + $0x12] sm:$0xff]  ;;  %v663_v39 = vld [vmem:[#allocation1 + $0x1b] sm:$0xff] }
  0x22   :  { %2549 = vmatpush.bf16.msrb.mxu0 %v6792_v9  ;;  %2620 = vmatpush.bf16.msra.mxu2 %v6826_v52  ;;  %v6855_v9 = vld [vmem:[%s9918_s3 + $0x270] sm:$0xff]  ;;  %v6845_v51 = vld [vmem:[%s9918_s3 + $0x220] sm:$0xff] }
  0x23   :  { %2633 = vmatpush.bf16.msra.mxu3 %v6834_v53  ;;  %v661_v43 = vld [vmem:[#allocation1 + $0x9] sm:$0xff]  ;;  %v6885_v52 = vld [vmem:[%s9918_s3 + $0x360] sm:$0xff]  ;;  %v6892_v53 = vld [vmem:[%s9918_s3 + $0x398] sm:$0xff] }
  0x25   :  { %2607 = vmatpush.bf16.msra.mxu1 %v6818_v55  ;;  %v6900_v55 = vld [vmem:[%s9918_s3 + $0x3d8] sm:$0xff] }
  0x26   :  { %2550 = vmatpush.bf16.msrb.mxu0 %v6791_v11  ;;  %2621 = vmatpush.bf16.msra.mxu2 %v6825_v56  ;;  %v6870_v11 = vld [vmem:[%s9918_s3 + $0x2e8] sm:$0xff]  ;;  %v6844_v56 = vld [vmem:[%s9918_s3 + $0x218] sm:$0xff] }
  0x27   :  { %2634 = vmatpush.bf16.msra.mxu3 %v6833_v58  ;;  %v6891_v58 = vld [vmem:[%s9918_s3 + $0x390] sm:$0xff] }
  0x29   :  { %2622 = vmatmul.bf16.vlgmr.msra.gmra.mxu2 %v656_v62  ;;  %2608 = vmatpush.bf16.msra.mxu1 %v6817_v63  ;;  %v6890_v62 = vld [vmem:[%s9918_s3 + $0x388] sm:$0xff] }
  0x2a   :  { %2551 = vmatpush.bf16.msrb.mxu0 %v6790_v12  ;;  %2666 = vmatpush.bf16.msrb.mxu2 %v6864_v57  ;;  %v6814_v12 = vld [vmem:[%s9918_s3 + $0x128] sm:$0xff]  ;;  %v6884_v57 = vld [vmem:[%s9918_s3 + $0x358] sm:$0xff] }
  0x2b   :  { %2679 = vmatpush.bf16.msrb.mxu3 %v6872_v60  ;;  %v6843_v60 = vld [vmem:[%s9918_s3 + $0x210] sm:$0xff] }
  0x2c   :  { %2635 = vmatmul.bf16.vlgmr.msra.gmra.mxu3 %v657_v4  ;;  %2609 = vmatmul.bf16.vlgmr.msra.gmra.mxu1 %v655_v6  ;;  %v6928_v4 = vld [vmem:[%s9918_s3 + $0x4b8] sm:$0xff]  ;;  %v6841_v6 = vld [vmem:[%s9918_s3 + $0x200] sm:$0xff] }
  0x2d   :  { %2653 = vmatpush.bf16.msrb.mxu1 %v6856_v1  ;;  %v6842_v1 = vld [vmem:[%s9918_s3 + $0x208] sm:$0xff] }
  0x2e   :  { %2552 = vmatpush.bf16.msrb.mxu0 %v6789_v13  ;;  %2667 = vmatpush.bf16.msrb.mxu2 %v6863_v2  ;;  %v6854_v13 = vld [vmem:[%s9918_s3 + $0x268] sm:$0xff] }
  0x2f   :  { %2680 = vmatpush.bf16.msrb.mxu3 %v6871_v7  ;;  %v6882_v2 = vld [vmem:[%s9918_s3 + $0x348] sm:$0xff]  ;;  %v6936_v7 = vld [vmem:[%s9918_s3 + $0x4f8] sm:$0xff] }
  0x31   :  { %2654 = vmatpush.bf16.msrb.mxu1 %v6855_v9  ;;  %v6880_v9 = vld [vmem:[%s9918_s3 + $0x338] sm:$0xff] }
  0x32   :  { %2553 = vmatpush.bf16.msrb.mxu0 %v6788_v14  ;;  %2668 = vmatpush.bf16.msrb.mxu2 %v6862_v10  ;;  %v6861_v14 = vld [vmem:[%s9918_s3 + $0x2a0] sm:$0xff] }
  0x33   :  { %2681 = vmatpush.bf16.msrb.mxu3 %v6870_v11  ;;  %v660_v10 = vld [vmem:[#allocation1] sm:$0xff]  ;;  %v666_v11 = vld [vmem:[#allocation1 + $0x36] sm:$0xff] }
  0x35   :  { %2655 = vmatpush.bf16.msrb.mxu1 %v6854_v13  ;;  %v7833_v13 = vld [vmem:[#allocation1 + $0x24] sm:$0xff] }
  0x36   :  { %2554 = vmatpush.bf16.msrb.mxu0 %v6787_v15  ;;  %v6869_v15 = vld [vmem:[%s9918_s3 + $0x2e0] sm:$0xff]  ;;  %2669 = vmatpush.bf16.msrb.mxu2 %v6861_v14 }
  0x37   :  { %2682 = vmatpush.bf16.msrb.mxu3 %v6869_v15  ;;  %v667_v14 = vld [vmem:[#allocation1 + $0x3f] sm:$0xff] }
  0x38   :  { %v6920_v15 = vld [vmem:[%s9918_s3 + $0x478] sm:$0xff] }
  0x3a   :  { %2555 = vmatpush.bf16.msrb.mxu0 %v6786_v16  ;;  %v6813_v16 = vld [vmem:[%s9918_s3 + $0x120] sm:$0xff] }
  0x3e   :  { %2556 = vmatpush.bf16.msrb.mxu0 %v6785_v17  ;;  %v6853_v17 = vld [vmem:[%s9918_s3 + $0x260] sm:$0xff] }
  0x3f   :  { %2656 = vmatpush.bf16.msrb.mxu1 %v6853_v17  ;;  %v665_v17 = vld [vmem:[#allocation1 + $0x2d] sm:$0xff] }
  0x41   :  { %2557 = vmatmul.bf16.vlgmr.msrb.gmra.mxu0 %v651_v19  ;;  %v6868_v19 = vld [vmem:[%s9918_s3 + $0x2d8] sm:$0xff] }
  0x42   :  { %2562 = vmatpush.bf16.msra.mxu0 %v6800_v18  ;;  %v6860_v18 = vld [vmem:[%s9918_s3 + $0x298] sm:$0xff]  ;;  %2683 = vmatpush.bf16.msrb.mxu3 %v6868_v19  ;;  %v6879_v19 = vld [vmem:[%s9918_s3 + $0x330] sm:$0xff] }
  0x43   :  { %2670 = vmatpush.bf16.msrb.mxu2 %v6860_v18  ;;  %v6935_v18 = vld [vmem:[%s9918_s3 + $0x4f0] sm:$0xff] }
  0x46   :  { %2563 = vmatpush.bf16.msra.mxu0 %v6799_v20  ;;  %v6812_v20 = vld [vmem:[%s9918_s3 + $0x118] sm:$0xff] }
  0x4a   :  { %2564 = vmatpush.bf16.msra.mxu0 %v6798_v21  ;;  %v6852_v21 = vld [vmem:[%s9918_s3 + $0x258] sm:$0xff] }
  0x4b   :  { %2657 = vmatpush.bf16.msrb.mxu1 %v6852_v21  ;;  %v6926_v21 = vld [vmem:[%s9918_s3 + $0x4a8] sm:$0xff] }
  0x4e   :  { %2565 = vmatpush.bf16.msra.mxu0 %v6797_v22  ;;  %v6859_v22 = vld [vmem:[%s9918_s3 + $0x290] sm:$0xff] }
  0x4f   :  { %2671 = vmatpush.bf16.msrb.mxu2 %v6859_v22  ;;  %v6934_v22 = vld [vmem:[%s9918_s3 + $0x4e8] sm:$0xff] }
  0x52   :  { %2566 = vmatpush.bf16.msra.mxu0 %v6796_v23  ;;  %v6867_v23 = vld [vmem:[%s9918_s3 + $0x2d0] sm:$0xff] }
  0x53   :  { %2684 = vmatpush.bf16.msrb.mxu3 %v6867_v23  ;;  %2672 = vmatpush.bf16.msrb.mxu2 %v6858_v26  ;;  %v7296_v23 = vld [vmem:[%s9920_s4] ss:$0 sm:$0xff] }
  0x54   :  { %v6925_v26 = vld [vmem:[%s9918_s3 + $0x4a0] sm:$0xff] }
  0x56   :  { %2567 = vmatpush.bf16.msra.mxu0 %v6795_v24  ;;  %v6811_v24 = vld [vmem:[%s9918_s3 + $0x110] sm:$0xff] }
  0x57   :  { %2673 = vmatpush.bf16.msrb.mxu2 %v6857_v30  ;;  %v6917_v30 = vld [vmem:[%s9918_s3 + $0x460] sm:$0xff] }
  0x5a   :  { %2568 = vmatpush.bf16.msra.mxu0 %v6794_v25  ;;  %v6851_v25 = vld [vmem:[%s9918_s3 + $0x250] sm:$0xff]  ;;  %2674 = vmatmul.bf16.vlgmr.msrb.gmra.mxu2 %v662_v36  ;;  %v6916_v36 = vld [vmem:[%s9918_s3 + $0x458] sm:$0xff] }
  0x5b   :  { %2658 = vmatpush.bf16.msrb.mxu1 %v6851_v25  ;;  %2718 = vmatpush.bf16.msra.mxu2 %v6896_v31  ;;  %v6918_v25 = vld [vmem:[%s9918_s3 + $0x468] sm:$0xff] }
  0x5e   :  { %2569 = vmatpush.bf16.msra.mxu0 %v6793_v27  ;;  %v6866_v27 = vld [vmem:[%s9918_s3 + $0x2c8] sm:$0xff] }
  0x5f   :  { %2685 = vmatpush.bf16.msrb.mxu3 %v6866_v27  ;;  %2719 = vmatpush.bf16.msra.mxu2 %v6895_v40  ;;  %v6933_v27 = vld [vmem:[%s9918_s3 + $0x4e0] sm:$0xff]  ;;  %v6915_v40 = vld [vmem:[%s9918_s3 + $0x450] sm:$0xff] }
  0x61   :  { %2570 = vmatmul.bf16.vlgmr.msra.gmra.mxu0 %v652_v32  ;;  %v6865_v32 = vld [vmem:[%s9918_s3 + $0x2c0] sm:$0xff] }
  0x62   :  { %2575 = vmatpush.bf16.msrb.mxu0 %v6808_v29  ;;  %v6850_v29 = vld [vmem:[%s9918_s3 + $0x248] sm:$0xff] }
  0x63   :  { %2659 = vmatpush.bf16.msrb.mxu1 %v6850_v29  ;;  %2686 = vmatpush.bf16.msrb.mxu3 %v6865_v32  ;;  %v6877_v29 = vld [vmem:[%s9918_s3 + $0x320] sm:$0xff]  ;;  %v6924_v32 = vld [vmem:[%s9918_s3 + $0x498] sm:$0xff] }
  0x64   :  { %2720 = vmatpush.bf16.msra.mxu2 %v6894_v45  ;;  %v6914_v45 = vld [vmem:[%s9918_s3 + $0x448] sm:$0xff] }
  0x66   :  { %2576 = vmatpush.bf16.msrb.mxu0 %v6807_v34  ;;  %v6904_v34 = vld [vmem:[%s9918_s3 + $0x3f8] sm:$0xff]  ;;  %2687 = vmatmul.bf16.vlgmr.msrb.gmra.mxu3 %v663_v39  ;;  %v6875_v39 = vld [vmem:[%s9918_s3 + $0x310] sm:$0xff] }
  0x67   :  { %2731 = vmatpush.bf16.msra.mxu3 %v6904_v34  ;;  %2660 = vmatpush.bf16.msrb.mxu1 %v6849_v37  ;;  %v6923_v37 = vld [vmem:[%s9918_s3 + $0x490] sm:$0xff] }
  0x68   :  { %2721 = vmatpush.bf16.msra.mxu2 %v6893_v49  ;;  %v6960_v49 = vld [vmem:[%s9918_s3 + $0x5b8] sm:$0xff] }
  0x6a   :  { %2577 = vmatpush.bf16.msrb.mxu0 %v6806_v38  ;;  %v6888_v38 = vld [vmem:[%s9918_s3 + $0x378] sm:$0xff]  ;;  %2661 = vmatmul.bf16.vlgmr.msrb.gmra.mxu1 %v661_v43  ;;  %v6930_v43 = vld [vmem:[%s9918_s3 + $0x4c8] sm:$0xff] }
  0x6b   :  { %2705 = vmatpush.bf16.msra.mxu1 %v6888_v38  ;;  %2732 = vmatpush.bf16.msra.mxu3 %v6903_v41  ;;  %v6931_v38 = vld [vmem:[%s9918_s3 + $0x4d0] sm:$0xff] }
  0x6c   :  { %2722 = vmatpush.bf16.msra.mxu2 %v6892_v53 }
  0x6e   :  { %2578 = vmatpush.bf16.msrb.mxu0 %v6805_v42  ;;  %v6847_v42 = vld [vmem:[%s9918_s3 + $0x230] sm:$0xff] }
  0x6f   :  { %2706 = vmatpush.bf16.msra.mxu1 %v6887_v44  ;;  %v6874_v44 = vld [vmem:[%s9918_s3 + $0x308] sm:$0xff] }
  0x70   :  { %2723 = vmatpush.bf16.msra.mxu2 %v6891_v58 }
  0x72   :  { %2579 = vmatpush.bf16.msrb.mxu0 %v6804_v46  ;;  %v6902_v46 = vld [vmem:[%s9918_s3 + $0x3e8] sm:$0xff] }
  0x73   :  { %2733 = vmatpush.bf16.msra.mxu3 %v6902_v46  ;;  %2707 = vmatpush.bf16.msra.mxu1 %v6886_v48  ;;  %v6921_v46 = vld [vmem:[%s9918_s3 + $0x480] sm:$0xff] }
  0x74   :  { %2724 = vmatpush.bf16.msra.mxu2 %v6890_v62  ;;  %v6873_v48 = vld [vmem:[%s9918_s3 + $0x300] sm:$0xff]  ;;  %v6910_v62 = vld [vmem:[%s9918_s3 + $0x428] sm:$0xff] }
  0x76   :  { %2580 = vmatpush.bf16.msrb.mxu0 %v6803_v50  ;;  %v6901_v50 = vld [vmem:[%s9918_s3 + $0x3e0] sm:$0xff] }
  0x77   :  { %2734 = vmatpush.bf16.msra.mxu3 %v6901_v50  ;;  %2708 = vmatpush.bf16.msra.mxu1 %v6885_v52  ;;  %v6912_v50 = vld [vmem:[%s9918_s3 + $0x438] sm:$0xff]  ;;  %v6913_v52 = vld [vmem:[%s9918_s3 + $0x440] sm:$0xff] }
  0x7a   :  { %2581 = vmatpush.bf16.msrb.mxu0 %v6802_v54 }
  0x7b   :  { %2735 = vmatpush.bf16.msra.mxu3 %v6900_v55  ;;  %2709 = vmatpush.bf16.msra.mxu1 %v6884_v57  ;;  %v6952_v55 = vld [vmem:[%s9918_s3 + $0x578] sm:$0xff]  ;;  %v6911_v57 = vld [vmem:[%s9918_s3 + $0x430] sm:$0xff] }
  0x7e   :  { %2582 = vmatpush.bf16.msrb.mxu0 %v6801_v59  ;;  %v6899_v59 = vld [vmem:[%s9918_s3 + $0x3d0] sm:$0xff] }
  0x7f   :  { %2736 = vmatpush.bf16.msra.mxu3 %v6899_v59  ;;  %v6967_v59 = vld [vmem:[%s9918_s3 + $0x5f0] sm:$0xff] }
  0x81   :  { %2583 = vmatmul.bf16.vlgmr.msrb.gmra.mxu0 %v653_v3  ;;  %v6889_v3 = vld [vmem:[%s9918_s3 + $0x380] sm:$0xff] }
  0x82   :  { %2588 = vmatpush.bf16.msra.mxu0 %v6816_v61  ;;  %v6883_v61 = vld [vmem:[%s9918_s3 + $0x350] sm:$0xff]  ;;  %2725 = vmatpush.bf16.msra.mxu2 %v6889_v3  ;;  %v6965_v3 = vld [vmem:[%s9918_s3 + $0x5e0] sm:$0xff] }
  0x83   :  { %2710 = vmatpush.bf16.msra.mxu1 %v6883_v61  ;;  %2737 = vmatpush.bf16.msra.mxu3 %v6898_v0  ;;  %v6958_v61 = vld [vmem:[%s9918_s3 + $0x5a8] sm:$0xff] }
  0x84   :  { %v6950_v0 = vld [vmem:[%s9918_s3 + $0x568] sm:$0xff] }
  0x85   :  { %2726 = vmatmul.bf16.vlgmr.msra.gmra.mxu2 %v666_v11  ;;  %v6955_v11 = vld [vmem:[%s9918_s3 + $0x590] sm:$0xff] }
  0x86   :  { %2589 = vmatpush.bf16.msra.mxu0 %v6815_v8  ;;  %v41_v8 = vld [vmem:[%s9919_s0 + $0x10] sm:$0xff]  ;;  %2770 = vmatpush.bf16.msrb.mxu2 %v6928_v4 }
  0x87   :  { %2711 = vmatpush.bf16.msra.mxu1 %v6882_v2  ;;  %669 = vst [vmem:[#allocation1] ss:$9 sm:$0xff] %v41_v8  ;;  %v6909_v2 = vld [vmem:[%s9918_s3 + $0x420] sm:$0xff]  ;;  %v6908_v8 = vld [vmem:[%s9918_s3 + $0x418] sm:$0xff] }
  0x8a   :  { %2590 = vmatpush.bf16.msra.mxu0 %v6814_v12  ;;  %v6881_v12 = vld [vmem:[%s9918_s3 + $0x340] sm:$0xff] }
  0x8b   :  { %2712 = vmatpush.bf16.msra.mxu1 %v6881_v12  ;;  %v6907_v12 = vld [vmem:[%s9918_s3 + $0x410] sm:$0xff] }
  0x8e   :  { %2591 = vmatpush.bf16.msra.mxu0 %v6813_v16  ;;  %v6927_v16 = vld [vmem:[%s9918_s3 + $0x4b0] sm:$0xff]  ;;  %2713 = vmatmul.bf16.vlgmr.msra.gmra.mxu1 %v665_v17  ;;  %v6906_v17 = vld [vmem:[%s9918_s3 + $0x408] sm:$0xff] }
  0x8f   :  { %2757 = vmatpush.bf16.msrb.mxu1 %v6920_v15  ;;  %2771 = vmatpush.bf16.msrb.mxu2 %v6927_v16  ;;  %v672_v53 = vld [vmem:[#allocation1 + $0x12] sm:$0xff]  ;;  %v671_v58 = vld [vmem:[#allocation1 + $0x9] sm:$0xff] }
  0x90   :  { %v6947_v15 = vld [vmem:[%s9918_s3 + $0x550] sm:$0xff]  ;;  %v6954_v16 = vld [vmem:[%s9918_s3 + $0x588] sm:$0xff] }
  0x92   :  { %2592 = vmatpush.bf16.msra.mxu0 %v6812_v20  ;;  %v6919_v20 = vld [vmem:[%s9918_s3 + $0x470] sm:$0xff] }
  0x93   :  { %2758 = vmatpush.bf16.msrb.mxu1 %v6919_v20  ;;  %2772 = vmatpush.bf16.msrb.mxu2 %v6926_v21  ;;  %v6953_v20 = vld [vmem:[%s9918_s3 + $0x580] sm:$0xff] }
  0x94   :  { %v6905_v21 = vld [vmem:[%s9918_s3 + $0x400] sm:$0xff] }
  0x96   :  { %2593 = vmatpush.bf16.msra.mxu0 %v6811_v24  ;;  %v6878_v24 = vld [vmem:[%s9918_s3 + $0x328] sm:$0xff] }
  0x97   :  { %2759 = vmatpush.bf16.msrb.mxu1 %v6918_v25  ;;  %2773 = vmatpush.bf16.msrb.mxu2 %v6925_v26  ;;  %v42_v25 = vld [vmem:[%s9919_s0 + $0x18] sm:$0xff]  ;;  %v670_v26 = vld [vmem:[#allocation1] sm:$0xff] }
  0x9a   :  { %2594 = vmatpush.bf16.msra.mxu0 %v6810_v28 }
  0x9b   :  { %2760 = vmatpush.bf16.msrb.mxu1 %v6917_v30  ;;  %2774 = vmatpush.bf16.msrb.mxu2 %v6924_v32  ;;  %v8040_v30 = vld [vmem:[#allocation1 + $0x24] sm:$0xff]  ;;  %v6984_v32 = vld [vmem:[%s9918_s3 + $0x678] sm:$0xff] }
  0x9e   :  { %2595 = vmatpush.bf16.msra.mxu0 %v6809_v33  ;;  %v7774_v54 = vpop.f32.mrf.mxu0  ;;  %v6932_v33 = vld [vmem:[%s9918_s3 + $0x4d8] sm:$0xff] }
  0x9f   :  { %v2546_v28 = vadd.f32 %v7296_v23, %v7774_v54  ;;  %2761 = vmatpush.bf16.msrb.mxu1 %v6916_v36  ;;  %2775 = vmatpush.bf16.msrb.mxu2 %v6923_v37  ;;  %v673_v54 = vld [vmem:[#allocation1 + $0x1b] sm:$0xff]  ;;  %v6999_v36 = vld [vmem:[%s9918_s3 + $0x6f0] sm:$0xff] }
  0xa0   :  { %v6944_v23 = vld [vmem:[%s9918_s3 + $0x538] sm:$0xff]  ;;  %v6983_v37 = vld [vmem:[%s9918_s3 + $0x670] sm:$0xff] }
  0xa1   :  { %2596 = vmatmul.bf16.vlgmr.msra.gmra.mxu0 %v7639_v5  ;;  %v6897_v5 = vld [vmem:[%s9918_s3 + $0x3c0] sm:$0xff] }
  0xa2   :  { %2640 = vmatpush.bf16.msrb.mxu0 %v6848_v35  ;;  %2738 = vmatpush.bf16.msra.mxu3 %v6897_v5  ;;  %v6876_v35 = vld [vmem:[%s9918_s3 + $0x318] sm:$0xff]  ;;  %v6949_v5 = vld [vmem:[%s9918_s3 + $0x560] sm:$0xff] }
  0xa3   :  { %2762 = vmatpush.bf16.msrb.mxu1 %v6915_v40  ;;  %v6998_v40 = vld [vmem:[%s9918_s3 + $0x6e8] sm:$0xff] }
  0xa5   :  { %2739 = vmatmul.bf16.vlgmr.msra.gmra.mxu3 %v667_v14 }
  0xa6   :  { %2641 = vmatpush.bf16.msrb.mxu0 %v6847_v42  ;;  %v2547_v63 = vpop.f32.mrf.mxu0  ;;  %2783 = vmatpush.bf16.msrb.mxu3 %v6936_v7  ;;  %v6922_v42 = vld [vmem:[%s9918_s3 + $0x488] sm:$0xff] }
  0xa7   :  { %2776 = vmatpush.bf16.msrb.mxu2 %v6922_v42  ;;  %2763 = vmatpush.bf16.msrb.mxu1 %v6914_v45  ;;  %v6966_v63 = vld [vmem:[%s9918_s3 + $0x5e8] sm:$0xff]  ;;  %v6941_v42 = vld [vmem:[%s9918_s3 + $0x520] sm:$0xff] }
  0xa9   :  { %v8078_v45 = vpop.f32.mrf.mxu1 }
  0xaa   :  { %2642 = vmatpush.bf16.msrb.mxu0 %v6846_v47  ;;  %2784 = vmatpush.bf16.msrb.mxu3 %v6935_v18  ;;  %v6929_v47 = vld [vmem:[%s9918_s3 + $0x4c0] sm:$0xff]  ;;  %v6962_v18 = vld [vmem:[%s9918_s3 + $0x5c8] sm:$0xff] }
  0xab   :  { %2777 = vmatpush.bf16.msrb.mxu2 %v6921_v46  ;;  %2764 = vmatpush.bf16.msrb.mxu1 %v6913_v52  ;;  %v6996_v52 = vld [vmem:[%s9918_s3 + $0x6d8] sm:$0xff] }
  0xae   :  { %2643 = vmatpush.bf16.msrb.mxu0 %v6845_v51  ;;  %2785 = vmatpush.bf16.msrb.mxu3 %v6934_v22  ;;  %v6968_v51 = vld [vmem:[%s9918_s3 + $0x5f8] sm:$0xff] }
  0xaf   :  { %2822 = vmatpush.bf16.msra.mxu2 %v6960_v49  ;;  %2809 = vmatpush.bf16.msra.mxu1 %v6952_v55  ;;  %v6992_v22 = vld [vmem:[%s9918_s3 + $0x6b8] sm:$0xff]  ;;  %v6939_v55 = vld [vmem:[%s9918_s3 + $0x510] sm:$0xff] }
  0xb0   :  { %2778 = vmatmul.bf16.vlgmr.msrb.gmra.mxu2 %v672_v53  ;;  %2765 = vmatmul.bf16.vlgmr.msrb.gmra.mxu1 %v671_v58  ;;  %v6940_v49 = vld [vmem:[%s9918_s3 + $0x518] sm:$0xff]  ;;  %v8097_v53 = vpop.f32.mrf.mxu3 }
  0xb1   :  { %v2612_v58 = vpop.f32.mrf.mxu1 }
  0xb2   :  { %2644 = vmatpush.bf16.msrb.mxu0 %v6844_v56  ;;  %2786 = vmatpush.bf16.msrb.mxu3 %v6933_v27  ;;  %v6959_v56 = vld [vmem:[%s9918_s3 + $0x5b0] sm:$0xff]  ;;  %v7000_v27 = vld [vmem:[%s9918_s3 + $0x6f8] sm:$0xff] }
  0xb3   :  { %2823 = vmatpush.bf16.msra.mxu2 %v6959_v56  ;;  %v6987_v56 = vld [vmem:[%s9918_s3 + $0x690] sm:$0xff] }
  0xb6   :  { %2645 = vmatpush.bf16.msrb.mxu0 %v6843_v60  ;;  %2787 = vmatpush.bf16.msrb.mxu3 %v6932_v33  ;;  %v6951_v60 = vld [vmem:[%s9918_s3 + $0x570] sm:$0xff] }
  0xb7   :  { %2810 = vmatpush.bf16.msra.mxu1 %v6951_v60  ;;  %2824 = vmatpush.bf16.msra.mxu2 %v6958_v61  ;;  %v675_v33 = vld [vmem:[#allocation1 + $0x2d] sm:$0xff] }
  0xb8   :  { %v6979_v60 = vld [vmem:[%s9918_s3 + $0x650] sm:$0xff]  ;;  %v6938_v61 = vld [vmem:[%s9918_s3 + $0x508] sm:$0xff] }
  0xba   :  { %2646 = vmatpush.bf16.msrb.mxu0 %v6842_v1  ;;  %2788 = vmatpush.bf16.msrb.mxu3 %v6931_v38  ;;  %v6957_v1 = vld [vmem:[%s9918_s3 + $0x5a0] sm:$0xff]  ;;  %v6942_v38 = vld [vmem:[%s9918_s3 + $0x528] sm:$0xff] }
  0xbb   :  { %2811 = vmatpush.bf16.msra.mxu1 %v6950_v0  ;;  %2825 = vmatpush.bf16.msra.mxu2 %v6957_v1  ;;  %v2638_v1 = vpop.f32.mrf.mxu3 }
  0xbc   :  { %v7055_v1 = vld [vmem:[%s9918_s3 + $0x8b0] sm:$0xff] }
  0xbe   :  { %2647 = vmatpush.bf16.msrb.mxu0 %v6841_v6  ;;  %v2558_v31 = vpop.f32.mrf.mxu0  ;;  %2789 = vmatpush.bf16.msrb.mxu3 %v6930_v43  ;;  %v6956_v6 = vld [vmem:[%s9918_s3 + $0x598] sm:$0xff]  ;;  %v6989_v43 = vld [vmem:[%s9918_s3 + $0x6a0] sm:$0xff] }
  0xbf   :  { %v7884_v34 = vadd.f32 %v2558_v31, %v2546_v28  ;;  %2812 = vmatpush.bf16.msra.mxu1 %v6949_v5  ;;  %2826 = vmatpush.bf16.msra.mxu2 %v6956_v6  ;;  %v676_v28 = vld [vmem:[#allocation1 + $0x36] sm:$0xff]  ;;  %v677_v31 = vld [vmem:[#allocation1 + $0x3f] sm:$0xff] }
  0xc0   :  { %679 = vst [vmem:[#allocation1] ss:$9 sm:$0xff] %v42_v25  ;;  %v6976_v5 = vld [vmem:[%s9918_s3 + $0x638] sm:$0xff]  ;;  %v7029_v25 = vld [vmem:[%s9918_s3 + $0x7e0] sm:$0xff] }
  0xc1   :  { %2648 = vmatmul.bf16.vlgmr.msrb.gmra.mxu0 %v660_v10  ;;  %v6948_v10 = vld [vmem:[%s9918_s3 + $0x558] sm:$0xff] }
  0xc2   :  { %2692 = vmatpush.bf16.msra.mxu0 %v6880_v9  ;;  %2790 = vmatpush.bf16.msrb.mxu3 %v6929_v47  ;;  %v6964_v9 = vld [vmem:[%s9918_s3 + $0x5d8] sm:$0xff]  ;;  %v6981_v47 = vld [vmem:[%s9918_s3 + $0x660] sm:$0xff] }
  0xc3   :  { %2813 = vmatpush.bf16.msra.mxu1 %v6948_v10  ;;  %2827 = vmatpush.bf16.msra.mxu2 %v6955_v11  ;;  %v7024_v6 = vld [vmem:[%s9918_s3 + $0x7b8] sm:$0xff]  ;;  %v6977_v10 = vld [vmem:[%s9918_s3 + $0x640] sm:$0xff]  ;;  %v6975_v11 = vld [vmem:[%s9918_s3 + $0x630] sm:$0xff] }
  0xc5   :  { %2791 = vmatmul.bf16.vlgmr.msrb.gmra.mxu3 %v673_v54  ;;  %v6980_v54 = vld [vmem:[%s9918_s3 + $0x658] sm:$0xff] }
  0xc6   :  { %2693 = vmatpush.bf16.msra.mxu0 %v6879_v19  ;;  %v2560_v41 = vpop.f32.mrf.mxu0  ;;  %2835 = vmatpush.bf16.msra.mxu3 %v6968_v51  ;;  %v6946_v19 = vld [vmem:[%s9918_s3 + $0x548] sm:$0xff]  ;;  %v8092_v51 = vpop.f32.mrf.mxu2 }
  0xc7   :  { %2814 = vmatpush.bf16.msra.mxu1 %v6947_v15  ;;  %2828 = vmatpush.bf16.msra.mxu2 %v6954_v16  ;;  %v6982_v41 = vld [vmem:[%s9918_s3 + $0x668] sm:$0xff]  ;;  %v7031_v16 = vld [vmem:[%s9918_s3 + $0x7f0] sm:$0xff] }
  0xc8   :  { %v681_v15 = vld [vmem:[#allocation1 + $0x9] sm:$0xff] }
  0xc9   :  { %v8253_v58 = vld [vmem:[#allocation1 + $0x24] sm:$0xff] }
  0xca   :  { %2694 = vmatpush.bf16.msra.mxu0 %v6878_v24  ;;  %2836 = vmatpush.bf16.msra.mxu3 %v6967_v59  ;;  %v6961_v24 = vld [vmem:[%s9918_s3 + $0x5c0] sm:$0xff] }
  0xcb   :  { %2815 = vmatpush.bf16.msra.mxu1 %v6946_v19  ;;  %2829 = vmatpush.bf16.msra.mxu2 %v6953_v20  ;;  %v7022_v19 = vld [vmem:[%s9918_s3 + $0x7a8] sm:$0xff] }
  0xcc   :  { %v7030_v20 = vld [vmem:[%s9918_s3 + $0x7e8] sm:$0xff] }
  0xce   :  { %2695 = vmatpush.bf16.msra.mxu0 %v6877_v29  ;;  %2837 = vmatpush.bf16.msra.mxu3 %v6966_v63  ;;  %v6945_v29 = vld [vmem:[%s9918_s3 + $0x540] sm:$0xff]  ;;  %v6994_v63 = vld [vmem:[%s9918_s3 + $0x6c8] sm:$0xff]  ;;  %v2625_v0 = vpop.f32.mrf.mxu2 }
  0xcf   :  { %2874 = vmatpush.bf16.msrb.mxu2 %v6992_v22  ;;  %2816 = vmatpush.bf16.msra.mxu1 %v6945_v29  ;;  %v7014_v22 = vld [vmem:[%s9918_s3 + $0x768] sm:$0xff]  ;;  %v7013_v29 = vld [vmem:[%s9918_s3 + $0x760] sm:$0xff]  ;;  %v7048_v0 = vld [vmem:[%s9918_s3 + $0x878] sm:$0xff] }
  0xd0   :  { %2830 = vmatmul.bf16.vlgmr.msra.gmra.mxu2 %v676_v28 }
  0xd2   :  { %2696 = vmatpush.bf16.msra.mxu0 %v6876_v35  ;;  %2838 = vmatpush.bf16.msra.mxu3 %v6965_v3  ;;  %v6991_v35 = vld [vmem:[%s9918_s3 + $0x6b0] sm:$0xff]  ;;  %v6937_v3 = vld [vmem:[%s9918_s3 + $0x500] sm:$0xff] }
  0xd3   :  { %2861 = vmatpush.bf16.msrb.mxu1 %v6984_v32  ;;  %2875 = vmatpush.bf16.msrb.mxu2 %v6991_v35  ;;  %v6971_v35 = vld [vmem:[%s9918_s3 + $0x610] sm:$0xff] }
  0xd4   :  { %2817 = vmatmul.bf16.vlgmr.msra.gmra.mxu1 %v675_v33  ;;  %v7028_v33 = vld [vmem:[%s9918_s3 + $0x7d8] sm:$0xff] }
  0xd6   :  { %2697 = vmatpush.bf16.msra.mxu0 %v6875_v39  ;;  %2839 = vmatpush.bf16.msra.mxu3 %v6964_v9  ;;  %v6990_v39 = vld [vmem:[%s9918_s3 + $0x6a8] sm:$0xff]  ;;  %v7032_v9 = vld [vmem:[%s9918_s3 + $0x7f8] sm:$0xff] }
  0xd7   :  { %2862 = vmatpush.bf16.msrb.mxu1 %v6983_v37  ;;  %2876 = vmatpush.bf16.msrb.mxu2 %v6990_v39  ;;  %v7012_v37 = vld [vmem:[%s9918_s3 + $0x758] sm:$0xff] }
  0xda   :  { %2698 = vmatpush.bf16.msra.mxu0 %v6874_v44  ;;  %v6997_v44 = vld [vmem:[%s9918_s3 + $0x6e0] sm:$0xff] }
  0xdb   :  { %2863 = vmatpush.bf16.msrb.mxu1 %v6982_v41  ;;  %2877 = vmatpush.bf16.msrb.mxu2 %v6989_v43  ;;  %v7027_v41 = vld [vmem:[%s9918_s3 + $0x7d0] sm:$0xff] }
  0xdd   :  { %v8197_v32 = vpop.f32.mrf.mxu2 }
  0xde   :  { %2699 = vmatpush.bf16.msra.mxu0 %v6873_v48  ;;  %v2571_v4 = vpop.f32.mrf.mxu0 }
  0xdf   :  { %v7981_v7 = vadd.f32 %v2571_v4, %v7884_v34  ;;  %v6943_v34 = vld [vmem:[%s9918_s3 + $0x530] sm:$0xff]  ;;  %2864 = vmatpush.bf16.msrb.mxu1 %v6981_v47  ;;  %v6985_v4 = vld [vmem:[%s9918_s3 + $0x680] sm:$0xff]  ;;  %v7026_v47 = vld [vmem:[%s9918_s3 + $0x7c8] sm:$0xff] }
  0xe1   :  { %2700 = vmatmul.bf16.vlgmr.msra.gmra.mxu0 %v7833_v13  ;;  %v6963_v13 = vld [vmem:[%s9918_s3 + $0x5d0] sm:$0xff] }
  0xe2   :  { %2744 = vmatpush.bf16.msrb.mxu0 %v6912_v50  ;;  %2840 = vmatpush.bf16.msra.mxu3 %v6963_v13  ;;  %v6988_v50 = vld [vmem:[%s9918_s3 + $0x698] sm:$0xff] }
  0xe3   :  { %2878 = vmatpush.bf16.msrb.mxu2 %v6988_v50  ;;  %2865 = vmatpush.bf16.msrb.mxu1 %v6980_v54  ;;  %v7016_v13 = vld [vmem:[%s9918_s3 + $0x778] sm:$0xff]  ;;  %v7017_v54 = vld [vmem:[%s9918_s3 + $0x780] sm:$0xff] }
  0xe4   :  { %v7008_v50 = vld [vmem:[%s9918_s3 + $0x738] sm:$0xff] }
  0xe6   :  { %2745 = vmatpush.bf16.msrb.mxu0 %v6911_v57  ;;  %v2573_v14 = vpop.f32.mrf.mxu0  ;;  %2841 = vmatpush.bf16.msra.mxu3 %v6962_v18  ;;  %v6995_v57 = vld [vmem:[%s9918_s3 + $0x6d0] sm:$0xff] }
  0xe7   :  { %2879 = vmatpush.bf16.msrb.mxu2 %v6987_v56  ;;  %2866 = vmatpush.bf16.msrb.mxu1 %v6979_v60  ;;  %v7023_v14 = vld [vmem:[%s9918_s3 + $0x7b0] sm:$0xff]  ;;  %v8188_v28 = vpop.f32.mrf.mxu1  ;;  %v7025_v56 = vld [vmem:[%s9918_s3 + $0x7c0] sm:$0xff] }
  0xe8   :  { %v7015_v18 = vld [vmem:[%s9918_s3 + $0x770] sm:$0xff] }
  0xe9   :  { %v685_v60 = vld [vmem:[#allocation1 + $0x2d] sm:$0xff] }
  0xea   :  { %2746 = vmatpush.bf16.msrb.mxu0 %v6910_v62  ;;  %2842 = vmatpush.bf16.msra.mxu3 %v6961_v24  ;;  %v6986_v62 = vld [vmem:[%s9918_s3 + $0x688] sm:$0xff] }
  0xeb   :  { %2880 = vmatpush.bf16.msrb.mxu2 %v6986_v62  ;;  %v7064_v62 = vld [vmem:[%s9918_s3 + $0x8f8] sm:$0xff] }
  0xed   :  { %2843 = vmatmul.bf16.vlgmr.msra.gmra.mxu3 %v677_v31 }
  0xee   :  { %2747 = vmatpush.bf16.msrb.mxu0 %v6909_v2  ;;  %2887 = vmatpush.bf16.msrb.mxu3 %v7000_v27  ;;  %v6978_v2 = vld [vmem:[%s9918_s3 + $0x648] sm:$0xff]  ;;  %v6972_v27 = vld [vmem:[%s9918_s3 + $0x618] sm:$0xff] }
  0xef   :  { %2867 = vmatpush.bf16.msrb.mxu1 %v6978_v2  ;;  %2881 = vmatpush.bf16.msrb.mxu2 %v6985_v4  ;;  %v2664_v43 = vpop.f32.mrf.mxu1  ;;  %v7006_v2 = vld [vmem:[%s9918_s3 + $0x728] sm:$0xff]  ;;  %v7047_v4 = vld [vmem:[%s9918_s3 + $0x870] sm:$0xff] }
  0xf0   :  { %v7038_v43 = vld [vmem:[%s9918_s3 + $0x828] sm:$0xff] }
  0xf2   :  { %2748 = vmatpush.bf16.msrb.mxu0 %v6908_v8  ;;  %2888 = vmatpush.bf16.msrb.mxu3 %v6999_v36  ;;  %v682_v8 = vld [vmem:[#allocation1 + $0x12] sm:$0xff]  ;;  %v8206_v36 = vpop.f32.mrf.mxu3 }
  0xf3   :  { %2926 = vmatpush.bf16.msra.mxu2 %v7024_v6  ;;  %2868 = vmatpush.bf16.msrb.mxu1 %v6977_v10  ;;  %v7005_v6 = vld [vmem:[%s9918_s3 + $0x720] sm:$0xff] }
  0xf4   :  { %2882 = vmatmul.bf16.vlgmr.msrb.gmra.mxu2 %v682_v8  ;;  %v7046_v8 = vld [vmem:[%s9918_s3 + $0x868] sm:$0xff]  ;;  %v7053_v10 = vld [vmem:[%s9918_s3 + $0x8a0] sm:$0xff] }
  0xf6   :  { %2749 = vmatpush.bf16.msrb.mxu0 %v6907_v12  ;;  %2889 = vmatpush.bf16.msrb.mxu3 %v6998_v40  ;;  %v683_v12 = vld [vmem:[#allocation1 + $0x1b] sm:$0xff] }
  0xf7   :  { %2913 = vmatpush.bf16.msra.mxu1 %v7016_v13  ;;  %2927 = vmatpush.bf16.msra.mxu2 %v7023_v14  ;;  %v7061_v13 = vld [vmem:[%s9918_s3 + $0x8e0] sm:$0xff] }
  0xf8   :  { %2869 = vmatmul.bf16.vlgmr.msrb.gmra.mxu1 %v681_v15 }
  0xfa   :  { %2750 = vmatpush.bf16.msrb.mxu0 %v6906_v17  ;;  %2890 = vmatpush.bf16.msrb.mxu3 %v6997_v44  ;;  %v6974_v17 = vld [vmem:[%s9918_s3 + $0x628] sm:$0xff]  ;;  %v7011_v44 = vld [vmem:[%s9918_s3 + $0x750] sm:$0xff] }
  0xfb   :  { %2914 = vmatpush.bf16.msra.mxu1 %v7015_v18  ;;  %2928 = vmatpush.bf16.msra.mxu2 %v7022_v19 }
  0xfe   :  { %2751 = vmatpush.bf16.msrb.mxu0 %v6905_v21  ;;  %v2584_v46 = vpop.f32.mrf.mxu0  ;;  %2891 = vmatpush.bf16.msrb.mxu3 %v6996_v52  ;;  %v6973_v21 = vld [vmem:[%s9918_s3 + $0x620] sm:$0xff] }
  0xff   :  { %v8084_v48 = vadd.f32 %v2584_v46, %v7981_v7  ;;  %v6993_v7 = vld [vmem:[%s9918_s3 + $0x6c0] sm:$0xff]  ;;  %2915 = vmatpush.bf16.msra.mxu1 %v7014_v22  ;;  %v2677_v46 = vpop.f32.mrf.mxu2  ;;  %v7060_v22 = vld [vmem:[%s9918_s3 + $0x8d8] sm:$0xff] }
 0x100   :  { %v43_v52 = vld [vmem:[%s9919_s0 + $0x20] sm:$0x3f]  ;;  %v7076_v46 = vld [vmem:[%s9918_s3 + $0x958] sm:$0xff] }
 0x101   :  { %2752 = vmatmul.bf16.vlgmr.msrb.gmra.mxu0 %v670_v26 }
 0x102   :  { %2796 = vmatpush.bf16.msra.mxu0 %v6944_v23  ;;  %2892 = vmatpush.bf16.msrb.mxu3 %v6995_v57  ;;  %v7021_v23 = vld [vmem:[%s9918_s3 + $0x7a0] sm:$0xff]  ;;  %v686_v57 = vld [vmem:[#allocation1 + $0x36] sm:$0xff] }
 0x103   :  { %2929 = vmatpush.bf16.msra.mxu2 %v7021_v23  ;;  %2916 = vmatpush.bf16.msra.mxu1 %v7013_v29 }
 0x106   :  { %2797 = vmatpush.bf16.msra.mxu0 %v6943_v34  ;;  %v2586_v59 = vpop.f32.mrf.mxu0  ;;  %2893 = vmatpush.bf16.msrb.mxu3 %v6994_v63  ;;  %v7009_v63 = vld [vmem:[%s9918_s3 + $0x740] sm:$0xff] }
 0x107   :  { %2917 = vmatpush.bf16.msra.mxu1 %v7012_v37  ;;  %v687_v59 = vld [vmem:[#allocation1 + $0x3f] sm:$0xff]  ;;  %v7042_v37 = vld [vmem:[%s9918_s3 + $0x848] sm:$0xff] }
 0x108   :  { %v8310_v18 = vpop.f32.mrf.mxu2 }
 0x10a   :  { %2798 = vmatpush.bf16.msra.mxu0 %v6942_v38  ;;  %2894 = vmatpush.bf16.msrb.mxu3 %v6993_v7  ;;  %v7019_v38 = vld [vmem:[%s9918_s3 + $0x790] sm:$0xff]  ;;  %v7062_v7 = vld [vmem:[%s9918_s3 + $0x8e8] sm:$0xff] }
 0x10b   :  { %2918 = vmatpush.bf16.msra.mxu1 %v7011_v44  ;;  %v8301_v14 = vpop.f32.mrf.mxu1 }
 0x10d   :  { %2895 = vmatmul.bf16.vlgmr.msrb.gmra.mxu3 %v683_v12  ;;  %v7004_v12 = vld [vmem:[%s9918_s3 + $0x718] sm:$0xff] }
 0x10e   :  { %2799 = vmatpush.bf16.msra.mxu0 %v6941_v42  ;;  %2939 = vmatpush.bf16.msra.mxu3 %v7032_v9  ;;  %v6970_v42 = vld [vmem:[%s9918_s3 + $0x608] sm:$0xff] }
 0x112   :  { %2800 = vmatpush.bf16.msra.mxu0 %v6940_v49  ;;  %2940 = vmatpush.bf16.msra.mxu3 %v7031_v16  ;;  %v2690_v49 = vpop.f32.mrf.mxu3  ;;  %v7045_v16 = vld [vmem:[%s9918_s3 + $0x860] sm:$0xff] }
 0x113   :  { %v2716_v29 = vpop.f32.mrf.mxu1 }
 0x116   :  { %2801 = vmatpush.bf16.msra.mxu0 %v6939_v55  ;;  %2941 = vmatpush.bf16.msra.mxu3 %v7030_v20  ;;  %v7056_v55 = vld [vmem:[%s9918_s3 + $0x8b8] sm:$0xff]  ;;  %v7003_v20 = vld [vmem:[%s9918_s3 + $0x710] sm:$0xff] }
 0x11a   :  { %2802 = vmatpush.bf16.msra.mxu0 %v6938_v61  ;;  %2942 = vmatpush.bf16.msra.mxu3 %v7029_v25  ;;  %v7007_v61 = vld [vmem:[%s9918_s3 + $0x730] sm:$0xff] }
 0x11e   :  { %2803 = vmatpush.bf16.msra.mxu0 %v6937_v3  ;;  %v2597_v24 = vpop.f32.mrf.mxu0  ;;  %2943 = vmatpush.bf16.msra.mxu3 %v7028_v33  ;;  %v7063_v3 = vld [vmem:[%s9918_s3 + $0x8f0] sm:$0xff]  ;;  %v7001_v33 = vld [vmem:[%s9918_s3 + $0x700] sm:$0xff] }
 0x11f   :  { %v2598_v26 = vadd.f32 %v2597_v24, %v8084_v48  ;;  %v6969_v48 = vld [vmem:[%s9918_s3 + $0x600] sm:$0xff]  ;;  %v7044_v24 = vld [vmem:[%s9918_s3 + $0x858] sm:$0xff] }
 0x121   :  { %2804 = vmatmul.bf16.vlgmr.msra.gmra.mxu0 %v8040_v30  ;;  %v7020_v30 = vld [vmem:[%s9918_s3 + $0x798] sm:$0xff]  ;;  %v2611_v31 = vadd.f32 %v8078_v45, %v2598_v26  ;;  %v7018_v45 = vld [vmem:[%s9918_s3 + $0x788] sm:$0xff]  ;;  %v7051_v26 = vld [vmem:[%s9918_s3 + $0x890] sm:$0xff] }
 0x122   :  { %2848 = vmatpush.bf16.msrb.mxu0 %v6976_v5  ;;  %2930 = vmatpush.bf16.msra.mxu2 %v7020_v30  ;;  %v7054_v5 = vld [vmem:[%s9918_s3 + $0x8a8] sm:$0xff]  ;;  %v7043_v30 = vld [vmem:[%s9918_s3 + $0x850] sm:$0xff] }
 0x123   :  { %v2624_v34 = vadd.f32 %v8092_v51, %v2611_v31  ;;  %2944 = vmatpush.bf16.msra.mxu3 %v7027_v41  ;;  %v7010_v51 = vld [vmem:[%s9918_s3 + $0x748] sm:$0xff]  ;;  %v7041_v41 = vld [vmem:[%s9918_s3 + $0x840] sm:$0xff] }
 0x124   :  { %2919 = vmatpush.bf16.msra.mxu1 %v7010_v51  ;;  %v7050_v31 = vld [vmem:[%s9918_s3 + $0x888] sm:$0xff]  ;;  %v7036_v51 = vld [vmem:[%s9918_s3 + $0x818] sm:$0xff] }
 0x125   :  { %v8215_v39 = vadd.f32 %v8097_v53, %v2624_v34  ;;  %v680_v53 = vld [vmem:[#allocation1] sm:$0xff] }
 0x126   :  { %2849 = vmatpush.bf16.msrb.mxu0 %v6975_v11  ;;  %v2599_v40 = vpop.f32.mrf.mxu0  ;;  %2931 = vmatpush.bf16.msra.mxu2 %v7019_v38  ;;  %689 = vst [vmem:[#allocation1] ss:$9 sm:$0xff] %v43_v52  ;;  %v7049_v38 = vld [vmem:[%s9918_s3 + $0x880] sm:$0xff] }
 0x127   :  { %2945 = vmatpush.bf16.msra.mxu3 %v7026_v47  ;;  %v7057_v40 = vld [vmem:[%s9918_s3 + $0x8c0] sm:$0xff] }
 0x128   :  { %2920 = vmatpush.bf16.msra.mxu1 %v7009_v63  ;;  %v7037_v47 = vld [vmem:[%s9918_s3 + $0x820] sm:$0xff] }
 0x12a   :  { %2850 = vmatpush.bf16.msrb.mxu0 %v6974_v17  ;;  %2932 = vmatpush.bf16.msra.mxu2 %v7018_v45  ;;  %v7052_v17 = vld [vmem:[%s9918_s3 + $0x898] sm:$0xff] }
 0x12b   :  { %2946 = vmatpush.bf16.msra.mxu3 %v7025_v56  ;;  %2921 = vmatmul.bf16.vlgmr.msra.gmra.mxu1 %v685_v60  ;;  %v7035_v56 = vld [vmem:[%s9918_s3 + $0x810] sm:$0xff] }
 0x12c   :  { %2965 = vmatpush.bf16.msrb.mxu1 %v7048_v0 }
 0x12d   :  { %v693_v44 = vld [vmem:[#allocation1 + $0x1b] sm:$0xff]  ;;  %v691_v45 = vld [vmem:[#allocation1 + $0x9] sm:$0xff]  ;;  %v2766_v52 = vpop.f32.mrf.mxu1 }
 0x12e   :  { %2851 = vmatpush.bf16.msrb.mxu0 %v6973_v21  ;;  %2933 = vmatpush.bf16.msra.mxu2 %v7017_v54  ;;  %v8316_v21 = vpop.f32.mrf.mxu3  ;;  %v695_v63 = vld [vmem:[#allocation1 + $0x2d] sm:$0xff] }
 0x12f   :  { %2991 = vmatpush.bf16.msrb.mxu3 %v7064_v62  ;;  %v7034_v62 = vld [vmem:[%s9918_s3 + $0x808] sm:$0xff] }
 0x130   :  { %2947 = vmatmul.bf16.vlgmr.msra.gmra.mxu3 %v687_v59  ;;  %2966 = vmatpush.bf16.msrb.mxu1 %v7047_v4  ;;  %v7073_v59 = vld [vmem:[%s9918_s3 + $0x940] sm:$0xff] }
 0x131   :  { %2934 = vmatmul.bf16.vlgmr.msra.gmra.mxu2 %v686_v57 }
 0x132   :  { %2852 = vmatpush.bf16.msrb.mxu0 %v6972_v27  ;;  %2978 = vmatpush.bf16.msrb.mxu2 %v7056_v55  ;;  %v7002_v27 = vld [vmem:[%s9918_s3 + $0x708] sm:$0xff] }
 0x133   :  { %2992 = vmatpush.bf16.msrb.mxu3 %v7063_v3  ;;  %v7072_v3 = vld [vmem:[%s9918_s3 + $0x938] sm:$0xff] }
 0x134   :  { %2967 = vmatpush.bf16.msrb.mxu1 %v7046_v8  ;;  %v7069_v8 = vld [vmem:[%s9918_s3 + $0x920] sm:$0xff] }
 0x135   :  { %v2768_v0 = vpop.f32.mrf.mxu1 }
 0x136   :  { %2853 = vmatpush.bf16.msrb.mxu0 %v6971_v35  ;;  %2979 = vmatpush.bf16.msrb.mxu2 %v7055_v1  ;;  %v2742_v34 = vpop.f32.mrf.mxu3  ;;  %v7040_v35 = vld [vmem:[%s9918_s3 + $0x838] sm:$0xff]  ;;  %v7033_v1 = vld [vmem:[%s9918_s3 + $0x800] sm:$0xff] }
 0x137   :  { %2993 = vmatpush.bf16.msrb.mxu3 %v7062_v7  ;;  %v7070_v7 = vld [vmem:[%s9918_s3 + $0x928] sm:$0xff] }
 0x138   :  { %2968 = vmatpush.bf16.msrb.mxu1 %v7045_v16 }
 0x13a   :  { %2854 = vmatpush.bf16.msrb.mxu0 %v6970_v42  ;;  %2980 = vmatpush.bf16.msrb.mxu2 %v7054_v5  ;;  %v692_v42 = vld [vmem:[#allocation1 + $0x12] sm:$0xff]  ;;  %v690_v5 = vld [vmem:[#allocation1] sm:$0xff] }
 0x13b   :  { %2994 = vmatpush.bf16.msrb.mxu3 %v7061_v13 }
 0x13c   :  { %2969 = vmatpush.bf16.msrb.mxu1 %v7044_v24 }
 0x13e   :  { %2855 = vmatpush.bf16.msrb.mxu0 %v6969_v48  ;;  %v2649_v9 = vpop.f32.mrf.mxu0  ;;  %2981 = vmatpush.bf16.msrb.mxu2 %v7053_v10  ;;  %v7075_v48 = vld [vmem:[%s9918_s3 + $0x950] sm:$0xff] }
 0x13f   :  { %v2650_v11 = vadd.f32 %v2649_v9, %v8215_v39  ;;  %2995 = vmatpush.bf16.msrb.mxu3 %v7060_v22  ;;  %v7039_v39 = vld [vmem:[%s9918_s3 + $0x830] sm:$0xff]  ;;  %v7065_v22 = vld [vmem:[%s9918_s3 + $0x900] sm:$0xff] }
 0x140   :  { %2970 = vmatpush.bf16.msrb.mxu1 %v7043_v30 }
 0x141   :  { %2856 = vmatmul.bf16.vlgmr.msrb.gmra.mxu0 %v680_v53  ;;  %v2663_v15 = vadd.f32 %v8188_v28, %v2650_v11  ;;  %v7059_v28 = vld [vmem:[%s9918_s3 + $0x8d0] sm:$0xff]  ;;  %v7074_v53 = vld [vmem:[%s9918_s3 + $0x948] sm:$0xff]  ;;  %v7068_v11 = vld [vmem:[%s9918_s3 + $0x918] sm:$0xff] }
 0x142   :  { %2900 = vmatpush.bf16.msra.mxu0 %v7008_v50  ;;  %2982 = vmatpush.bf16.msrb.mxu2 %v7052_v17 }
 0x143   :  { %v2676_v19 = vadd.f32 %v8197_v32, %v2663_v15  ;;  %v2729_v32 = vpop.f32.mrf.mxu2  ;;  %2996 = vmatpush.bf16.msrb.mxu3 %v7059_v28  ;;  %v7067_v15 = vld [vmem:[%s9918_s3 + $0x910] sm:$0xff] }
 0x144   :  { %2971 = vmatpush.bf16.msrb.mxu1 %v7042_v37 }
 0x145   :  { %v2689_v23 = vadd.f32 %v8206_v36, %v2676_v19  ;;  %v7058_v36 = vld [vmem:[%s9918_s3 + $0x8c8] sm:$0xff] }
 0x146   :  { %2901 = vmatpush.bf16.msra.mxu0 %v7007_v61  ;;  %v2651_v25 = vpop.f32.mrf.mxu0  ;;  %2983 = vmatpush.bf16.msrb.mxu2 %v7051_v26 }
 0x147   :  { %2997 = vmatpush.bf16.msrb.mxu3 %v7058_v36  ;;  %v694_v25 = vld [vmem:[#allocation1 + $0x24] sm:$0xff] }
 0x148   :  { %2972 = vmatpush.bf16.msrb.mxu1 %v7041_v41 }
 0x14a   :  { %2902 = vmatpush.bf16.msra.mxu0 %v7006_v2  ;;  %2984 = vmatpush.bf16.msrb.mxu2 %v7050_v31 }
 0x14b   :  { %2998 = vmatpush.bf16.msrb.mxu3 %v7057_v40  ;;  %2973 = vmatmul.bf16.vlgmr.msrb.gmra.mxu1 %v691_v45  ;;  %v2779_v57 = vpop.f32.mrf.mxu2 }
 0x14c   :  { %3021 = vmatpush.bf16.msra.mxu1 %v7076_v46 }
 0x14e   :  { %2903 = vmatpush.bf16.msra.mxu0 %v7005_v6  ;;  %2985 = vmatpush.bf16.msrb.mxu2 %v7049_v38  ;;  %v7071_v6 = vld [vmem:[%s9918_s3 + $0x930] sm:$0xff] }
 0x14f   :  { %2999 = vmatmul.bf16.vlgmr.msrb.gmra.mxu3 %v693_v44 }
 0x150   :  { %3022 = vmatpush.bf16.msra.mxu1 %v7075_v48 }
 0x151   :  { %2986 = vmatmul.bf16.vlgmr.msrb.gmra.mxu2 %v692_v42  ;;  %v2818_v13 = vpop.f32.mrf.mxu1 }
 0x152   :  { %2904 = vmatpush.bf16.msra.mxu0 %v7004_v12 }
 0x153   :  { %v2781_v2 = vpop.f32.mrf.mxu2 }
 0x154   :  { %3023 = vmatpush.bf16.msra.mxu1 %v7074_v53 }
 0x156   :  { %2905 = vmatpush.bf16.msra.mxu0 %v7003_v20  ;;  %v7066_v20 = vld [vmem:[%s9918_s3 + $0x908] sm:$0xff]  ;;  %s7379_s3 = smov 118  }
 0x158   :  { %3024 = vmatpush.bf16.msra.mxu1 %v7073_v59 }
 0x15a   :  { %2906 = vmatpush.bf16.msra.mxu0 %v7002_v27 }
 0x15b   :  { %6488 = vmatmul.msk.bf16.vlgmr.msra.gmra.mxu1 %vm2533_vm0, %v695_v63  ;;  %v2831_v16 = vpop.f32.mrf.mxu2 }
 0x15e   :  { %2907 = vmatpush.bf16.msra.mxu0 %v7001_v33  ;;  %v2701_v49 = vpop.f32.mrf.mxu0 }
 0x15f   :  { %v2702_v50 = vadd.f32 %v2701_v49, %v2689_v23 }
 0x161   :  { %2908 = vmatmul.bf16.vlgmr.msra.gmra.mxu0 %v8253_v58  ;;  %v2715_v54 = vadd.f32 %v8301_v14, %v2702_v50  ;;  %v2792_v58 = vpop.f32.mrf.mxu3 }
 0x162   :  { %2952 = vmatpush.bf16.msrb.mxu0 %v7040_v35 }
 0x163   :  { %v2728_v55 = vadd.f32 %v8310_v18, %v2715_v54  ;;  %v2833_v23 = vpop.f32.mrf.mxu2 }
 0x164   :  { %v7079_v23 = vld [vmem:[%s9922_s2 + $0x10] sm:$0xff] }
 0x165   :  { %v2741_v60 = vadd.f32 %v8316_v21, %v2728_v55  ;;  %v2820_v21 = vpop.f32.mrf.mxu1 }
 0x166   :  { %2953 = vmatpush.bf16.msrb.mxu0 %v7039_v39  ;;  %v2703_v61 = vpop.f32.mrf.mxu0  ;;  %v7382_v21 = vmov 0  }
 0x167   :  { %7105 = vset.pattern.permute.xlu0 %v7382_v21 }
 0x169   :  { %v2794_v4 = vpop.f32.mrf.mxu3 }
 0x16a   :  { %2954 = vmatpush.bf16.msrb.mxu0 %v7038_v43 }
 0x16e   :  { %2955 = vmatpush.bf16.msrb.mxu0 %v7037_v47 }
 0x171   :  { %v2844_v18 = vpop.f32.mrf.mxu3 }
 0x172   :  { %2956 = vmatpush.bf16.msrb.mxu0 %v7036_v51 }
 0x175   :  { %v2870_v29 = vpop.f32.mrf.mxu1 }
 0x176   :  { %2957 = vmatpush.bf16.msrb.mxu0 %v7035_v56 }
 0x177   :  { %v2883_v31 = vpop.f32.mrf.mxu2 }
 0x179   :  { %v2846_v24 = vpop.f32.mrf.mxu3 }
 0x17a   :  { %2958 = vmatpush.bf16.msrb.mxu0 %v7034_v62 }
 0x17d   :  { %v2872_v35 = vpop.f32.mrf.mxu1 }
 0x17e   :  { %2959 = vmatpush.bf16.msrb.mxu0 %v7033_v1  ;;  %v2753_v9 = vpop.f32.mrf.mxu0  ;;  %v7081_v35 = vld [vmem:[%s9922_s2 + $0x20] sm:$0xff] }
 0x17f   :  { %v2754_v10 = vadd.f32 %v2753_v9, %v2741_v60  ;;  %v2885_v36 = vpop.f32.mrf.mxu2 }
 0x181   :  { %2960 = vmatmul.bf16.vlgmr.msrb.gmra.mxu0 %v690_v5  ;;  %v2767_v12 = vadd.f32 %v2766_v52, %v2754_v10 }
 0x182   :  { %3004 = vmatpush.bf16.msra.mxu0 %v7072_v3 }
 0x183   :  { %v2780_v14 = vadd.f32 %v2779_v57, %v2767_v12  ;;  %v3032_v12 = vld [vmem:[%s9921_s1] sm:$0x3] }
 0x185   :  { %v2793_v17 = vadd.f32 %v2792_v58, %v2780_v14 }
 0x186   :  { %3005 = vmatpush.bf16.msra.mxu0 %v7071_v6  ;;  %v2755_v19 = vpop.f32.mrf.mxu0 }
 0x187   :  { %v7380_v19 = vmov 3  }
 0x188   :  { %7108 = vset.pattern.permute.xlu1 %v7380_v19 }
 0x18a   :  { %3006 = vmatpush.bf16.msra.mxu0 %v7070_v7 }
 0x18e   :  { %3007 = vmatpush.bf16.msra.mxu0 %v7069_v8 }
 0x190   :  { %v2896_v34 = vpop.f32.mrf.mxu3 }
 0x192   :  { %3008 = vmatpush.bf16.msra.mxu0 %v7068_v11 }
 0x196   :  { %3009 = vmatpush.bf16.msra.mxu0 %v7067_v15 }
 0x198   :  { %v2898_v37 = vpop.f32.mrf.mxu3 }
 0x19a   :  { %3010 = vmatpush.bf16.msra.mxu0 %v7066_v20  ;;  %v7381_v20 = vmov 2  }
 0x19b   :  { %7107 = vset.pattern.permute.xlu2 %v7381_v20 }
 0x19e   :  { %3011 = vmatpush.bf16.msra.mxu0 %v7065_v22  ;;  %v2805_v26 = vpop.f32.mrf.mxu0  ;;  %v7078_v22 = vld [vmem:[%s9922_s2 + $0x8] sm:$0xff] }
 0x19f   :  { %v2806_v27 = vadd.f32 %v2805_v26, %v2793_v17  ;;  %v7384_v26 = vmov 5  }
 0x1a1   :  { %3012 = vmatmul.bf16.vlgmr.msra.gmra.mxu0 %v694_v25  ;;  %v2819_v28 = vadd.f32 %v2818_v13, %v2806_v27  ;;  %v7383_v25 = vmov 9   ;;  %v7080_v27 = vld [vmem:[%s9922_s2 + $0x18] sm:$0xff] }
 0x1a3   :  { %v2832_v30 = vadd.f32 %v2831_v16, %v2819_v28  ;;  %v7385_v28 = vmov 1  }
 0x1a5   :  { %v2845_v32 = vadd.f32 %v2844_v18, %v2832_v30  ;;  %v7077_v18 = vld [vmem:[%s9922_s2] sm:$0xff]  ;;  %v7387_v30 = vmov 4  }
 0x1a6   :  { %v2807_v33 = vpop.f32.mrf.mxu0 }
 0x1a7   :  { %v7389_v33 = vmov 6  }
 0x1a8   :  { %v2922_v42 = vpop.f32.mrf.mxu1 }
 0x1b0   :  { %v2924_v47 = vpop.f32.mrf.mxu1 }
 0x1b3   :  { %v2948_v46 = vpop.f32.mrf.mxu3 }
 0x1b4   :  { %v2935_v45 = vpop.f32.mrf.mxu2 }
 0x1bb   :  { %v2950_v49 = vpop.f32.mrf.mxu3 }
 0x1bc   :  { %v2937_v48 = vpop.f32.mrf.mxu2 }
 0x1be   :  { %v2857_v38 = vpop.f32.mrf.mxu0 }
 0x1bf   :  { %v2858_v39 = vadd.f32 %v2857_v38, %v2845_v32  ;;  %v7388_v32 = vmov 8  }
 0x1c1   :  { %v2871_v40 = vadd.f32 %v2870_v29, %v2858_v39  ;;  %v7386_v29 = vmov 7  }
 0x1c3   :  { %v2884_v41 = vadd.f32 %v2883_v31, %v2871_v40 }
 0x1c5   :  { %v2897_v43 = vadd.f32 %v2896_v34, %v2884_v41 }
 0x1c6   :  { %v2859_v44 = vpop.f32.mrf.mxu0 }
 0x1c8   :  { %v2974_v54 = vpop.f32.mrf.mxu1 }
 0x1d0   :  { %v2976_v59 = vpop.f32.mrf.mxu1 }
 0x1d2   :  { %v3000_v58 = vpop.f32.mrf.mxu3 }
 0x1d4   :  { %v2987_v57 = vpop.f32.mrf.mxu2 }
 0x1d8   :  { %v3026_v62 = vpop.f32.mrf.mxu1 }
 0x1da   :  { %v3002_v61 = vpop.f32.mrf.mxu3 }
 0x1dc   :  { %v2989_v60 = vpop.f32.mrf.mxu2 }
 0x1de   :  { %v2909_v50 = vpop.f32.mrf.mxu0 }
 0x1df   :  { %v2910_v51 = vadd.f32 %v2909_v50, %v2897_v43  ;;  %v7089_v50 = vld [vmem:[%s9923_s7 + $0x18] sm:$0xff] }
 0x1e0   :  { %v3028_v0 = vpop.f32.mrf.mxu1  ;;  %4676 = vmatpush.bf16.msra.mxu3 %v7089_v50 }
 0x1e1   :  { %v2923_v52 = vadd.f32 %v2922_v42, %v2910_v51  ;;  %v7082_v51 = vld [vmem:[%s9922_s2 + $0x28] sm:$0xff]  ;;  %v6554_v0 = vld [vmem:[%s9924_s5 + $0x130] sm:$0xff] }
 0x1e3   :  { %v2936_v53 = vadd.f32 %v2935_v45, %v2923_v52  ;;  %v3219_v52 = vld [vmem:[%s9924_s5] sm:$0xff] }
 0x1e5   :  { %v2949_v55 = vadd.f32 %v2948_v46, %v2936_v53 }
 0x1e6   :  { %v2911_v56 = vpop.f32.mrf.mxu0 }
 0x1fe   :  { %v2961_v63 = vpop.f32.mrf.mxu0 }
 0x1ff   :  { %v2962_v2 = vadd.f32 %v2961_v63, %v2949_v55  ;;  %v7088_v55 = vld [vmem:[%s9923_s7 + $0x10] sm:$0xff] }
 0x200   :  { %4677 = vmatpush.bf16.msra.mxu3 %v7088_v55 }
 0x201   :  { %v2975_v3 = vadd.f32 %v2974_v54, %v2962_v2  ;;  %v6535_v54 = vld [vmem:[%s9924_s5 + $0x98] sm:$0xff] }
 0x203   :  { %v2988_v4 = vadd.f32 %v2987_v57, %v2975_v3  ;;  %v3200_v57 = vld [vmem:[%s9925_s6] sm:$0xff] }
 0x205   :  { %v3001_v5 = vadd.f32 %v3000_v58, %v2988_v4  ;;  %v6536_v4 = vld [vmem:[%s9924_s5 + $0xa0] sm:$0xff] }
 0x206   :  { %v2963_v1 = vpop.f32.mrf.mxu0 }
 0x207   :  { %v3220_v1 = vld [vmem:[%s9924_s5 + $0x8] sm:$0xff] }
 0x21e   :  { %v3013_v6 = vpop.f32.mrf.mxu0 }
 0x21f   :  { %v3014_v7 = vadd.f32 %v3013_v6, %v3001_v5  ;;  %v7086_v5 = vld [vmem:[%s9923_s7] sm:$0xff] }
 0x221   :  { %v3027_v8 = vadd.f32 %v3026_v62, %v3014_v7  ;;  %v7087_v62 = vld [vmem:[%s9923_s7 + $0x8] sm:$0xff] }
 0x222   :  { %4678 = vmatpush.bf16.msra.mxu3 %v7087_v62  ;;  %v6573_v7 = vld [vmem:[%s9924_s5 + $0x1c8] sm:$0xff]  ;;  %v6631_v62 = vld [vmem:[%s9924_s5 + $0x398] sm:$0xff] }
 0x223   :  { %v3030_v9 = vmul.f32 1.442695, %v3027_v8 }
 0x225   :  { %7299 = vpow2.f32 %v3030_v9  ;;  %v6592_v9 = vld [vmem:[%s9924_s5 + $0x260] sm:$0xff] }
 0x226   :  { %v3015_v10 = vpop.f32.mrf.mxu0  ;;  %4679 = vmatpush.bf16.msra.mxu3 %v7086_v5  ;;  %v6687_v5 = vld [vmem:[%s9924_s5 + $0x558] sm:$0xff] }
 0x227   :  { %v3201_v10 = vld [vmem:[%s9925_s6 + $0x8] sm:$0xff] }
 0x22b   :  { %v7300_v11 = vpop.eup %7299 }
 0x22c   :  { %3034 = vrot.lane.b32.xlu0 %v7300_v11, %s7379_s3  ;;  %v6555_v11 = vld [vmem:[%s9924_s5 + $0x138] sm:$0xff] }
 0x29e   :  { %v3035_v13 = vpop.permute.xlu0 %3034 }
 0x29f   :  { %v3037_v14 = vmul.f32 %v3035_v13, %v3032_v12 }
 0x2a1   :  { %v3038_v15 = vadd.f32 %v3037_v14, %v3027_v8 }
 0x2a3   :  { %v3058_v16 = vpack.c.bf16 %v3038_v15, %v3038_v15 }
 0x2a5   :  { %v3140_v17 = vsel %vm3138_vm1, %v3058_v16, 0 }
 0x2a6   :  { %3149 = vmatpush.bf16.msra.mxu2 %v3140_v17 }
 0x2a9   :  { %6525 = vmatmul.msk.bf16.vlgmr.msra.gmra.mxu2 %vm3107_vm2, %v7077_v18 }
 0x2b9   :  { %6526 = vmatmul.msk.bf16.gmra.mxu2 %vm3107_vm2, %v7078_v22 }
 0x2c9   :  { %6527 = vmatmul.msk.bf16.gmra.mxu2 %vm3107_vm2, %v7079_v23 }
 0x2d9   :  { %6528 = vmatmul.msk.bf16.gmra.mxu2 %vm3107_vm2, %v7080_v27  ;;  %v6611_v27 = vld [vmem:[%s9924_s5 + $0x2f8] sm:$0xff] }
 0x2e9   :  { %6529 = vmatmul.msk.bf16.gmra.mxu2 %vm3107_vm2, %v7081_v35 }
 0x2f9   :  { %6530 = vmatmul.msk.bf16.gmra.mxu2 %vm3107_vm2, %v7082_v51 }
 0x32c   :  { %v3151_v24 = vpop.f32.mrf.mxu2 }
 0x32d   :  { %3660 = vperm.xlu1 %7108, %v3151_v24   ;;  %3526 = vperm.xlu2 %7107, %v3151_v24  }
 0x32e   :  { %3240 = vperm.xlu0 %7105, %v3151_v24  }
 0x334   :  { %v3153_v31 = vpop.f32.mrf.mxu2 }
 0x335   :  { %7114 = vset.pattern.permute.xlu1 %v7383_v25  ;;  %7110 = vset.pattern.permute.xlu2 %v7384_v26 }
 0x336   :  { %7106 = vset.pattern.permute.xlu0 %v7385_v28  ;;  %4464 = vperm.xlu1 %7114, %v3151_v24  }
 0x337   :  { %3928 = vperm.xlu2 %7110, %v3151_v24   ;;  %3392 = vperm.xlu0 %7106, %v3151_v24  }
 0x33c   :  { %v3156_v34 = vpop.f32.mrf.mxu2 }
 0x33e   :  { %7115 = vset.pattern.permute.xlu1 %v7382_v21 }
 0x33f   :  { %7112 = vset.pattern.permute.xlu2 %v7386_v29  ;;  %7109 = vset.pattern.permute.xlu0 %v7387_v30 }
 0x340   :  { %4196 = vperm.xlu2 %7112, %v3151_v24   ;;  %3794 = vperm.xlu0 %7109, %v3151_v24  }
 0x341   :  { %3245 = vperm.xlu1 %7115, %v3153_v31  }
 0x344   :  { %v3158_v36 = vpop.f32.mrf.mxu2 }
 0x348   :  { %7113 = vset.pattern.permute.xlu2 %v7388_v32  ;;  %7111 = vset.pattern.permute.xlu0 %v7389_v33 }
 0x349   :  { %7116 = vset.pattern.permute.xlu1 %v7385_v28  ;;  %4330 = vperm.xlu2 %7113, %v3151_v24  }
 0x34a   :  { %4062 = vperm.xlu0 %7111, %v3151_v24   ;;  %3396 = vperm.xlu1 %7116, %v3153_v31  }
 0x34c   :  { %v8481_v38 = vpop.f32.mrf.mxu2 }
 0x351   :  { %7118 = vset.pattern.permute.xlu2 %v7380_v19 }
 0x352   :  { %7117 = vset.pattern.permute.xlu0 %v7381_v20  ;;  %7119 = vset.pattern.permute.xlu1 %v7387_v30 }
 0x353   :  { %3664 = vperm.xlu2 %7118, %v3153_v31   ;;  %3530 = vperm.xlu0 %7117, %v3153_v31  }
 0x354   :  { %3798 = vperm.xlu1 %7119, %v3153_v31   ;;  %v8489_v40 = vpop.f32.mrf.mxu2 }
 0x35b   :  { %7124 = vset.pattern.permute.xlu2 %v7383_v25  ;;  %7120 = vset.pattern.permute.xlu0 %v7384_v26 }
 0x35c   :  { %7121 = vset.pattern.permute.xlu1 %v7389_v33  ;;  %4468 = vperm.xlu2 %7124, %v3153_v31   ;;  %v8536_v61 = vpop.f32.mrf.mxu2 }
 0x35d   :  { %3932 = vperm.xlu0 %7120, %v3153_v31   ;;  %4066 = vperm.xlu1 %7121, %v3153_v31  }
 0x364   :  { %7126 = vset.pattern.permute.xlu2 %v7385_v28 }
 0x365   :  { %7123 = vset.pattern.permute.xlu0 %v7388_v32  ;;  %7122 = vset.pattern.permute.xlu1 %v7386_v29 }
 0x366   :  { %4334 = vperm.xlu0 %7123, %v3153_v31   ;;  %4200 = vperm.xlu1 %7122, %v3153_v31   ;;  %v6574_v31 = vld [vmem:[%s9924_s5 + $0x1d0] sm:$0xff] }
 0x367   :  { %3400 = vperm.xlu2 %7126, %v3156_v34  }
 0x36e   :  { %7128 = vset.pattern.permute.xlu0 %v7380_v19  ;;  %7125 = vset.pattern.permute.xlu1 %v7382_v21 }
 0x36f   :  { %7129 = vset.pattern.permute.xlu2 %v7387_v30  ;;  %3668 = vperm.xlu0 %7128, %v3156_v34  }
 0x370   :  { %3802 = vperm.xlu2 %7129, %v3156_v34   ;;  %3250 = vperm.xlu1 %7125, %v3156_v34  }
 0x377   :  { %7132 = vset.pattern.permute.xlu0 %v7386_v29 }
 0x378   :  { %7133 = vset.pattern.permute.xlu2 %v7388_v32  ;;  %7127 = vset.pattern.permute.xlu1 %v7381_v20 }
 0x379   :  { %4204 = vperm.xlu0 %7132, %v3156_v34   ;;  %4338 = vperm.xlu2 %7133, %v3156_v34  }
 0x37a   :  { %3534 = vperm.xlu1 %7127, %v3156_v34  }
 0x381   :  { %7144 = vset.pattern.permute.xlu0 %v7383_v25  ;;  %7134 = vset.pattern.permute.xlu2 %v7383_v25 }
 0x382   :  { %7130 = vset.pattern.permute.xlu1 %v7384_v26  ;;  %4472 = vperm.xlu2 %7134, %v3156_v34  }
 0x383   :  { %3936 = vperm.xlu1 %7130, %v3156_v34   ;;  %4476 = vperm.xlu0 %7144, %v3158_v36  }
 0x387   :  { %v8476_v37 = vpop.permute.xlu2 %3526 }
 0x388   :  { %v3601_v6 = vmul.f32 %v6554_v0, %v8476_v37 }
 0x38a   :  { %7135 = vset.pattern.permute.xlu2 %v7382_v21 }
 0x38b   :  { %7131 = vset.pattern.permute.xlu1 %v7389_v33  ;;  %3255 = vperm.xlu2 %7135, %v3158_v36  }
 0x38c   :  { %4070 = vperm.xlu1 %7131, %v3156_v34   ;;  %7153 = vset.pattern.permute.xlu0 %v7388_v32  ;;  %v6630_v34 = vld [vmem:[%s9924_s5 + $0x390] sm:$0xff] }
 0x38d   :  { %4346 = vperm.xlu0 %7153, %v8481_v38  }
 0x391   :  { %v8484_v39 = vpop.permute.xlu2 %3928 }
 0x393   :  { %7137 = vset.pattern.permute.xlu2 %v7381_v20 }
 0x394   :  { %7136 = vset.pattern.permute.xlu1 %v7385_v28  ;;  %3538 = vperm.xlu2 %7137, %v3158_v36  }
 0x395   :  { %3404 = vperm.xlu1 %7136, %v3158_v36   ;;  %7156 = vset.pattern.permute.xlu0 %v7385_v28 }
 0x396   :  { %3412 = vperm.xlu0 %7156, %v8489_v40  }
 0x39a   :  { %v8492_v41 = vpop.permute.xlu2 %4196 }
 0x39c   :  { %7140 = vset.pattern.permute.xlu2 %v7384_v26 }
 0x39d   :  { %7138 = vset.pattern.permute.xlu1 %v7380_v19  ;;  %3940 = vperm.xlu2 %7140, %v3158_v36  }
 0x39e   :  { %3672 = vperm.xlu1 %7138, %v3158_v36   ;;  %7159 = vset.pattern.permute.xlu0 %v7387_v30 }
 0x39f   :  { %v8496_v42 = vpop.permute.xlu1 %3660  ;;  %3814 = vperm.xlu0 %7159, %v8489_v40  }
 0x3a0   :  { %v3241_v43 = vpop.permute.xlu0 %3240  ;;  %v3735_v16 = vmul.f32 %v6573_v7, %v8496_v42  ;;  %v4003_v42 = vmul.f32 %v6611_v27, %v8484_v39  ;;  %v6649_v39 = vld [vmem:[%s9924_s5 + $0x428] sm:$0xff] }
 0x3a1   :  { %v3333_v56 = vmul.f32 %v3241_v43, %v3219_v52 }
 0x3a3   :  { %v8501_v44 = vpop.permute.xlu2 %4330  ;;  %v3352_v63 = vadd.f32 %v3333_v56, %v3200_v57  ;;  %v4271_v57 = vmul.f32 %v6649_v39, %v8492_v41  ;;  %v6650_v41 = vld [vmem:[%s9924_s5 + $0x430] sm:$0xff] }
 0x3a5   :  { %7141 = vset.pattern.permute.xlu2 %v7389_v33 }
 0x3a6   :  { %7139 = vset.pattern.permute.xlu1 %v7387_v30  ;;  %4074 = vperm.xlu2 %7141, %v3158_v36  }
 0x3a7   :  { %3806 = vperm.xlu1 %7139, %v3158_v36   ;;  %7167 = vset.pattern.permute.xlu0 %v7381_v20 }
 0x3a8   :  { %v8504_v46 = vpop.permute.xlu1 %4464  ;;  %3550 = vperm.xlu0 %7167, %v8536_v61  }
 0x3a9   :  { %v3393_v45 = vpop.permute.xlu0 %3392 }
 0x3aa   :  { %v3467_v60 = vmul.f32 %v6535_v54, %v3393_v45 }
 0x3ac   :  { %v3486_v2 = vadd.f32 %v3467_v60, %v3352_v63  ;;  %v6668_v60 = vld [vmem:[%s9924_s5 + $0x4c0] sm:$0xff] }
 0x3ad   :  { %v8509_v47 = vpop.permute.xlu2 %3664 }
 0x3ae   :  { %7145 = vset.pattern.permute.xlu2 %v7382_v21  ;;  %v3620_v12 = vadd.f32 %v3601_v6, %v3486_v2  ;;  %v3736_v43 = vmul.f32 %v6574_v31, %v8509_v47  ;;  %v6669_v6 = vld [vmem:[%s9924_s5 + $0x4c8] sm:$0xff] }
 0x3af   :  { %7142 = vset.pattern.permute.xlu1 %v7386_v29  ;;  %3260 = vperm.xlu2 %7145, %v8481_v38  }
 0x3b0   :  { %4208 = vperm.xlu1 %7142, %v3158_v36   ;;  %7170 = vset.pattern.permute.xlu0 %v7384_v26  ;;  %v3754_v23 = vadd.f32 %v3735_v16, %v3620_v12  ;;  %v4539_v12 = vmul.f32 %v6687_v5, %v8504_v46 }
 0x3b1   :  { %3952 = vperm.xlu0 %7170, %v8536_v61  }
 0x3b2   :  { %v3795_v48 = vpop.permute.xlu0 %3794 }
 0x3b3   :  { %v3246_v49 = vpop.permute.xlu1 %3245  ;;  %v3869_v17 = vmul.f32 %v6592_v9, %v3795_v48  ;;  %v6593_v48 = vld [vmem:[%s9924_s5 + $0x268] sm:$0xff] }
 0x3b4   :  { %v3334_v8 = vmul.f32 %v3246_v49, %v3220_v1  ;;  %v6612_v49 = vld [vmem:[%s9924_s5 + $0x300] sm:$0xff]  ;;  %v4405_v1 = vmul.f32 %v6668_v60, %v8501_v44  ;;  %v6538_v60 = vld [vmem:[%s9924_s5 + $0xb0] sm:$0xff] }
 0x3b5   :  { %v6688_v44 = vld [vmem:[%s9924_s5 + $0x560] sm:$0xff] }
 0x3b6   :  { %v8525_v53 = vpop.permute.xlu2 %4468  ;;  %v3353_v18 = vadd.f32 %v3334_v8, %v3201_v10 }
 0x3b7   :  { %7146 = vset.pattern.permute.xlu2 %v7385_v28  ;;  %v4540_v16 = vmul.f32 %v6688_v44, %v8525_v53 }
 0x3b8   :  { %7143 = vset.pattern.permute.xlu1 %v7388_v32  ;;  %3408 = vperm.xlu2 %7146, %v8481_v38  }
 0x3b9   :  { %4342 = vperm.xlu1 %7143, %v3158_v36   ;;  %v3888_v36 = vadd.f32 %v3869_v17, %v3754_v23  ;;  %7174 = vset.pattern.permute.xlu0 %v7383_v25 }
 0x3ba   :  { %4488 = vperm.xlu0 %7174, %v8536_v61  }
 0x3bb   :  { %v4022_v50 = vadd.f32 %v4003_v42, %v3888_v36 }
 0x3bc   :  { %v4063_v58 = vpop.permute.xlu0 %4062  ;;  %v3397_v59 = vpop.permute.xlu1 %3396 }
 0x3bd   :  { %v3468_v13 = vmul.f32 %v6536_v4, %v3397_v59  ;;  %v4137_v45 = vmul.f32 %v6630_v34, %v4063_v58  ;;  %v8621_v4 = vpop.f32.mrf.mxu2 }
 0x3bf   :  { %v3487_v24 = vadd.f32 %v3468_v13, %v3353_v18  ;;  %v4156_v47 = vadd.f32 %v4137_v45, %v4022_v50 }
 0x3c0   :  { %7148 = vset.pattern.permute.xlu2 %v7380_v19 }
 0x3c1   :  { %7147 = vset.pattern.permute.xlu1 %v7381_v20  ;;  %3676 = vperm.xlu2 %7148, %v8481_v38   ;;  %v8551_v3 = vpop.permute.xlu2 %3400  ;;  %v4290_v63 = vadd.f32 %v4271_v57, %v4156_v47 }
 0x3c2   :  { %3542 = vperm.xlu1 %7147, %v8481_v38   ;;  %7175 = vset.pattern.permute.xlu0 %v7382_v21 }
 0x3c3   :  { %v4424_v9 = vadd.f32 %v4405_v1, %v4290_v63  ;;  %3275 = vperm.xlu0 %7175, %v8621_v4  }
 0x3c5   :  { %v3531_v14 = vpop.permute.xlu0 %3530  ;;  %v4558_v17 = vadd.f32 %v4539_v12, %v4424_v9  ;;  %v6557_v9 = vld [vmem:[%s9924_s5 + $0x148] sm:$0xff] }
 0x3c6   :  { %v3799_v15 = vpop.permute.xlu1 %3798  ;;  %v3602_v22 = vmul.f32 %v6555_v11, %v3531_v14 }
 0x3c7   :  { %v3870_v55 = vmul.f32 %v6593_v48, %v3799_v15  ;;  %v4577_v23 = vmax.f32 %v4558_v17, 0.0  ;;  %v8678_v48 = vpop.f32.mrf.mxu2 }
 0x3c8   :  { %v3621_v37 = vadd.f32 %v3602_v22, %v3487_v24 }
 0x3c9   :  { %7149 = vset.pattern.permute.xlu2 %v7387_v30 }
 0x3ca   :  { %7150 = vset.pattern.permute.xlu1 %v7384_v26  ;;  %3810 = vperm.xlu2 %7149, %v8481_v38   ;;  %v8588_v35 = vpop.permute.xlu2 %3802  ;;  %v3755_v51 = vadd.f32 %v3736_v43, %v3621_v37  ;;  %v7083_v37 = vld [vmem:[%s9922_s2 + $0x30] sm:$0xff] }
 0x3cb   :  { %3944 = vperm.xlu1 %7150, %v8481_v38   ;;  %7178 = vset.pattern.permute.xlu0 %v7380_v19 }
 0x3cc   :  { %v3889_v58 = vadd.f32 %v3870_v55, %v3755_v51  ;;  %3688 = vperm.xlu0 %7178, %v8621_v4   ;;  %6531 = vmatmul.msk.bf16.gmra.mxu2 %vm3107_vm2, %v7083_v37  ;;  %v3202_v51 = vld [vmem:[%s9925_s6 + $0x10] sm:$0xff]  ;;  %v3222_v55 = vld [vmem:[%s9924_s5 + $0x18] sm:$0xff] }
 0x3cf   :  { %v3933_v52 = vpop.permute.xlu0 %3932  ;;  %v4067_v54 = vpop.permute.xlu1 %4066 }
 0x3d0   :  { %v4004_v56 = vmul.f32 %v6612_v49, %v3933_v52  ;;  %v4138_v2 = vmul.f32 %v6631_v62, %v4067_v54  ;;  %v3221_v49 = vld [vmem:[%s9924_s5 + $0x10] sm:$0xff]  ;;  %v6537_v52 = vld [vmem:[%s9924_s5 + $0xa8] sm:$0xff]  ;;  %v6556_v54 = vld [vmem:[%s9924_s5 + $0x140] sm:$0xff]  ;;  %v8720_v5 = vpop.f32.mrf.mxu2 }
 0x3d2   :  { %7154 = vset.pattern.permute.xlu2 %v7383_v25  ;;  %v4023_v0 = vadd.f32 %v4004_v56, %v3889_v58  ;;  %v3469_v56 = vmul.f32 %v6537_v52, %v8551_v3 }
 0x3d3   :  { %7151 = vset.pattern.permute.xlu1 %v7389_v33  ;;  %4480 = vperm.xlu2 %7154, %v8481_v38   ;;  %v8608_v59 = vpop.permute.xlu2 %4338 }
 0x3d4   :  { %4078 = vperm.xlu1 %7151, %v8481_v38   ;;  %v4157_v10 = vadd.f32 %v4138_v2, %v4023_v0  ;;  %7181 = vset.pattern.permute.xlu0 %v7389_v33  ;;  %v6575_v0 = vld [vmem:[%s9924_s5 + $0x1d8] sm:$0xff] }
 0x3d5   :  { %4090 = vperm.xlu0 %7181, %v8621_v4  }
 0x3d8   :  { %v4335_v7 = vpop.permute.xlu0 %4334  ;;  %v4201_v8 = vpop.permute.xlu1 %4200 }
 0x3d9   :  { %v4272_v11 = vmul.f32 %v6650_v41, %v4201_v8  ;;  %v4406_v13 = vmul.f32 %v6669_v6, %v4335_v7  ;;  %v3203_v41 = vld [vmem:[%s9925_s6 + $0x18] sm:$0xff]  ;;  %v6594_v6 = vld [vmem:[%s9924_s5 + $0x270] sm:$0xff] }
 0x3db   :  { %v4291_v14 = vadd.f32 %v4272_v11, %v4157_v10  ;;  %7157 = vset.pattern.permute.xlu2 %v7381_v20  ;;  %v6613_v10 = vld [vmem:[%s9924_s5 + $0x308] sm:$0xff]  ;;  %v6576_v11 = vld [vmem:[%s9924_s5 + $0x1e0] sm:$0xff] }
 0x3dc   :  { %7152 = vset.pattern.permute.xlu1 %v7386_v29  ;;  %v8637_v15 = vpop.permute.xlu2 %4472  ;;  %3546 = vperm.xlu2 %7157, %v8489_v40  }
 0x3dd   :  { %v4425_v18 = vadd.f32 %v4406_v13, %v4291_v14  ;;  %4212 = vperm.xlu1 %7152, %v8481_v38   ;;  %7186 = vset.pattern.permute.xlu0 %v7385_v28  ;;  %v6632_v14 = vld [vmem:[%s9924_s5 + $0x3a0] sm:$0xff] }
 0x3de   :  { %3424 = vperm.xlu0 %7186, %v8678_v48  }
 0x3df   :  { %v4559_v22 = vadd.f32 %v4540_v16, %v4425_v18  ;;  %v6595_v16 = vld [vmem:[%s9924_s5 + $0x278] sm:$0xff]  ;;  %v3871_v18 = vmul.f32 %v6594_v6, %v8588_v35  ;;  %v6614_v35 = vld [vmem:[%s9924_s5 + $0x310] sm:$0xff] }
 0x3e1   :  { %v4578_v24 = vmax.f32 %v4559_v22, 0.0  ;;  %v3669_v3 = vpop.permute.xlu0 %3668 }
 0x3e2   :  { %v3251_v46 = vpop.permute.xlu1 %3250  ;;  %v3737_v7 = vmul.f32 %v6575_v0, %v3669_v3  ;;  %v6671_v0 = vld [vmem:[%s9924_s5 + $0x4d8] sm:$0xff] }
 0x3e3   :  { %v4596_v27 = vpack.c.bf16 %v4578_v24, %v4577_v23 }
 0x3e4   :  { %7160 = vset.pattern.permute.xlu2 %v7384_v26 }
 0x3e5   :  { %7155 = vset.pattern.permute.xlu1 %v7382_v21  ;;  %v3256_v31 = vpop.permute.xlu2 %3255  ;;  %3948 = vperm.xlu2 %7160, %v8489_v40  }
 0x3e6   :  { %3265 = vperm.xlu1 %7155, %v8489_v40   ;;  %6722 = vmatmul.msk.bf16.vlgmr.msra.gmra.mxu3 %vm2533_vm0, %v4596_v27  ;;  %v3336_v62 = vmul.f32 %v3256_v31, %v3222_v55  ;;  %v6652_v55 = vld [vmem:[%s9924_s5 + $0x440] sm:$0xff] }
 0x3e7   :  { %7189 = vset.pattern.permute.xlu0 %v7387_v30 }
 0x3e8   :  { %3826 = vperm.xlu0 %7189, %v8678_v48   ;;  %v3355_v8 = vadd.f32 %v3336_v62, %v3203_v41 }
 0x3ec   :  { %v3535_v38 = vpop.permute.xlu1 %3534 }
 0x3ed   :  { %7161 = vset.pattern.permute.xlu2 %v7389_v33  ;;  %v3603_v57 = vmul.f32 %v6556_v54, %v3535_v38 }
 0x3ee   :  { %7158 = vset.pattern.permute.xlu1 %v7380_v19  ;;  %v8653_v53 = vpop.permute.xlu2 %3538  ;;  %4082 = vperm.xlu2 %7161, %v8489_v40  }
 0x3ef   :  { %3680 = vperm.xlu1 %7158, %v8489_v40   ;;  %v3604_v22 = vmul.f32 %v6557_v9, %v8653_v53 }
 0x3f0   :  { %7197 = vset.pattern.permute.xlu0 %v7381_v20 }
 0x3f1   :  { %3562 = vperm.xlu0 %7197, %v8720_v5  }
 0x3f5   :  { %v8658_v34 = vpop.permute.xlu1 %3936 }
 0x3f6   :  { %7162 = vset.pattern.permute.xlu2 %v7386_v29  ;;  %v4005_v23 = vmul.f32 %v6613_v10, %v8658_v34 }
 0x3f7   :  { %7163 = vset.pattern.permute.xlu1 %v7388_v32  ;;  %v8662_v36 = vpop.permute.xlu2 %3940  ;;  %4216 = vperm.xlu2 %7162, %v8489_v40  }
 0x3f8   :  { %4350 = vperm.xlu1 %7163, %v8489_v40   ;;  %v4006_v52 = vmul.f32 %v6614_v35, %v8662_v36  ;;  %v3204_v35 = vld [vmem:[%s9925_s6 + $0x20] sm:$0xff] }
 0x3f9   :  { %7200 = vset.pattern.permute.xlu0 %v7384_v26 }
 0x3fa   :  { %3964 = vperm.xlu0 %7200, %v8720_v5  }
 0x3fe   :  { %v8669_v42 = vpop.permute.xlu1 %4070 }
 0x3ff   :  { %7165 = vset.pattern.permute.xlu2 %v7382_v21  ;;  %v4139_v27 = vmul.f32 %v6632_v14, %v8669_v42 }
 0x400   :  { %7164 = vset.pattern.permute.xlu1 %v7383_v25  ;;  %3270 = vperm.xlu2 %7165, %v8536_v61   ;;  %v8675_v43 = vpop.permute.xlu2 %4074 }
 0x401   :  { %4484 = vperm.xlu1 %7164, %v8489_v40   ;;  %v3335_v40 = vmul.f32 %v3251_v46, %v3221_v49  ;;  %v6651_v49 = vld [vmem:[%s9924_s5 + $0x438] sm:$0xff] }
 0x402   :  { %7202 = vset.pattern.permute.xlu0 %v7386_v29 }
 0x403   :  { %v3354_v39 = vadd.f32 %v3335_v40, %v3202_v51  ;;  %v4205_v40 = vpop.permute.xlu0 %4204  ;;  %4232 = vperm.xlu0 %7202, %v8720_v5  }
 0x404   :  { %v4273_v42 = vmul.f32 %v6651_v49, %v4205_v40 }
 0x405   :  { %v3488_v63 = vadd.f32 %v3469_v56, %v3354_v39  ;;  %v6670_v39 = vld [vmem:[%s9924_s5 + $0x4d0] sm:$0xff] }
 0x407   :  { %v3405_v45 = vpop.permute.xlu1 %3404  ;;  %v3622_v1 = vadd.f32 %v3603_v57, %v3488_v63  ;;  %v4407_v57 = vmul.f32 %v6670_v39, %v8608_v59  ;;  %v6689_v63 = vld [vmem:[%s9924_s5 + $0x568] sm:$0xff] }
 0x408   :  { %7168 = vset.pattern.permute.xlu2 %v7380_v19  ;;  %v3470_v2 = vmul.f32 %v6538_v60, %v3405_v45  ;;  %v4541_v59 = vmul.f32 %v6689_v63, %v8637_v15 }
 0x409   :  { %7166 = vset.pattern.permute.xlu1 %v7385_v28  ;;  %3684 = vperm.xlu2 %7168, %v8536_v61   ;;  %v8687_v50 = vpop.permute.xlu2 %3260  ;;  %v3756_v12 = vadd.f32 %v3737_v7, %v3622_v1 }
 0x40a   :  { %3416 = vperm.xlu1 %7166, %v8536_v61   ;;  %v3489_v13 = vadd.f32 %v3470_v2, %v3355_v8 }
 0x40b   :  { %v3890_v46 = vadd.f32 %v3871_v18, %v3756_v12  ;;  %v4477_v1 = vpop.permute.xlu0 %4476  ;;  %7205 = vset.pattern.permute.xlu0 %v7382_v21  ;;  %v7084_v18 = vld [vmem:[%s9922_s2 + $0x38] sm:$0xff] }
 0x40c   :  { %v3623_v31 = vadd.f32 %v3604_v22, %v3489_v13  ;;  %6532 = vmatmul.msk.bf16.gmra.mxu2 %vm3107_vm2, %v7084_v18  ;;  %v6616_v18 = vld [vmem:[%s9924_s5 + $0x320] sm:$0xff] }
 0x40d   :  { %v4024_v37 = vadd.f32 %v4005_v23, %v3890_v46 }
 0x40f   :  { %v4158_v53 = vadd.f32 %v4139_v27, %v4024_v37  ;;  %v7093_v27 = vld [vmem:[%s9927_s9 + $0x18] sm:$0xff]  ;;  %v3223_v37 = vld [vmem:[%s9924_s5 + $0x20] sm:$0xff] }
 0x410   :  { %v3673_v47 = vpop.permute.xlu1 %3672  ;;  %4829 = vmatpush.bf16.msrb.mxu1 %v7093_v27  ;;  %v3337_v40 = vmul.f32 %v8687_v50, %v3223_v37  ;;  %v6558_v50 = vld [vmem:[%s9924_s5 + $0x150] sm:$0xff]  ;;  %v6653_v37 = vld [vmem:[%s9924_s5 + $0x448] sm:$0xff] }
 0x411   :  { %7171 = vset.pattern.permute.xlu2 %v7389_v33  ;;  %v3738_v24 = vmul.f32 %v6576_v11, %v3673_v47  ;;  %v6633_v47 = vld [vmem:[%s9924_s5 + $0x3a8] sm:$0xff]  ;;  %v4292_v36 = vadd.f32 %v4273_v42, %v4158_v53  ;;  %v6539_v53 = vld [vmem:[%s9924_s5 + $0xb8] sm:$0xff] }
 0x412   :  { %7169 = vset.pattern.permute.xlu1 %v7387_v30  ;;  %4086 = vperm.xlu2 %7171, %v8536_v61   ;;  %v8708_v58 = vpop.permute.xlu2 %3408  ;;  %v4140_v60 = vmul.f32 %v6633_v47, %v8675_v43  ;;  %v3224_v42 = vld [vmem:[%s9924_s5 + $0x28] sm:$0xff] }
 0x413   :  { %3818 = vperm.xlu1 %7169, %v8536_v61   ;;  %v3757_v45 = vadd.f32 %v3738_v24, %v3623_v31  ;;  %v4426_v3 = vadd.f32 %v4407_v57, %v4292_v36  ;;  %v8836_v31 = vpop.permute.xlu0 %4346  ;;  %v3471_v39 = vmul.f32 %v6539_v53, %v8708_v58  ;;  %v6540_v57 = vld [vmem:[%s9924_s5 + $0xc0] sm:$0xff] }
 0x415   :  { %v4560_v10 = vadd.f32 %v4541_v59, %v4426_v3  ;;  %v6578_v59 = vld [vmem:[%s9924_s5 + $0x1f0] sm:$0xff] }
 0x419   :  { %v3807_v44 = vpop.permute.xlu1 %3806 }
 0x41a   :  { %7176 = vset.pattern.permute.xlu2 %v7385_v28  ;;  %v3872_v38 = vmul.f32 %v6595_v16, %v3807_v44  ;;  %v4579_v44 = vmax.f32 %v4560_v10, 0.0  ;;  %v8804_v16 = vpop.f32.mrf.mxu2 }
 0x41b   :  { %7172 = vset.pattern.permute.xlu1 %v7386_v29  ;;  %3420 = vperm.xlu2 %7176, %v8621_v4   ;;  %v8745_v17 = vpop.permute.xlu2 %3676  ;;  %v3413_v47 = vpop.permute.xlu0 %3412 }
 0x41c   :  { %4220 = vperm.xlu1 %7172, %v8536_v61   ;;  %v3891_v34 = vadd.f32 %v3872_v38, %v3757_v45  ;;  %3290 = vperm.xlu0 %7205, %v8804_v16   ;;  %v7091_v45 = vld [vmem:[%s9927_s9 + $0x8] sm:$0xff]  ;;  %v3472_v3 = vmul.f32 %v6540_v57, %v3413_v47 }
 0x41d   :  { %v6673_v57 = vld [vmem:[%s9924_s5 + $0x4e8] sm:$0xff] }
 0x41e   :  { %v4025_v56 = vadd.f32 %v4006_v52, %v3891_v34  ;;  %v7090_v34 = vld [vmem:[%s9927_s9] sm:$0xff]  ;;  %v3356_v52 = vadd.f32 %v3337_v40, %v3204_v35 }
 0x420   :  { %v4159_v41 = vadd.f32 %v4140_v60, %v4025_v56  ;;  %v3490_v58 = vadd.f32 %v3471_v39, %v3356_v52 }
 0x422   :  { %v4209_v51 = vpop.permute.xlu1 %4208 }
 0x423   :  { %7179 = vset.pattern.permute.xlu2 %v7387_v30  ;;  %v4274_v62 = vmul.f32 %v6652_v55, %v4209_v51  ;;  %v8864_v51 = vpop.f32.mrf.mxu2  ;;  %v3205_v55 = vld [vmem:[%s9925_s6 + $0x28] sm:$0xff]  ;;  %v3815_v10 = vpop.permute.xlu0 %3814 }
 0x424   :  { %7173 = vset.pattern.permute.xlu1 %v7388_v32  ;;  %3822 = vperm.xlu2 %7179, %v8621_v4   ;;  %v8764_v54 = vpop.permute.xlu2 %3810 }
 0x425   :  { %4354 = vperm.xlu1 %7173, %v8536_v61   ;;  %v6690_v61 = vld [vmem:[%s9924_s5 + $0x570] sm:$0xff]  ;;  %v4293_v43 = vadd.f32 %v4274_v62, %v4159_v41  ;;  %7208 = vset.pattern.permute.xlu0 %v7380_v19 }
 0x426   :  { %v4542_v8 = vmul.f32 %v6690_v61, %v4477_v1  ;;  %3700 = vperm.xlu0 %7208, %v8804_v16   ;;  %v6559_v61 = vld [vmem:[%s9924_s5 + $0x158] sm:$0xff] }
 0x42b   :  { %v4343_v2 = vpop.permute.xlu1 %4342 }
 0x42c   :  { %v4408_v6 = vmul.f32 %v6671_v0, %v4343_v2  ;;  %7182 = vset.pattern.permute.xlu2 %v7386_v29  ;;  %v6577_v0 = vld [vmem:[%s9924_s5 + $0x1e8] sm:$0xff] }
 0x42d   :  { %7177 = vset.pattern.permute.xlu1 %v7381_v20  ;;  %v8792_v7 = vpop.permute.xlu2 %4480  ;;  %4224 = vperm.xlu2 %7182, %v8621_v4   ;;  %v3739_v2 = vmul.f32 %v6577_v0, %v8745_v17  ;;  %v6597_v17 = vld [vmem:[%s9924_s5 + $0x288] sm:$0xff] }
 0x42e   :  { %v4427_v9 = vadd.f32 %v4408_v6, %v4293_v43  ;;  %3554 = vperm.xlu1 %7177, %v8621_v4   ;;  %7211 = vset.pattern.permute.xlu0 %v7389_v33  ;;  %v6596_v43 = vld [vmem:[%s9924_s5 + $0x280] sm:$0xff] }
 0x42f   :  { %4102 = vperm.xlu0 %7211, %v8804_v16  }
 0x430   :  { %v4561_v11 = vadd.f32 %v4542_v8, %v4427_v9  ;;  %v6615_v8 = vld [vmem:[%s9924_s5 + $0x318] sm:$0xff] }
 0x432   :  { %v4580_v15 = vmax.f32 %v4561_v11, 0.0 }
 0x434   :  { %v3543_v12 = vpop.permute.xlu1 %3542  ;;  %v4597_v13 = vpack.c.bf16 %v4580_v15, %v4579_v44  ;;  %v6634_v44 = vld [vmem:[%s9924_s5 + $0x3b0] sm:$0xff] }
 0x435   :  { %7183 = vset.pattern.permute.xlu2 %v7388_v32  ;;  %v3605_v56 = vmul.f32 %v6558_v50, %v3543_v12 }
 0x436   :  { %6723 = vmatmul.msk.bf16.gmra.mxu3 %vm2533_vm0, %v4597_v13  ;;  %7180 = vset.pattern.permute.xlu1 %v7384_v26  ;;  %v8800_v14 = vpop.permute.xlu2 %3546  ;;  %v3873_v13 = vmul.f32 %v6596_v43, %v8764_v54 }
 0x437   :  { %3956 = vperm.xlu1 %7180, %v8621_v4   ;;  %4358 = vperm.xlu2 %7183, %v8621_v4   ;;  %v3624_v41 = vadd.f32 %v3605_v56, %v3490_v58  ;;  %v3606_v6 = vmul.f32 %v6559_v61, %v8800_v14 }
 0x438   :  { %7216 = vset.pattern.permute.xlu0 %v7385_v28 }
 0x439   :  { %3436 = vperm.xlu0 %7216, %v8864_v51   ;;  %v3758_v9 = vadd.f32 %v3739_v2, %v3624_v41 }
 0x43b   :  { %v3892_v54 = vadd.f32 %v3873_v13, %v3758_v9  ;;  %v7085_v13 = vld [vmem:[%s9922_s2 + $0x40] sm:$0xff] }
 0x43c   :  { %6533 = vmatmul.msk.bf16.gmra.mxu2 %vm3107_vm2, %v7085_v13 }
 0x43d   :  { %v8810_v22 = vpop.permute.xlu1 %3944 }
 0x43e   :  { %v4007_v14 = vmul.f32 %v6615_v8, %v8810_v22 }
 0x43f   :  { %7184 = vset.pattern.permute.xlu1 %v7383_v25  ;;  %7187 = vset.pattern.permute.xlu2 %v7381_v20  ;;  %v8815_v23 = vpop.permute.xlu2 %3948 }
 0x440   :  { %4492 = vperm.xlu1 %7184, %v8621_v4   ;;  %3558 = vperm.xlu2 %7187, %v8678_v48   ;;  %v7092_v4 = vld [vmem:[%s9927_s9 + $0x10] sm:$0xff]  ;;  %v4008_v40 = vmul.f32 %v6616_v18, %v8815_v23  ;;  %v4026_v53 = vadd.f32 %v4007_v14, %v3892_v54 }
 0x441   :  { %4830 = vmatpush.bf16.msrb.mxu1 %v7092_v4  ;;  %7219 = vset.pattern.permute.xlu0 %v7387_v30  ;;  %v3874_v4 = vmul.f32 %v6597_v17, %v3815_v10 }
 0x442   :  { %3838 = vperm.xlu0 %7219, %v8864_v51  }
 0x445   :  { %4831 = vmatpush.bf16.msrb.mxu1 %v7091_v45 }
 0x446   :  { %v8821_v24 = vpop.permute.xlu1 %4078 }
 0x447   :  { %v4141_v22 = vmul.f32 %v6634_v44, %v8821_v24  ;;  %v6672_v24 = vld [vmem:[%s9924_s5 + $0x4e0] sm:$0xff] }
 0x448   :  { %7185 = vset.pattern.permute.xlu1 %v7382_v21  ;;  %7190 = vset.pattern.permute.xlu2 %v7384_v26  ;;  %v8825_v46 = vpop.permute.xlu2 %4082 }
 0x449   :  { %3960 = vperm.xlu2 %7190, %v8678_v48   ;;  %3280 = vperm.xlu1 %7185, %v8678_v48  }
 0x44a   :  { %4832 = vmatpush.bf16.msrb.mxu1 %v7090_v34  ;;  %v6635_v34 = vld [vmem:[%s9924_s5 + $0x3b8] sm:$0xff]  ;;  %7223 = vset.pattern.permute.xlu0 %v7388_v32 }
 0x44b   :  { %4374 = vperm.xlu0 %7223, %v8864_v51   ;;  %v4142_v23 = vmul.f32 %v6635_v34, %v8825_v46  ;;  %v4409_v46 = vmul.f32 %v6672_v24, %v8836_v31  ;;  %v3226_v24 = vld [vmem:[%s9924_s5 + $0x38] sm:$0xff] }
 0x44f   :  { %v8839_v38 = vpop.permute.xlu1 %4212 }
 0x450   :  { %v4275_v50 = vmul.f32 %v6653_v37, %v8839_v38  ;;  %v8943_v38 = vld [vmem:[%s9926_s8] ss:$0 sm:$0xff]  ;;  %v8986_v37 = vpop.f32.mrf.mxu2 }
 0x451   :  { %7191 = vset.pattern.permute.xlu2 %v7389_v33  ;;  %7188 = vset.pattern.permute.xlu1 %v7380_v19  ;;  %v8849_v49 = vpop.permute.xlu2 %4216 }
 0x452   :  { %4094 = vperm.xlu2 %7191, %v8678_v48   ;;  %3692 = vperm.xlu1 %7188, %v8678_v48  }
 0x453   :  { %7227 = vset.pattern.permute.xlu0 %v7381_v20 }
 0x454   :  { %3574 = vperm.xlu0 %7227, %v8986_v37  }
 0x458   :  { %v3266_v36 = vpop.permute.xlu1 %3265 }
 0x459   :  { %v3338_v60 = vmul.f32 %v3266_v36, %v3224_v42 }
 0x45a   :  { %7192 = vset.pattern.permute.xlu2 %v7386_v29  ;;  %7193 = vset.pattern.permute.xlu1 %v7388_v32  ;;  %v8882_v62 = vpop.permute.xlu2 %3270 }
 0x45b   :  { %v3357_v63 = vadd.f32 %v3338_v60, %v3205_v55  ;;  %4228 = vperm.xlu2 %7192, %v8678_v48   ;;  %4362 = vperm.xlu1 %7193, %v8678_v48   ;;  %v6654_v55 = vld [vmem:[%s9924_s5 + $0x450] sm:$0xff]  ;;  %v6691_v60 = vld [vmem:[%s9924_s5 + $0x578] sm:$0xff] }
 0x45c   :  { %v4276_v58 = vmul.f32 %v6654_v55, %v8849_v49  ;;  %v4543_v31 = vmul.f32 %v6691_v60, %v8792_v7  ;;  %7231 = vset.pattern.permute.xlu0 %v7389_v33 }
 0x45d   :  { %v3491_v1 = vadd.f32 %v3472_v3, %v3357_v63  ;;  %4110 = vperm.xlu0 %7231, %v8986_v37  }
 0x45f   :  { %v3625_v15 = vadd.f32 %v3606_v6, %v3491_v1  ;;  %v6692_v1 = vld [vmem:[%s9924_s5 + $0x580] sm:$0xff] }
 0x461   :  { %v3681_v11 = vpop.permute.xlu1 %3680 }
 0x462   :  { %v3740_v12 = vmul.f32 %v6578_v59, %v3681_v11  ;;  %v3551_v11 = vpop.permute.xlu0 %3550 }
 0x463   :  { %7195 = vset.pattern.permute.xlu2 %v7382_v21  ;;  %7194 = vset.pattern.permute.xlu1 %v7383_v25  ;;  %v8918_v27 = vpop.permute.xlu2 %3684 }
 0x464   :  { %v3759_v45 = vadd.f32 %v3740_v12, %v3625_v15  ;;  %4496 = vperm.xlu1 %7194, %v8678_v48   ;;  %3285 = vperm.xlu2 %7195, %v8720_v5   ;;  %v4160_v48 = vadd.f32 %v4141_v22, %v4026_v53 }
 0x465   :  { %7235 = vset.pattern.permute.xlu0 %v7382_v21 }
 0x466   :  { %v3893_v35 = vadd.f32 %v3874_v4, %v3759_v45  ;;  %v4294_v47 = vadd.f32 %v4275_v50, %v4160_v48  ;;  %v3206_v50 = vld [vmem:[%s9925_s6 + $0x30] sm:$0xff] }
 0x468   :  { %v4027_v42 = vadd.f32 %v4008_v40, %v3893_v35  ;;  %v4428_v63 = vadd.f32 %v4409_v46, %v4294_v47  ;;  %v3225_v40 = vld [vmem:[%s9924_s5 + $0x30] sm:$0xff]  ;;  %v6541_v35 = vld [vmem:[%s9924_s5 + $0xc8] sm:$0xff] }
 0x469   :  { %v4681_v52 = vpop.f32.mrf.mxu3  ;;  %v3339_v34 = vmul.f32 %v8882_v62, %v3225_v40  ;;  %v6560_v62 = vld [vmem:[%s9924_s5 + $0x160] sm:$0xff]  ;;  %v6542_v46 = vld [vmem:[%s9924_s5 + $0xd0] sm:$0xff] }
 0x46a   :  { %v4351_v39 = vpop.permute.xlu1 %4350  ;;  %v4161_v36 = vadd.f32 %v4142_v23, %v4027_v42  ;;  %v4682_v0 = vadd.f32 %v8943_v38, %v4681_v52  ;;  %v4562_v43 = vadd.f32 %v4543_v31, %v4428_v63  ;;  %v8984_v4 = vpop.permute.xlu0 %3952  ;;  %v3607_v60 = vmul.f32 %v6560_v62, %v3551_v11  ;;  %v6598_v63 = vld [vmem:[%s9924_s5 + $0x290] sm:$0xff]  ;;  %v6561_v31 = vld [vmem:[%s9924_s5 + $0x168] sm:$0xff] }
 0x46b   :  { %v4410_v41 = vmul.f32 %v6673_v57, %v4351_v39  ;;  %v9018_v42 = vpop.f32.mrf.mxu2  ;;  %v3358_v23 = vadd.f32 %v3339_v34, %v3206_v50 }
 0x46c   :  { %7196 = vset.pattern.permute.xlu1 %v7385_v28  ;;  %7198 = vset.pattern.permute.xlu2 %v7380_v19  ;;  %v8947_v56 = vpop.permute.xlu2 %4086  ;;  %v4295_v3 = vadd.f32 %v4276_v58, %v4161_v36  ;;  %v4730_v6 = vmax.f32 %v4682_v0, 0.0  ;;  %v4581_v15 = vmax.f32 %v4562_v43, 0.0  ;;  %v3207_v36 = vld [vmem:[%s9925_s6 + $0x38] sm:$0xff] }
 0x46d   :  { %3428 = vperm.xlu1 %7196, %v8720_v5   ;;  %3696 = vperm.xlu2 %7198, %v8720_v5   ;;  %v6579_v58 = vld [vmem:[%s9924_s5 + $0x1f8] sm:$0xff] }
 0x46e   :  { %v4429_v49 = vadd.f32 %v4410_v41, %v4295_v3  ;;  %3305 = vperm.xlu0 %7235, %v9018_v42  }
 0x471   :  { %v4683_v61 = vpop.f32.mrf.mxu3 }
 0x472   :  { %v4684_v2 = vadd.f32 %v8943_v38, %v4683_v61  ;;  %v8995_v22 = vpop.permute.xlu0 %4488  ;;  %v3741_v61 = vmul.f32 %v6579_v58, %v8918_v27 }
 0x473   :  { %v4485_v59 = vpop.permute.xlu1 %4484 }
 0x474   :  { %v4731_v8 = vmax.f32 %v4684_v2, 0.0  ;;  %v4544_v9 = vmul.f32 %v6692_v1, %v4485_v59 }
 0x475   :  { %7199 = vset.pattern.permute.xlu1 %v7387_v30  ;;  %7203 = vset.pattern.permute.xlu2 %v7388_v32  ;;  %v8968_v17 = vpop.permute.xlu2 %3420 }
 0x476   :  { %v4749_v7 = vpack.c.bf16 %v4731_v8, %v4730_v6  ;;  %v4563_v10 = vadd.f32 %v4544_v9, %v4429_v49  ;;  %3830 = vperm.xlu1 %7199, %v8720_v5   ;;  %4366 = vperm.xlu2 %7203, %v8720_v5   ;;  %v3474_v3 = vmul.f32 %v6542_v46, %v8968_v17  ;;  %v6580_v6 = vld [vmem:[%s9924_s5 + $0x200] sm:$0xff]  ;;  %v6617_v9 = vld [vmem:[%s9924_s5 + $0x328] sm:$0xff] }
 0x477   :  { %7238 = vset.pattern.permute.xlu0 %v7380_v19  ;;  %v4009_v11 = vmul.f32 %v6617_v9, %v8984_v4 }
 0x478   :  { %v4582_v44 = vmax.f32 %v4563_v10, 0.0  ;;  %6748 = vmatmul.msk.bf16.vlgmr.msrb.gmra.mxu1 %vm2533_vm0, %v4749_v7  ;;  %3712 = vperm.xlu0 %7238, %v9018_v42  }
 0x47a   :  { %v4598_v12 = vpack.c.bf16 %v4582_v44, %v4581_v15  ;;  %v3276_v48 = vpop.permute.xlu0 %3275  ;;  %v6599_v44 = vld [vmem:[%s9924_s5 + $0x298] sm:$0xff]  ;;  %v6636_v15 = vld [vmem:[%s9924_s5 + $0x3c0] sm:$0xff] }
 0x47b   :  { %v3340_v47 = vmul.f32 %v3276_v48, %v3226_v24  ;;  %v4143_v40 = vmul.f32 %v6636_v15, %v8947_v56 }
 0x47c   :  { %6724 = vmatmul.msk.bf16.gmra.mxu3 %vm2533_vm0, %v4598_v12  ;;  %v3417_v14 = vpop.permute.xlu1 %3416  ;;  %v6655_v12 = vld [vmem:[%s9924_s5 + $0x458] sm:$0xff] }
 0x47d   :  { %v3473_v52 = vmul.f32 %v6541_v35, %v3417_v14  ;;  %v3359_v0 = vadd.f32 %v3340_v47, %v3207_v36  ;;  %v6618_v14 = vld [vmem:[%s9924_s5 + $0x330] sm:$0xff]  ;;  %v6637_v35 = vld [vmem:[%s9924_s5 + $0x3c8] sm:$0xff]  ;;  %v6675_v36 = vld [vmem:[%s9924_s5 + $0x4f8] sm:$0xff] }
 0x47e   :  { %7201 = vset.pattern.permute.xlu1 %v7389_v33  ;;  %7204 = vset.pattern.permute.xlu2 %v7383_v25  ;;  %v8980_v18 = vpop.permute.xlu2 %3822 }
 0x47f   :  { %4098 = vperm.xlu1 %7201, %v8720_v5   ;;  %4500 = vperm.xlu2 %7204, %v8720_v5   ;;  %v3492_v55 = vadd.f32 %v3473_v52, %v3358_v23  ;;  %v3493_v43 = vadd.f32 %v3474_v3, %v3359_v0  ;;  %v3876_v4 = vmul.f32 %v6599_v44, %v8980_v18  ;;  %v6656_v18 = vld [vmem:[%s9924_s5 + $0x460] sm:$0xff]  ;;  %v6694_v0 = vld [vmem:[%s9924_s5 + $0x590] sm:$0xff] }
 0x480   :  { %7243 = vset.pattern.permute.xlu0 %v7388_v32 }
 0x481   :  { %v3626_v41 = vadd.f32 %v3607_v60, %v3492_v55  ;;  %4382 = vperm.xlu0 %7243, %v9018_v42  }
 0x482   :  { %v3689_v1 = vpop.permute.xlu0 %3688 }
 0x483   :  { %v3760_v49 = vadd.f32 %v3741_v61, %v3626_v41  ;;  %v3742_v10 = vmul.f32 %v6580_v6, %v3689_v1 }
 0x485   :  { %v3819_v45 = vpop.permute.xlu1 %3818 }
 0x486   :  { %v3875_v2 = vmul.f32 %v6598_v63, %v3819_v45  ;;  %v6674_v45 = vld [vmem:[%s9924_s5 + $0x4f0] sm:$0xff] }
 0x487   :  { %7207 = vset.pattern.permute.xlu1 %v7381_v20  ;;  %7206 = vset.pattern.permute.xlu2 %v7385_v28  ;;  %v8991_v54 = vpop.permute.xlu2 %4224 }
 0x488   :  { %3566 = vperm.xlu1 %7207, %v8804_v16   ;;  %3432 = vperm.xlu2 %7206, %v8804_v16   ;;  %v3894_v17 = vadd.f32 %v3875_v2, %v3760_v49  ;;  %v4278_v46 = vmul.f32 %v6656_v18, %v8991_v54 }
 0x489   :  { %7246 = vset.pattern.permute.xlu0 %v7385_v28 }
 0x48a   :  { %v4028_v13 = vadd.f32 %v4009_v11, %v3894_v17  ;;  %v4091_v34 = vpop.permute.xlu0 %4090 }
 0x48b   :  { %v4144_v56 = vmul.f32 %v6637_v35, %v4091_v34  ;;  %v3208_v35 = vld [vmem:[%s9925_s6 + $0x40] sm:$0xff] }
 0x48c   :  { %v4162_v23 = vadd.f32 %v4143_v40, %v4028_v13 }
 0x48e   :  { %v8999_v5 = vpop.permute.xlu1 %4220 }
 0x48f   :  { %v4277_v50 = vmul.f32 %v6655_v12, %v8999_v5 }
 0x490   :  { %7210 = vset.pattern.permute.xlu1 %v7384_v26  ;;  %7209 = vset.pattern.permute.xlu2 %v7387_v30 }
 0x491   :  { %3968 = vperm.xlu1 %7210, %v8804_v16   ;;  %3834 = vperm.xlu2 %7209, %v8804_v16   ;;  %v9011_v53 = vpop.permute.xlu2 %4358  ;;  %v4296_v55 = vadd.f32 %v4277_v50, %v4162_v23  ;;  %v6543_v50 = vld [vmem:[%s9924_s5 + $0xd8] sm:$0xff]  ;;  %v3228_v23 = vld [vmem:[%s9924_s5 + $0x48] sm:$0xff] }
 0x492   :  { %v4412_v63 = vmul.f32 %v6675_v36, %v9011_v53 }
 0x497   :  { %v4355_v39 = vpop.permute.xlu1 %4354 }
 0x498   :  { %v4411_v62 = vmul.f32 %v6674_v45, %v4355_v39  ;;  %v6693_v39 = vld [vmem:[%s9924_s5 + $0x588] sm:$0xff] }
 0x499   :  { %7214 = vset.pattern.permute.xlu1 %v7383_v25  ;;  %7212 = vset.pattern.permute.xlu2 %v7386_v29  ;;  %v4545_v41 = vmul.f32 %v6693_v39, %v8995_v22 }
 0x49a   :  { %4504 = vperm.xlu1 %7214, %v8804_v16   ;;  %4236 = vperm.xlu2 %7212, %v8804_v16   ;;  %v9037_v57 = vpop.permute.xlu2 %3558  ;;  %v4430_v58 = vadd.f32 %v4411_v62, %v4296_v55  ;;  %v6581_v62 = vld [vmem:[%s9924_s5 + $0x208] sm:$0xff] }
 0x49c   :  { %v4564_v1 = vadd.f32 %v4545_v41, %v4430_v58 }
 0x49e   :  { %v4583_v53 = vmax.f32 %v4564_v1, 0.0  ;;  %v6600_v1 = vld [vmem:[%s9924_s5 + $0x2a0] sm:$0xff] }
 0x4a0   :  { %v3555_v59 = vpop.permute.xlu1 %3554 }
 0x4a1   :  { %v3608_v8 = vmul.f32 %v6561_v31, %v3555_v59 }
 0x4a2   :  { %7215 = vset.pattern.permute.xlu1 %v7382_v21  ;;  %7213 = vset.pattern.permute.xlu2 %v7388_v32 }
 0x4a3   :  { %v3627_v27 = vadd.f32 %v3608_v8, %v3493_v43  ;;  %4370 = vperm.xlu2 %7213, %v8804_v16   ;;  %3295 = vperm.xlu1 %7215, %v8864_v51   ;;  %v9062_v7 = vpop.permute.xlu2 %3960 }
 0x4a5   :  { %v3761_v16 = vadd.f32 %v3742_v10, %v3627_v27  ;;  %v9122_v27 = vpop.f32.mrf.mxu2 }
 0x4a6   :  { %3448 = vperm.xlu0 %7246, %v9122_v27  }
 0x4a7   :  { %v3895_v52 = vadd.f32 %v3876_v4, %v3761_v16  ;;  %v3227_v4 = vld [vmem:[%s9924_s5 + $0x40] sm:$0xff] }
 0x4a9   :  { %v3957_v48 = vpop.permute.xlu1 %3956 }
 0x4aa   :  { %v4010_v24 = vmul.f32 %v6618_v14, %v3957_v48 }
 0x4ab   :  { %7217 = vset.pattern.permute.xlu2 %v7381_v20  ;;  %7218 = vset.pattern.permute.xlu1 %v7380_v19 }
 0x4ac   :  { %v4029_v47 = vadd.f32 %v4010_v24, %v3895_v52  ;;  %3570 = vperm.xlu2 %7217, %v8864_v51   ;;  %3704 = vperm.xlu1 %7218, %v8864_v51   ;;  %v9095_v5 = vpop.permute.xlu2 %4094  ;;  %v6562_v24 = vld [vmem:[%s9924_s5 + $0x170] sm:$0xff] }
 0x4ad   :  { %v9175_v36 = vpop.f32.mrf.mxu2 }
 0x4ae   :  { %v4163_v60 = vadd.f32 %v4144_v56, %v4029_v47  ;;  %7249 = vset.pattern.permute.xlu0 %v7387_v30  ;;  %v3057_v56 = vld [vmem:[%s9922_s2 + $0x48] sm:$0x7] }
 0x4af   :  { %3850 = vperm.xlu0 %7249, %v9122_v27   ;;  %v3096_v55 = vunpack.c.l.b16 %v3057_v56 }
 0x4b0   :  { %v4297_v3 = vadd.f32 %v4278_v46, %v4163_v60  ;;  %v6544_v46 = vld [vmem:[%s9924_s5 + $0xe0] sm:$0xff]  ;;  %v3609_v60 = vmul.f32 %v6562_v24, %v9037_v57 }
 0x4b1   :  { %v6676_v24 = vld [vmem:[%s9924_s5 + $0x500] sm:$0xff] }
 0x4b2   :  { %v4493_v31 = vpop.permute.xlu1 %4492  ;;  %v4431_v61 = vadd.f32 %v4412_v63, %v4297_v3  ;;  %v3209_v3 = vld [vmem:[%s9925_s6 + $0x48] sm:$0xff] }
 0x4b3   :  { %v4546_v2 = vmul.f32 %v6694_v0, %v4493_v31  ;;  %v3106_v0 = vpack.c.b16 %v3096_v55, %v3096_v55 }
 0x4b4   :  { %7220 = vset.pattern.permute.xlu2 %v7384_v26  ;;  %7221 = vset.pattern.permute.xlu1 %v7389_v33 }
 0x4b5   :  { %v4565_v54 = vadd.f32 %v4546_v2, %v4431_v61  ;;  %v9112_v59 = vpop.permute.xlu2 %4228  ;;  %3972 = vperm.xlu2 %7220, %v8864_v51   ;;  %4106 = vperm.xlu1 %7221, %v8864_v51  }
 0x4b6   :  { %6534 = vmatmul.msk.bf16.gmra.mxu2 %vm3107_vm2, %v3106_v0 }
 0x4b7   :  { %v4584_v43 = vmax.f32 %v4565_v54, 0.0  ;;  %7251 = vset.pattern.permute.xlu0 %v7389_v33 }
 0x4b8   :  { %4118 = vperm.xlu0 %7251, %v9122_v27  }
 0x4b9   :  { %v4686_v6 = vpop.f32.mrf.mxu3  ;;  %v4599_v49 = vpack.c.bf16 %v4584_v43, %v4583_v53  ;;  %v6563_v53 = vld [vmem:[%s9924_s5 + $0x178] sm:$0xff] }
 0x4ba   :  { %v4687_v9 = vadd.f32 %v8943_v38, %v4686_v6 }
 0x4bb   :  { %6725 = vmatmul.msk.bf16.gmra.mxu3 %vm2533_vm0, %v4599_v49  ;;  %v3281_v22 = vpop.permute.xlu1 %3280  ;;  %v6619_v49 = vld [vmem:[%s9924_s5 + $0x338] sm:$0xff] }
 0x4bc   :  { %v4732_v11 = vmax.f32 %v4687_v9, 0.0  ;;  %v3341_v40 = vmul.f32 %v3281_v22, %v3227_v4 }
 0x4bd   :  { %7224 = vset.pattern.permute.xlu2 %v7383_v25  ;;  %7222 = vset.pattern.permute.xlu1 %v7386_v29 }
 0x4be   :  { %v3286_v8 = vpop.permute.xlu2 %3285  ;;  %4508 = vperm.xlu2 %7224, %v8864_v51   ;;  %4240 = vperm.xlu1 %7222, %v8864_v51   ;;  %v3425_v51 = vpop.permute.xlu0 %3424  ;;  %v3360_v48 = vadd.f32 %v3341_v40, %v3208_v35  ;;  %v6657_v35 = vld [vmem:[%s9924_s5 + $0x468] sm:$0xff] }
 0x4bf   :  { %v3475_v18 = vmul.f32 %v6543_v50, %v3425_v51  ;;  %v3342_v58 = vmul.f32 %v3286_v8, %v3228_v23 }
 0x4c0   :  { %7257 = vset.pattern.permute.xlu0 %v7381_v20 }
 0x4c1   :  { %v4688_v17 = vpop.f32.mrf.mxu3  ;;  %v3494_v47 = vadd.f32 %v3475_v18, %v3360_v48  ;;  %3586 = vperm.xlu0 %7257, %v9175_v36   ;;  %v3361_v57 = vadd.f32 %v3342_v58, %v3209_v3  ;;  %v4279_v18 = vmul.f32 %v6657_v35, %v9112_v59  ;;  %v9245_v59 = vld [vmem:[%s9928_s10] ss:$0 sm:$0xff] }
 0x4c2   :  { %v4689_v10 = vadd.f32 %v8943_v38, %v4688_v17  ;;  %v6601_v17 = vld [vmem:[%s9924_s5 + $0x2a8] sm:$0xff] }
 0x4c3   :  { %v3628_v31 = vadd.f32 %v3609_v60, %v3494_v47  ;;  %v6695_v47 = vld [vmem:[%s9924_s5 + $0x598] sm:$0xff] }
 0x4c4   :  { %v4733_v44 = vmax.f32 %v4689_v10, 0.0  ;;  %v3693_v15 = vpop.permute.xlu1 %3692  ;;  %v4011_v10 = vmul.f32 %v6619_v49, %v9062_v7 }
 0x4c5   :  { %v3743_v63 = vmul.f32 %v6581_v62, %v3693_v15  ;;  %v6638_v15 = vld [vmem:[%s9924_s5 + $0x3d0] sm:$0xff] }
 0x4c6   :  { %v4750_v12 = vpack.c.bf16 %v4733_v44, %v4732_v11  ;;  %7225 = vset.pattern.permute.xlu2 %v7382_v21  ;;  %7226 = vset.pattern.permute.xlu1 %v7385_v28  ;;  %v3827_v45 = vpop.permute.xlu0 %3826  ;;  %v4145_v7 = vmul.f32 %v6638_v15, %v9095_v5  ;;  %v6639_v5 = vld [vmem:[%s9924_s5 + $0x3d8] sm:$0xff]  ;;  %v6658_v62 = vld [vmem:[%s9924_s5 + $0x470] sm:$0xff] }
 0x4c7   :  { %v9128_v16 = vpop.permute.xlu2 %3696  ;;  %3440 = vperm.xlu1 %7226, %v8986_v37   ;;  %3300 = vperm.xlu2 %7225, %v8986_v37   ;;  %v3762_v2 = vadd.f32 %v3743_v63, %v3628_v31  ;;  %v3877_v43 = vmul.f32 %v6600_v1, %v3827_v45  ;;  %v6677_v63 = vld [vmem:[%s9924_s5 + $0x508] sm:$0xff]  ;;  %v6696_v31 = vld [vmem:[%s9924_s5 + $0x5a0] sm:$0xff] }
 0x4c8   :  { %6749 = vmatmul.msk.bf16.gmra.mxu1 %vm2533_vm0, %v4750_v12 }
 0x4c9   :  { %7263 = vset.pattern.permute.xlu0 %v7388_v32  ;;  %v3896_v8 = vadd.f32 %v3877_v43, %v3762_v2 }
 0x4ca   :  { %4390 = vperm.xlu0 %7263, %v9175_v36  }
 0x4cb   :  { %v4030_v12 = vadd.f32 %v4011_v10, %v3896_v8 }
 0x4cd   :  { %v9135_v13 = vpop.permute.xlu1 %4362  ;;  %v4164_v50 = vadd.f32 %v4145_v7, %v4030_v12 }
 0x4ce   :  { %v3563_v39 = vpop.permute.xlu0 %3562 }
 0x4cf   :  { %7229 = vset.pattern.permute.xlu1 %v7387_v30  ;;  %7228 = vset.pattern.permute.xlu2 %v7380_v19  ;;  %v3610_v22 = vmul.f32 %v6563_v53, %v3563_v39  ;;  %v4298_v39 = vadd.f32 %v4279_v18, %v4164_v50 }
 0x4d0   :  { %v9139_v14 = vpop.permute.xlu2 %4366  ;;  %3842 = vperm.xlu1 %7229, %v8986_v37   ;;  %3708 = vperm.xlu2 %7228, %v8986_v37  }
 0x4d2   :  { %7265 = vset.pattern.permute.xlu0 %v7382_v21 }
 0x4d6   :  { %v9151_v34 = vpop.permute.xlu1 %4496  ;;  %v3965_v9 = vpop.permute.xlu0 %3964 }
 0x4d7   :  { %v4547_v3 = vmul.f32 %v6695_v47, %v9151_v34 }
 0x4d8   :  { %7230 = vset.pattern.permute.xlu1 %v7384_v26  ;;  %7232 = vset.pattern.permute.xlu2 %v7386_v29 }
 0x4d9   :  { %v9158_v52 = vpop.permute.xlu2 %4500  ;;  %3976 = vperm.xlu1 %7230, %v8986_v37   ;;  %4244 = vperm.xlu2 %7232, %v8986_v37  }
 0x4da   :  { %v4548_v34 = vmul.f32 %v6696_v31, %v9158_v52 }
 0x4de   :  { %v4233_v56 = vpop.permute.xlu0 %4232 }
 0x4df   :  { %v3429_v41 = vpop.permute.xlu1 %3428  ;;  %v4280_v0 = vmul.f32 %v6658_v62, %v4233_v56 }
 0x4e0   :  { %v3476_v61 = vmul.f32 %v6544_v46, %v3429_v41  ;;  %v4413_v46 = vmul.f32 %v6676_v24, %v9135_v13 }
 0x4e1   :  { %7234 = vset.pattern.permute.xlu1 %v7383_v25  ;;  %7233 = vset.pattern.permute.xlu2 %v7388_v32 }
 0x4e2   :  { %4512 = vperm.xlu1 %7234, %v8986_v37   ;;  %4378 = vperm.xlu2 %7233, %v8986_v37   ;;  %v9193_v54 = vpop.permute.xlu2 %3432  ;;  %v3495_v6 = vadd.f32 %v3476_v61, %v3361_v57  ;;  %v6582_v37 = vld [vmem:[%s9924_s5 + $0x210] sm:$0xff]  ;;  %v4432_v1 = vadd.f32 %v4413_v46, %v4298_v39  ;;  %v4414_v57 = vmul.f32 %v6677_v63, %v9139_v14 }
 0x4e3   :  { %v3744_v51 = vmul.f32 %v6582_v37, %v9128_v16  ;;  %v6620_v16 = vld [vmem:[%s9924_s5 + $0x340] sm:$0xff]  ;;  %v3229_v46 = vld [vmem:[%s9924_s5 + $0x50] sm:$0xff] }
 0x4e4   :  { %v3629_v11 = vadd.f32 %v3610_v22, %v3495_v6  ;;  %v4012_v23 = vmul.f32 %v6620_v16, %v3965_v9  ;;  %v4566_v43 = vadd.f32 %v4547_v3, %v4432_v1  ;;  %v6545_v1 = vld [vmem:[%s9924_s5 + $0xe8] sm:$0xff] }
 0x4e6   :  { %v3763_v40 = vadd.f32 %v3744_v51, %v3629_v11  ;;  %v4585_v9 = vmax.f32 %v4566_v43, 0.0  ;;  %v3291_v52 = vpop.permute.xlu0 %3290 }
 0x4e8   :  { %v3831_v44 = vpop.permute.xlu1 %3830 }
 0x4e9   :  { %v3878_v4 = vmul.f32 %v6601_v17, %v3831_v44 }
 0x4ea   :  { %7237 = vset.pattern.permute.xlu1 %v7381_v20  ;;  %7236 = vset.pattern.permute.xlu2 %v7385_v28 }
 0x4eb   :  { %3578 = vperm.xlu1 %7237, %v9018_v42   ;;  %3444 = vperm.xlu2 %7236, %v9018_v42   ;;  %v9218_v45 = vpop.permute.xlu2 %3834  ;;  %v3897_v48 = vadd.f32 %v3878_v4, %v3763_v40  ;;  %v9273_v4 = vpop.f32.mrf.mxu2 }
 0x4ec   :  { %3320 = vperm.xlu0 %7265, %v9273_v4  }
 0x4ed   :  { %v4031_v60 = vadd.f32 %v4012_v23, %v3897_v48 }
 0x4ee   :  { %v9285_v48 = vpop.permute.xlu0 %3700 }
 0x4f1   :  { %v4099_v55 = vpop.permute.xlu1 %4098 }
 0x4f2   :  { %v4146_v58 = vmul.f32 %v6639_v5, %v4099_v55 }
 0x4f3   :  { %7241 = vset.pattern.permute.xlu1 %v7389_v33  ;;  %7239 = vset.pattern.permute.xlu2 %v7387_v30 }
 0x4f4   :  { %v4165_v41 = vadd.f32 %v4146_v58, %v4031_v60  ;;  %v9253_v13 = vpop.permute.xlu2 %4236  ;;  %4114 = vperm.xlu1 %7241, %v9018_v42   ;;  %3846 = vperm.xlu2 %7239, %v9018_v42  }
 0x4f5   :  { %v4834_v61 = vpop.f32.mrf.mxu1  ;;  %7268 = vset.pattern.permute.xlu0 %v7380_v19 }
 0x4f6   :  { %v4299_v2 = vadd.f32 %v4280_v0, %v4165_v41  ;;  %v4835_v53 = vadd.f32 %v9245_v59, %v4834_v61  ;;  %3724 = vperm.xlu0 %7268, %v9273_v4   ;;  %v3343_v41 = vmul.f32 %v3291_v52, %v3229_v46  ;;  %v3210_v61 = vld [vmem:[%s9925_s6 + $0x50] sm:$0xff]  ;;  %v6621_v46 = vld [vmem:[%s9924_s5 + $0x348] sm:$0xff] }
 0x4f8   :  { %v4433_v6 = vadd.f32 %v4414_v57, %v4299_v2  ;;  %v6758_v49 = vmul.f32 -1.442695, %v4835_v53  ;;  %v9311_v57 = vpop.permute.xlu0 %4102 }
 0x4fa   :  { %v4567_v22 = vadd.f32 %v4548_v34, %v4433_v6  ;;  %7301 = vpow2.f32 %v6758_v49  ;;  %v9263_v8 = vpop.permute.xlu1 %3566  ;;  %v6564_v6 = vld [vmem:[%s9924_s5 + $0x180] sm:$0xff] }
 0x4fc   :  { %v4586_v37 = vmax.f32 %v4567_v22, 0.0  ;;  %7242 = vset.pattern.permute.xlu1 %v7386_v29  ;;  %7240 = vset.pattern.permute.xlu2 %v7384_v26  ;;  %v3362_v22 = vadd.f32 %v3343_v41, %v3210_v61 }
 0x4fd   :  { %v9267_v17 = vpop.permute.xlu2 %4370  ;;  %4248 = vperm.xlu1 %7242, %v9018_v42   ;;  %3980 = vperm.xlu2 %7240, %v9018_v42   ;;  %v4836_v14 = vpop.f32.mrf.mxu1 }
 0x4fe   :  { %v4837_v10 = vadd.f32 %v9245_v59, %v4836_v14  ;;  %v4600_v11 = vpack.c.bf16 %v4586_v37, %v4585_v9  ;;  %7271 = vset.pattern.permute.xlu0 %v7389_v33  ;;  %v3477_v9 = vmul.f32 %v6545_v1, %v9193_v54 }
 0x4ff   :  { %v4691_v44 = vpop.f32.mrf.mxu3  ;;  %4126 = vperm.xlu0 %7271, %v9273_v4  }
 0x500   :  { %v7302_v15 = vpop.eup %7301  ;;  %v6759_v12 = vmul.f32 -1.442695, %v4837_v10  ;;  %6726 = vmatmul.msk.bf16.gmra.mxu3 %vm2533_vm0, %v4600_v11  ;;  %v4692_v40 = vadd.f32 %v8943_v38, %v4691_v44  ;;  %v3230_v11 = vld [vmem:[%s9924_s5 + $0x58] sm:$0xff]  ;;  %v3611_v44 = vmul.f32 %v6564_v6, %v9263_v8 }
 0x501   :  { %v4940_v51 = vadd.f32 1.0, %v7302_v15  ;;  %v6583_v8 = vld [vmem:[%s9924_s5 + $0x218] sm:$0xff] }
 0x502   :  { %7303 = vpow2.f32 %v6759_v12  ;;  %v4734_v62 = vmax.f32 %v4692_v40, 0.0  ;;  %v3496_v12 = vadd.f32 %v3477_v9, %v3362_v22  ;;  %v6659_v9 = vld [vmem:[%s9924_s5 + $0x478] sm:$0xff] }
 0x503   :  { %7305 = vrcp.f32 %v4940_v51  ;;  %v9276_v7 = vpop.permute.xlu1 %3968  ;;  %v4970_v39 = vand.u32 2147483648, %v4940_v51  ;;  %v4968_v58 = vand.u32 2147483647, %v4940_v51  ;;  %vm4964_vm4 = vweird.f32 %v4940_v51 }
 0x505   :  { %7245 = vset.pattern.permute.xlu1 %v7382_v21  ;;  %7244 = vset.pattern.permute.xlu2 %v7383_v25  ;;  %v4971_v31 = vor.u32 1.1754944e-38, %v4970_v39  ;;  %vm4969_vm6 = vcmp.eq.f32.partialorder %v4968_v58, 8.507059e+37  ;;  %v6602_v39 = vld [vmem:[%s9924_s5 + $0x2b0] sm:$0xff] }
 0x506   :  { %v9281_v35 = vpop.permute.xlu2 %3570  ;;  %4516 = vperm.xlu2 %7244, %v9018_v42   ;;  %3310 = vperm.xlu1 %7245, %v9122_v27   ;;  %v3879_v41 = vmul.f32 %v6602_v39, %v9218_v45 }
 0x507   :  { %v4693_v16 = vpop.f32.mrf.mxu3  ;;  %7276 = vset.pattern.permute.xlu0 %v7385_v28 }
 0x508   :  { %v7304_v50 = vpop.eup %7303  ;;  %v4694_v24 = vadd.f32 %v8943_v38, %v4693_v16 }
 0x509   :  { %v7306_v5 = vpop.eup %7305  ;;  %v9288_v18 = vadd.f32 1.0, %v7304_v50  ;;  %v3211_v50 = vld [vmem:[%s9925_s6 + $0x58] sm:$0xff] }
 0x50a   :  { %v4960_v23 = vmul.f32 %v7306_v5, %v4940_v51  ;;  %v4735_v56 = vmax.f32 %v4694_v24, 0.0  ;;  %vm4965_vm3 = vweird.f32 %v7306_v5  ;;  %v3630_v24 = vadd.f32 %v3611_v44, %v3496_v12 }
 0x50b   :  { %7307 = vrcp.f32 %v9288_v18  ;;  %vm4966_vm5 = vmor %vm4964_vm4, %vm4965_vm3  ;;  %v4985_v37 = vand.u32 2147483648, %v9288_v18  ;;  %v4983_v10 = vand.u32 2147483647, %v9288_v18  ;;  %vm4979_vm9 = vweird.f32 %v9288_v18 }
 0x50c   :  { %v4961_v42 = vsub.f32 1.0, %v4960_v23  ;;  %v4751_v47 = vpack.c.bf16 %v4735_v56, %v4734_v62  ;;  %v9293_v55 = vpop.permute.xlu1 %4504  ;;  %v3437_v23 = vpop.permute.xlu0 %3436 }
 0x50d   :  { %v4986_v51 = vor.u32 1.1754944e-38, %v4985_v37  ;;  %vm4984_vm11 = vcmp.eq.f32.partialorder %v4983_v10, 8.507059e+37  ;;  %v9347_v56 = vpop.f32.mrf.mxu2  ;;  %v6641_v10 = vld [vmem:[%s9924_s5 + $0x3e8] sm:$0xff] }
 0x50e   :  { %v4962_v60 = vmul.f32 %v7306_v5, %v4961_v42  ;;  %6750 = vmatmul.msk.bf16.gmra.mxu1 %vm2533_vm0, %v4751_v47  ;;  %7247 = vset.pattern.permute.xlu2 %v7381_v20  ;;  %v3745_v42 = vmul.f32 %v6583_v8, %v9285_v48  ;;  %v6565_v48 = vld [vmem:[%s9924_s5 + $0x188] sm:$0xff] }
 0x50f   :  { %7248 = vset.pattern.permute.xlu1 %v7380_v19  ;;  %v9301_v63 = vpop.permute.xlu2 %3972  ;;  %3582 = vperm.xlu2 %7247, %v9122_v27   ;;  %v6697_v8 = vld [vmem:[%s9924_s5 + $0x5a8] sm:$0xff] }
 0x510   :  { %v4963_v0 = vadd.f32 %v7306_v5, %v4962_v60  ;;  %3716 = vperm.xlu1 %7248, %v9122_v27   ;;  %3460 = vperm.xlu0 %7276, %v9347_v56  }
 0x511   :  { %v7308_v3 = vpop.eup %7307 }
 0x512   :  { %v4967_v2 = vsel %vm4966_vm5, %v7306_v5, %v4963_v0  ;;  %v4975_v53 = vmul.f32 %v7308_v3, %v9288_v18  ;;  %vm4980_vm8 = vweird.f32 %v7308_v3  ;;  %v6546_v18 = vld [vmem:[%s9924_s5 + $0xf0] sm:$0xff]  ;;  %v3764_v0 = vadd.f32 %v3745_v42, %v3630_v24 }
 0x513   :  { %v4972_v43 = vsel %vm4969_vm6, %v4971_v31, %v4967_v2  ;;  %vm4981_vm10 = vmor %vm4979_vm9, %vm4980_vm8  ;;  %v3478_v58 = vmul.f32 %v6546_v18, %v3437_v23  ;;  %v4013_v31 = vmul.f32 %v6621_v46, %v9276_v7  ;;  %v6603_v7 = vld [vmem:[%s9924_s5 + $0x2b8] sm:$0xff]  ;;  %v4549_v23 = vmul.f32 %v6697_v8, %v9293_v55 }
 0x514   :  { %v5244_v34 = vmul.f32 27.0, %v4972_v43  ;;  %v4976_v49 = vsub.f32 1.0, %v4975_v53  ;;  %v3898_v2 = vadd.f32 %v3879_v41, %v3764_v0  ;;  %v3612_v53 = vmul.f32 %v6565_v48, %v9281_v35 }
 0x515   :  { %v3296_v14 = vpop.permute.xlu1 %3295 }
 0x516   :  { %5264 = vst.msk [vmem:[%s9929_s11] sm:$0xff] %vm5263_vm7, %v5244_v34  ;;  %v4977_v52 = vmul.f32 %v7308_v3, %v4976_v49  ;;  %v3344_v40 = vmul.f32 %v3296_v14, %v3230_v11  ;;  %v6640_v34 = vld [vmem:[%s9924_s5 + $0x3e0] sm:$0xff]  ;;  %v4032_v45 = vadd.f32 %v4013_v31, %v3898_v2  ;;  %v3839_v49 = vpop.permute.xlu0 %3838 }
 0x517   :  { %7252 = vset.pattern.permute.xlu2 %v7386_v29  ;;  %v3880_v37 = vmul.f32 %v6603_v7, %v3839_v49 }
 0x518   :  { %v4978_v54 = vadd.f32 %v7308_v3, %v4977_v52  ;;  %7250 = vset.pattern.permute.xlu1 %v7384_v26  ;;  %v9333_v15 = vpop.permute.xlu2 %4508  ;;  %4252 = vperm.xlu2 %7252, %v9122_v27   ;;  %v3363_v47 = vadd.f32 %v3344_v40, %v3211_v50  ;;  %v6622_v52 = vld [vmem:[%s9924_s5 + $0x350] sm:$0xff] }
 0x519   :  { %3984 = vperm.xlu1 %7250, %v9122_v27   ;;  %7279 = vset.pattern.permute.xlu0 %v7387_v30 }
 0x51a   :  { %v4982_v16 = vsel %vm4981_vm10, %v7308_v3, %v4978_v54  ;;  %v6584_v3 = vld [vmem:[%s9924_s5 + $0x220] sm:$0xff]  ;;  %v3497_v61 = vadd.f32 %v3478_v58, %v3363_v47  ;;  %3862 = vperm.xlu0 %7279, %v9347_v56   ;;  %v6678_v54 = vld [vmem:[%s9924_s5 + $0x510] sm:$0xff] }
 0x51b   :  { %v4987_v5 = vsel %vm4984_vm11, %v4986_v51, %v4982_v16  ;;  %v4014_v51 = vmul.f32 %v6622_v52, %v9301_v63  ;;  %v4415_v16 = vmul.f32 %v6678_v54, %v9267_v17  ;;  %v6679_v63 = vld [vmem:[%s9924_s5 + $0x518] sm:$0xff]  ;;  %v6698_v47 = vld [vmem:[%s9924_s5 + $0x5b0] sm:$0xff] }
 0x51c   :  { %v5245_v62 = vmul.f32 27.0, %v4987_v5  ;;  %v3631_v6 = vadd.f32 %v3612_v53, %v3497_v61 }
 0x51e   :  { %5265 = vst.msk [vmem:[%s9929_s11 + $0x8] sm:$0xff] %vm5263_vm7, %v5245_v62  ;;  %v3705_v60 = vpop.permute.xlu1 %3704  ;;  %v4375_v24 = vpop.permute.xlu0 %4374 }
 0x51f   :  { %v3746_v43 = vmul.f32 %v6584_v3, %v3705_v60  ;;  %v4416_v17 = vmul.f32 %v6679_v63, %v4375_v24  ;;  %v4550_v60 = vmul.f32 %v6698_v47, %v9333_v15  ;;  %v6548_v24 = vld [vmem:[%s9924_s5 + $0x100] sm:$0xff] }
 0x520   :  { %7253 = vset.pattern.permute.xlu2 %v7388_v32 }
 0x521   :  { %7254 = vset.pattern.permute.xlu1 %v7383_v25  ;;  %4386 = vperm.xlu2 %7253, %v9122_v27   ;;  %v9372_v1 = vpop.permute.xlu2 %3300  ;;  %v3765_v22 = vadd.f32 %v3746_v43, %v3631_v6 }
 0x522   :  { %4520 = vperm.xlu1 %7254, %v9122_v27   ;;  %v4147_v27 = vmul.f32 %v6640_v34, %v9311_v57  ;;  %v4281_v57 = vmul.f32 %v6659_v9, %v9253_v13  ;;  %v6660_v13 = vld [vmem:[%s9924_s5 + $0x480] sm:$0xff]  ;;  %7283 = vset.pattern.permute.xlu0 %v7388_v32 }
 0x523   :  { %v3899_v11 = vadd.f32 %v3880_v37, %v3765_v22  ;;  %4398 = vperm.xlu0 %7283, %v9347_v56  }
 0x524   :  { %v4166_v14 = vadd.f32 %v4147_v27, %v4032_v45 }
 0x525   :  { %v4033_v50 = vadd.f32 %v4014_v51, %v3899_v11  ;;  %v3212_v51 = vld [vmem:[%s9925_s6 + $0x60] sm:$0xff] }
 0x526   :  { %v4300_v12 = vadd.f32 %v4281_v57, %v4166_v14  ;;  %v3575_v2 = vpop.permute.xlu0 %3574  ;;  %v6547_v57 = vld [vmem:[%s9924_s5 + $0xf8] sm:$0xff] }
 0x527   :  { %v4107_v35 = vpop.permute.xlu1 %4106 }
 0x528   :  { %v4148_v40 = vmul.f32 %v6641_v10, %v4107_v35  ;;  %v4434_v18 = vadd.f32 %v4415_v16, %v4300_v12 }
 0x529   :  { %7255 = vset.pattern.permute.xlu2 %v7382_v21 }
 0x52a   :  { %7256 = vset.pattern.permute.xlu1 %v7385_v28  ;;  %3315 = vperm.xlu2 %7255, %v9175_v36   ;;  %v9399_v44 = vpop.permute.xlu2 %3708  ;;  %v4167_v62 = vadd.f32 %v4148_v40, %v4033_v50  ;;  %v4568_v46 = vadd.f32 %v4549_v23, %v4434_v18 }
 0x52b   :  { %3452 = vperm.xlu1 %7256, %v9175_v36   ;;  %7287 = vset.pattern.permute.xlu0 %v7381_v20 }
 0x52c   :  { %v4587_v48 = vmax.f32 %v4568_v46, 0.0  ;;  %v6585_v46 = vld [vmem:[%s9924_s5 + $0x228] sm:$0xff] }
 0x52e   :  { %v9447_v14 = vpop.permute.xlu0 %4110 }
 0x530   :  { %v4241_v5 = vpop.permute.xlu1 %4240 }
 0x531   :  { %v4282_v42 = vmul.f32 %v6660_v13, %v4241_v5  ;;  %v3232_v13 = vld [vmem:[%s9924_s5 + $0x68] sm:$0xff] }
 0x532   :  { %7258 = vset.pattern.permute.xlu2 %v7380_v19 }
 0x533   :  { %v4301_v39 = vadd.f32 %v4282_v42, %v4167_v62  ;;  %7259 = vset.pattern.permute.xlu1 %v7387_v30  ;;  %3720 = vperm.xlu2 %7258, %v9175_v36   ;;  %v9426_v58 = vpop.permute.xlu2 %4244  ;;  %v3213_v62 = vld [vmem:[%s9925_s6 + $0x68] sm:$0xff] }
 0x534   :  { %3854 = vperm.xlu1 %7259, %v9175_v36  }
 0x535   :  { %v4435_v55 = vadd.f32 %v4416_v17, %v4301_v39 }
 0x536   :  { %v3306_v63 = vpop.permute.xlu0 %3305 }
 0x537   :  { %v4569_v0 = vadd.f32 %v4550_v60, %v4435_v55  ;;  %v3346_v5 = vmul.f32 %v3306_v63, %v3232_v13  ;;  %v6604_v60 = vld [vmem:[%s9924_s5 + $0x2c0] sm:$0xff] }
 0x539   :  { %v4588_v3 = vmax.f32 %v4569_v0, 0.0  ;;  %v3441_v41 = vpop.permute.xlu1 %3440  ;;  %v3365_v0 = vadd.f32 %v3346_v5, %v3213_v62  ;;  %v9517_v63 = vpop.f32.mrf.mxu2 }
 0x53a   :  { %v3479_v40 = vmul.f32 %v6547_v57, %v3441_v41  ;;  %v6642_v57 = vld [vmem:[%s9924_s5 + $0x3f0] sm:$0xff]  ;;  %3598 = vperm.xlu0 %7287, %v9517_v63  }
 0x53b   :  { %7260 = vset.pattern.permute.xlu2 %v7384_v26  ;;  %v4601_v31 = vpack.c.bf16 %v4588_v3, %v4587_v48  ;;  %v6567_v3 = vld [vmem:[%s9924_s5 + $0x198] sm:$0xff] }
 0x53c   :  { %7261 = vset.pattern.permute.xlu1 %v7389_v33  ;;  %3988 = vperm.xlu2 %7260, %v9175_v36   ;;  %v9434_v61 = vpop.permute.xlu2 %4378 }
 0x53d   :  { %4122 = vperm.xlu1 %7261, %v9175_v36   ;;  %6727 = vmatmul.msk.bf16.gmra.mxu3 %vm2533_vm0, %v4601_v31  ;;  %v3747_v31 = vmul.f32 %v6585_v46, %v9399_v44 }
 0x53e   :  { %v4696_v15 = vpop.f32.mrf.mxu3  ;;  %v3713_v44 = vpop.permute.xlu0 %3712 }
 0x53f   :  { %v4697_v43 = vadd.f32 %v8943_v38, %v4696_v15 }
 0x541   :  { %v4736_v27 = vmax.f32 %v4697_v43, 0.0 }
 0x542   :  { %v9436_v53 = vpop.permute.xlu1 %3842  ;;  %7292 = vset.pattern.permute.xlu0 %v7386_v29 }
 0x543   :  { %v3881_v15 = vmul.f32 %v6604_v60, %v9436_v53  ;;  %4268 = vperm.xlu0 %7292, %v9517_v63  }
 0x544   :  { %7264 = vset.pattern.permute.xlu2 %v7383_v25 }
 0x545   :  { %7262 = vset.pattern.permute.xlu1 %v7386_v29  ;;  %v4839_v34 = vpop.f32.mrf.mxu1  ;;  %4524 = vperm.xlu2 %7264, %v9175_v36   ;;  %v3445_v22 = vpop.permute.xlu2 %3444 }
 0x546   :  { %v4840_v45 = vadd.f32 %v9245_v59, %v4839_v34  ;;  %4256 = vperm.xlu1 %7262, %v9175_v36   ;;  %v4698_v6 = vpop.f32.mrf.mxu3  ;;  %v3231_v36 = vld [vmem:[%s9924_s5 + $0x60] sm:$0xff]  ;;  %v3480_v17 = vmul.f32 %v6548_v24, %v3445_v22  ;;  %v6623_v34 = vld [vmem:[%s9924_s5 + $0x358] sm:$0xff]  ;;  %v4149_v24 = vmul.f32 %v6642_v57, %v9447_v14  ;;  %v6661_v14 = vld [vmem:[%s9924_s5 + $0x488] sm:$0xff] }
 0x547   :  { %v4699_v7 = vadd.f32 %v8943_v38, %v4698_v6  ;;  %v3345_v54 = vmul.f32 %v9372_v1, %v3231_v36  ;;  %v6566_v1 = vld [vmem:[%s9924_s5 + $0x190] sm:$0xff] }
 0x548   :  { %v6760_v49 = vmul.f32 -1.442695, %v4840_v45  ;;  %v3613_v47 = vmul.f32 %v6566_v1, %v3575_v2  ;;  %v3499_v43 = vadd.f32 %v3480_v17, %v3365_v0 }
 0x549   :  { %v4737_v35 = vmax.f32 %v4699_v7, 0.0  ;;  %v3364_v50 = vadd.f32 %v3345_v54, %v3212_v51  ;;  %v6586_v7 = vld [vmem:[%s9924_s5 + $0x230] sm:$0xff]  ;;  %v6605_v51 = vld [vmem:[%s9924_s5 + $0x2c8] sm:$0xff] }
 0x54a   :  { %7309 = vpow2.f32 %v6760_v49 }
 0x54b   :  { %v4752_v9 = vpack.c.bf16 %v4737_v35, %v4736_v27  ;;  %v9445_v37 = vpop.permute.xlu1 %3976  ;;  %v3498_v18 = vadd.f32 %v3479_v40, %v3364_v50  ;;  %7295 = vset.pattern.permute.xlu0 %v7383_v25 }
 0x54d   :  { %v4841_v52 = vpop.f32.mrf.mxu1  ;;  %6751 = vmatmul.msk.bf16.gmra.mxu1 %vm2533_vm0, %v4752_v9  ;;  %7266 = vset.pattern.permute.xlu2 %v7385_v28  ;;  %v3632_v48 = vadd.f32 %v3613_v47, %v3498_v18  ;;  %v4015_v9 = vmul.f32 %v6623_v34, %v9445_v37  ;;  %v6624_v47 = vld [vmem:[%s9924_s5 + $0x360] sm:$0xff] }
 0x54e   :  { %v4842_v38 = vadd.f32 %v9245_v59, %v4841_v52  ;;  %7267 = vset.pattern.permute.xlu1 %v7381_v20  ;;  %3456 = vperm.xlu2 %7266, %v9273_v4   ;;  %v9465_v8 = vpop.permute.xlu2 %3846 }
 0x54f   :  { %3590 = vperm.xlu1 %7267, %v9273_v4   ;;  %v3766_v35 = vadd.f32 %v3747_v31, %v3632_v48  ;;  %v3882_v62 = vmul.f32 %v6605_v51, %v9465_v8  ;;  %v6643_v8 = vld [vmem:[%s9924_s5 + $0x3f8] sm:$0xff]  ;;  %v4283_v48 = vmul.f32 %v6661_v14, %v9426_v58  ;;  %v6662_v58 = vld [vmem:[%s9924_s5 + $0x490] sm:$0xff] }
 0x550   :  { %v7310_v10 = vpop.eup %7309  ;;  %v6761_v11 = vmul.f32 -1.442695, %v4842_v38  ;;  %v3748_v38 = vmul.f32 %v6586_v7, %v3713_v44  ;;  %v6681_v7 = vld [vmem:[%s9924_s5 + $0x528] sm:$0xff] }
 0x551   :  { %v4942_v12 = vadd.f32 1.0, %v7310_v10 }
 0x552   :  { %7311 = vpow2.f32 %v6761_v11  ;;  %v3900_v11 = vadd.f32 %v3881_v15, %v3766_v35 }
 0x553   :  { %7313 = vrcp.f32 %v4942_v12  ;;  %v5000_v2 = vand.u32 2147483648, %v4942_v12  ;;  %v4998_v27 = vand.u32 2147483647, %v4942_v12  ;;  %vm4994_vm13 = vweird.f32 %v4942_v12 }
 0x554   :  { %v9470_v16 = vpop.permute.xlu1 %4512  ;;  %v4034_v13 = vadd.f32 %v4015_v9, %v3900_v11 }
 0x555   :  { %v5001_v10 = vor.u32 1.1754944e-38, %v5000_v2  ;;  %vm4999_vm15 = vcmp.eq.f32.partialorder %v4998_v27, 8.507059e+37 }
 0x556   :  { %7269 = vset.pattern.permute.xlu2 %v7387_v30  ;;  %v4168_v46 = vadd.f32 %v4149_v24, %v4034_v13 }
 0x557   :  { %7270 = vset.pattern.permute.xlu1 %v7384_v26  ;;  %3858 = vperm.xlu2 %7269, %v9273_v4   ;;  %v3981_v45 = vpop.permute.xlu2 %3980 }
 0x558   :  { %v7312_v23 = vpop.eup %7311  ;;  %3992 = vperm.xlu1 %7270, %v9273_v4   ;;  %v4302_v2 = vadd.f32 %v4283_v48, %v4168_v46 }
 0x559   :  { %v7314_v42 = vpop.eup %7313  ;;  %v9485_v39 = vadd.f32 1.0, %v7312_v23 }
 0x55a   :  { %v4990_v55 = vmul.f32 %v7314_v42, %v4942_v12  ;;  %vm4995_vm12 = vweird.f32 %v7314_v42 }
 0x55b   :  { %7315 = vrcp.f32 %v9485_v39  ;;  %vm4996_vm14 = vmor %vm4994_vm13, %vm4995_vm12  ;;  %v5015_v5 = vand.u32 2147483648, %v9485_v39  ;;  %v5013_v23 = vand.u32 2147483647, %v9485_v39  ;;  %vm5009_vm2 = vweird.f32 %v9485_v39 }
 0x55c   :  { %v4991_v41 = vsub.f32 1.0, %v4990_v55 }
 0x55d   :  { %v3579_v6 = vpop.permute.xlu1 %3578  ;;  %v5016_v0 = vor.u32 1.1754944e-38, %v5015_v5  ;;  %vm5014_vm4 = vcmp.eq.f32.partialorder %v5013_v23, 8.507059e+37 }
 0x55e   :  { %v4992_v49 = vmul.f32 %v7314_v42, %v4991_v41  ;;  %v3614_v22 = vmul.f32 %v6567_v3, %v3579_v6  ;;  %v4016_v41 = vmul.f32 %v6624_v47, %v3981_v45  ;;  %v3198_v6 = vpop.f32.mrf.mxu2 }
 0x55f   :  { %7272 = vset.pattern.permute.xlu2 %v7386_v29 }
 0x560   :  { %v4993_v53 = vadd.f32 %v7314_v42, %v4992_v49  ;;  %v3633_v52 = vadd.f32 %v3614_v22, %v3499_v43  ;;  %7274 = vset.pattern.permute.xlu1 %v7383_v25  ;;  %4260 = vperm.xlu2 %7272, %v9273_v4   ;;  %v4517_v17 = vpop.permute.xlu2 %4516  ;;  %v4383_v49 = vpop.permute.xlu0 %4382 }
 0x561   :  { %v7316_v36 = vpop.eup %7315  ;;  %4528 = vperm.xlu1 %7274, %v9273_v4  }
 0x562   :  { %v4997_v54 = vsel %vm4996_vm14, %v7314_v42, %v4993_v53  ;;  %v5005_v37 = vmul.f32 %v7316_v36, %v9485_v39  ;;  %v3767_v1 = vadd.f32 %v3748_v38, %v3633_v52  ;;  %vm5010_vm1 = vweird.f32 %v7316_v36  ;;  %v6680_v39 = vld [vmem:[%s9924_s5 + $0x520] sm:$0xff] }
 0x563   :  { %v5002_v12 = vsel %vm4999_vm15, %v5001_v10, %v4997_v54  ;;  %vm5011_vm3 = vmor %vm5009_vm2, %vm5010_vm1  ;;  %v4417_v45 = vmul.f32 %v6680_v39, %v9434_v61  ;;  %v6700_v61 = vld [vmem:[%s9924_s5 + $0x5c0] sm:$0xff]  ;;  %v4418_v52 = vmul.f32 %v6681_v7, %v4383_v49 }
 0x564   :  { %v5246_v40 = vmul.f32 27.0, %v5002_v12  ;;  %v5006_v50 = vsub.f32 1.0, %v5005_v37  ;;  %v3901_v55 = vadd.f32 %v3882_v62, %v3767_v1 }
 0x565   :  { %v4436_v22 = vadd.f32 %v4417_v45, %v4302_v2  ;;  %v6568_v2 = vld [vmem:[%s9924_s5 + $0x1a0] sm:$0xff] }
 0x566   :  { %5266 = vst.msk [vmem:[%s9929_s11 + $0x10] sm:$0xff] %vm5263_vm7, %v5246_v40  ;;  %v5007_v18 = vmul.f32 %v7316_v36, %v5006_v50  ;;  %v4115_v42 = vpop.permute.xlu1 %4114  ;;  %v4035_v43 = vadd.f32 %v4016_v41, %v3901_v55  ;;  %v9589_v50 = vld [vmem:[%s9926_s8] ss:$0 sm:$0xff]  ;;  %v3214_v41 = vld [vmem:[%s9925_s6 + $0x70] sm:$0xff] }
 0x567   :  { %v4150_v34 = vmul.f32 %v6643_v8, %v4115_v42 }
 0x568   :  { %v5008_v60 = vadd.f32 %v7316_v36, %v5007_v18  ;;  %7273 = vset.pattern.permute.xlu2 %v7388_v32  ;;  %v3449_v18 = vpop.permute.xlu0 %3448 }
 0x569   :  { %7275 = vset.pattern.permute.xlu1 %v7382_v21  ;;  %4394 = vperm.xlu2 %7273, %v9273_v4   ;;  %v6699_v4 = vld [vmem:[%s9924_s5 + $0x5b8] sm:$0xff]  ;;  %v4169_v44 = vadd.f32 %v4150_v34, %v4035_v43  ;;  %v9566_v9 = vpop.permute.xlu2 %3582 }
 0x56a   :  { %v5012_v3 = vsel %vm5011_vm3, %v7316_v36, %v5008_v60  ;;  %3325 = vperm.xlu1 %7275, %v9347_v56   ;;  %v4551_v35 = vmul.f32 %v6699_v4, %v9470_v16  ;;  %v4552_v16 = vmul.f32 %v6700_v61, %v4517_v17  ;;  %v6587_v43 = vld [vmem:[%s9924_s5 + $0x238] sm:$0xff]  ;;  %v3615_v7 = vmul.f32 %v6568_v2, %v9566_v9  ;;  %v6606_v9 = vld [vmem:[%s9924_s5 + $0x2d0] sm:$0xff] }
 0x56b   :  { %v5017_v31 = vsel %vm5014_vm4, %v5016_v0, %v5012_v3 }
 0x56c   :  { %v5247_v15 = vmul.f32 27.0, %v5017_v31  ;;  %v4570_v38 = vadd.f32 %v4551_v35, %v4436_v22 }
 0x56e   :  { %5267 = vst.msk [vmem:[%s9929_s11 + $0x18] sm:$0xff] %vm5263_vm7, %v5247_v15  ;;  %v4589_v11 = vmax.f32 %v4570_v38, 0.0 }
 0x56f   :  { %v4249_v27 = vpop.permute.xlu1 %4248 }
 0x570   :  { %v4284_v53 = vmul.f32 %v6662_v58, %v4249_v27  ;;  %v3851_v55 = vpop.permute.xlu0 %3850 }
 0x571   :  { %7277 = vset.pattern.permute.xlu2 %v7381_v20 }
 0x572   :  { %v4303_v36 = vadd.f32 %v4284_v53, %v4169_v44  ;;  %7278 = vset.pattern.permute.xlu1 %v7380_v19  ;;  %3594 = vperm.xlu2 %7277, %v9347_v56   ;;  %v9574_v12 = vpop.permute.xlu2 %4252  ;;  %v3215_v53 = vld [vmem:[%s9925_s6 + $0x78] sm:$0xff] }
 0x573   :  { %3728 = vperm.xlu1 %7278, %v9347_v56  }
 0x574   :  { %v4437_v10 = vadd.f32 %v4418_v52, %v4303_v36  ;;  %v6625_v52 = vld [vmem:[%s9924_s5 + $0x368] sm:$0xff] }
 0x576   :  { %v4571_v57 = vadd.f32 %v4552_v16, %v4437_v10 }
 0x578   :  { %v4590_v54 = vmax.f32 %v4571_v57, 0.0  ;;  %v3311_v37 = vpop.permute.xlu1 %3310  ;;  %v4119_v6 = vpop.permute.xlu0 %4118 }
 0x57a   :  { %7280 = vset.pattern.permute.xlu2 %v7384_v26  ;;  %v4602_v20 = vpack.c.bf16 %v4590_v54, %v4589_v11 }
 0x57b   :  { %7281 = vset.pattern.permute.xlu1 %v7389_v33  ;;  %3996 = vperm.xlu2 %7280, %v9347_v56   ;;  %v9583_v13 = vpop.permute.xlu2 %4386 }
 0x57c   :  { %4130 = vperm.xlu1 %7281, %v9347_v56   ;;  %6728 = vmatmul.msk.bf16.gmra.mxu3 %vm2533_vm0, %v4602_v20  ;;  %v3883_v20 = vmul.f32 %v6606_v9, %v3851_v55 }
 0x582   :  { %v3717_v51 = vpop.permute.xlu1 %3716 }
 0x583   :  { %v4701_v40 = vpop.f32.mrf.mxu3  ;;  %7284 = vset.pattern.permute.xlu2 %v7383_v25  ;;  %v3749_v49 = vmul.f32 %v6587_v43, %v3717_v51  ;;  %v6569_v51 = vld [vmem:[%s9924_s5 + $0x1a8] sm:$0xff] }
 0x584   :  { %7282 = vset.pattern.permute.xlu1 %v7386_v29  ;;  %4532 = vperm.xlu2 %7284, %v9347_v56   ;;  %v4702_v1 = vadd.f32 %v9589_v50, %v4701_v40  ;;  %v3316_v14 = vpop.permute.xlu2 %3315  ;;  %v6645_v43 = vld [vmem:[%s9924_s5 + $0x408] sm:$0xff] }
 0x585   :  { %4264 = vperm.xlu1 %7282, %v9347_v56  }
 0x586   :  { %v4738_v56 = vmax.f32 %v4702_v1, 0.0 }
 0x58b   :  { %v9592_v24 = vpop.permute.xlu1 %3984  ;;  %v4703_v5 = vpop.f32.mrf.mxu3 }
 0x58c   :  { %v4704_v23 = vadd.f32 %v9589_v50, %v4703_v5  ;;  %v4844_v29 = vpop.f32.mrf.mxu1  ;;  %7285 = vset.pattern.permute.xlu2 %v7382_v21  ;;  %v3233_v21 = vld [vmem:[%s9924_s5 + $0x70] sm:$0xff]  ;;  %v4017_v40 = vmul.f32 %v6625_v52, %v9592_v24  ;;  %v6644_v24 = vld [vmem:[%s9924_s5 + $0x400] sm:$0xff] }
 0x58d   :  { %v4845_v62 = vadd.f32 %v9245_v59, %v4844_v29  ;;  %7286 = vset.pattern.permute.xlu1 %v7385_v28  ;;  %3330 = vperm.xlu2 %7285, %v9517_v63   ;;  %v3347_v48 = vmul.f32 %v3311_v37, %v3233_v21  ;;  %v9614_v39 = vpop.permute.xlu2 %3720 }
 0x58e   :  { %v4739_v42 = vmax.f32 %v4704_v23, 0.0  ;;  %3464 = vperm.xlu1 %7286, %v9517_v63  }
 0x58f   :  { %v6762_v47 = vmul.f32 -1.442695, %v4845_v62 }
 0x590   :  { %v4753_v17 = vpack.c.bf16 %v4739_v42, %v4738_v56 }
 0x591   :  { %7317 = vpow2.f32 %v6762_v47  ;;  %v6588_v47 = vld [vmem:[%s9924_s5 + $0x240] sm:$0xff] }
 0x592   :  { %6752 = vmatmul.msk.bf16.gmra.mxu1 %vm2533_vm0, %v4753_v17 }
 0x594   :  { %v4846_v46 = vpop.f32.mrf.mxu1  ;;  %v9601_v60 = vpop.permute.xlu1 %4520 }
 0x595   :  { %v4847_v28 = vadd.f32 %v9245_v59, %v4846_v46  ;;  %7288 = vset.pattern.permute.xlu2 %v7380_v19  ;;  %v6549_v19 = vld [vmem:[%s9924_s5 + $0x108] sm:$0xff] }
 0x596   :  { %7289 = vset.pattern.permute.xlu1 %v7387_v30  ;;  %3732 = vperm.xlu2 %7288, %v9517_v63   ;;  %v3366_v30 = vadd.f32 %v3347_v48, %v3214_v41  ;;  %v3481_v31 = vmul.f32 %v6549_v19, %v3449_v18  ;;  %v9639_v35 = vpop.permute.xlu2 %3988  ;;  %v6663_v19 = vld [vmem:[%s9924_s5 + $0x498] sm:$0xff] }
 0x597   :  { %v7318_v0 = vpop.eup %7317  ;;  %v6763_v8 = vmul.f32 -1.442695, %v4847_v28  ;;  %3866 = vperm.xlu1 %7289, %v9517_v63  }
 0x598   :  { %v4944_v3 = vadd.f32 1.0, %v7318_v0  ;;  %v3500_v4 = vadd.f32 %v3481_v31, %v3366_v30  ;;  %v4151_v0 = vmul.f32 %v6644_v24, %v4119_v6 }
 0x599   :  { %7319 = vpow2.f32 %v6763_v8  ;;  %v3750_v8 = vmul.f32 %v6588_v47, %v9614_v39  ;;  %v6626_v39 = vld [vmem:[%s9924_s5 + $0x370] sm:$0xff] }
 0x59a   :  { %7321 = vrcp.f32 %v4944_v3  ;;  %v3634_v44 = vadd.f32 %v3615_v7, %v3500_v4  ;;  %v5030_v61 = vand.u32 2147483648, %v4944_v3  ;;  %v5028_v38 = vand.u32 2147483647, %v4944_v3 }
 0x59b   :  { %vm5024_vm6 = vweird.f32 %v4944_v3 }
 0x59c   :  { %v3768_v10 = vadd.f32 %v3749_v49, %v3634_v44  ;;  %v5031_v1 = vor.u32 1.1754944e-38, %v5030_v61  ;;  %vm5029_vm9 = vcmp.eq.f32.partialorder %v5028_v38, 8.507059e+37  ;;  %v6701_v49 = vld [vmem:[%s9924_s5 + $0x5c8] sm:$0xff]  ;;  %v6683_v44 = vld [vmem:[%s9924_s5 + $0x538] sm:$0xff]  ;;  %v6702_v38 = vld [vmem:[%s9924_s5 + $0x5d0] sm:$0xff] }
 0x59d   :  { %v3453_v59 = vpop.permute.xlu1 %3452  ;;  %v4553_v9 = vmul.f32 %v6701_v49, %v9601_v60 }
 0x59e   :  { %7291 = vset.pattern.permute.xlu2 %v7389_v33  ;;  %v3234_v33 = vld [vmem:[%s9924_s5 + $0x78] sm:$0xff]  ;;  %v3902_v29 = vadd.f32 %v3883_v20, %v3768_v10 }
 0x59f   :  { %v7320_v15 = vpop.eup %7319  ;;  %7290 = vset.pattern.permute.xlu1 %v7384_v26  ;;  %4134 = vperm.xlu2 %7291, %v9517_v63   ;;  %v6550_v26 = vld [vmem:[%s9924_s5 + $0x110] sm:$0xff]  ;;  %v3348_v27 = vmul.f32 %v3316_v14, %v3234_v33  ;;  %v4525_v55 = vpop.permute.xlu2 %4524 }
 0x5a0   :  { %v7322_v34 = vpop.eup %7321  ;;  %v9631_v58 = vadd.f32 1.0, %v7320_v15  ;;  %4000 = vperm.xlu1 %7290, %v9517_v63   ;;  %v3482_v16 = vmul.f32 %v6550_v26, %v3453_v59  ;;  %v6682_v33 = vld [vmem:[%s9924_s5 + $0x530] sm:$0xff] }
 0x5a1   :  { %v5020_v45 = vmul.f32 %v7322_v34, %v4944_v3  ;;  %vm5025_vm5 = vweird.f32 %v7322_v34  ;;  %v3367_v11 = vadd.f32 %v3348_v27, %v3215_v53  ;;  %v4419_v26 = vmul.f32 %v6682_v33, %v9583_v13 }
 0x5a2   :  { %7323 = vrcp.f32 %v9631_v58  ;;  %vm5026_vm8 = vmor %vm5024_vm6, %vm5025_vm5  ;;  %v5045_v17 = vand.u32 2147483648, %v9631_v58  ;;  %v5043_v21 = vand.u32 2147483647, %v9631_v58  ;;  %vm5039_vm11 = vweird.f32 %v9631_v58 }
 0x5a3   :  { %v5021_v22 = vsub.f32 1.0, %v5020_v45  ;;  %v3501_v23 = vadd.f32 %v3482_v16, %v3367_v11  ;;  %v4018_v45 = vmul.f32 %v6626_v39, %v9639_v35 }
 0x5a4   :  { %v5046_v30 = vor.u32 1.1754944e-38, %v5045_v17  ;;  %vm5044_vm13 = vcmp.eq.f32.partialorder %v5043_v21, 8.507059e+37 }
 0x5a5   :  { %v5022_v36 = vmul.f32 %v7322_v34, %v5021_v22 }
 0x5a6   :  { %v3855_v57 = vpop.permute.xlu1 %3854 }
 0x5a7   :  { %v5023_v54 = vadd.f32 %v7322_v34, %v5022_v36  ;;  %7294 = vset.pattern.permute.xlu2 %v7383_v25  ;;  %v3587_v25 = vpop.permute.xlu0 %3586 }
 0x5a8   :  { %v7324_v37 = vpop.eup %7323  ;;  %7293 = vset.pattern.permute.xlu1 %v7388_v32  ;;  %4536 = vperm.xlu2 %7294, %v9517_v63   ;;  %v3616_v56 = vmul.f32 %v6569_v51, %v3587_v25  ;;  %v4036_v32 = vadd.f32 %v4017_v40, %v3902_v29  ;;  %v3457_v27 = vpop.permute.xlu2 %3456 }
 0x5a9   :  { %v5027_v5 = vsel %vm5026_vm8, %v7322_v34, %v5023_v54  ;;  %v5035_v18 = vmul.f32 %v7324_v37, %v9631_v58  ;;  %4402 = vperm.xlu1 %7293, %v9517_v63   ;;  %v6607_v63 = vld [vmem:[%s9924_s5 + $0x2d8] sm:$0xff]  ;;  %vm5040_vm10 = vweird.f32 %v7324_v37  ;;  %v4285_v34 = vmul.f32 %v6663_v19, %v9574_v12  ;;  %v6664_v12 = vld [vmem:[%s9924_s5 + $0x4a0] sm:$0xff] }
 0x5aa   :  { %v5032_v62 = vsel %vm5029_vm9, %v5031_v1, %v5027_v5  ;;  %v3635_v28 = vadd.f32 %v3616_v56, %v3501_v23  ;;  %v3884_v3 = vmul.f32 %v6607_v63, %v3855_v57  ;;  %vm5041_vm12 = vmor %vm5039_vm11, %vm5040_vm10  ;;  %v4170_v59 = vadd.f32 %v4151_v0, %v4036_v32  ;;  %v3235_v0 = vld [vmem:[%s9924_s5 + $0x80] sm:$0xff] }
 0x5ab   :  { %v5248_v42 = vmul.f32 27.0, %v5032_v62  ;;  %v5036_v14 = vsub.f32 1.0, %v5035_v18  ;;  %v4554_v57 = vmul.f32 %v6702_v38, %v4525_v55  ;;  %v3216_v19 = vld [vmem:[%s9925_s6 + $0x80] sm:$0xff] }
 0x5ac   :  { %v3769_v15 = vadd.f32 %v3750_v8, %v3635_v28  ;;  %v4304_v58 = vadd.f32 %v4285_v34, %v4170_v59  ;;  %v3236_v34 = vld [vmem:[%s9924_s5 + $0x88] sm:$0xff]  ;;  %v6608_v38 = vld [vmem:[%s9924_s5 + $0x2e0] sm:$0xff] }
 0x5ad   :  { %5268 = vst.msk [vmem:[%s9929_s11 + $0x20] sm:$0xff] %vm5263_vm7, %v5248_v42  ;;  %v5037_v46 = vmul.f32 %v7324_v37, %v5036_v14  ;;  %v9720_v14 = vld [vmem:[%s9928_s10] ss:$0 sm:$0xff] }
 0x5ae   :  { %v3903_v4 = vadd.f32 %v3884_v3, %v3769_v15  ;;  %v4438_v35 = vadd.f32 %v4419_v26, %v4304_v58 }
 0x5af   :  { %v5038_v48 = vadd.f32 %v7324_v37, %v5037_v46  ;;  %v4123_v41 = vpop.permute.xlu1 %4122  ;;  %v4391_v53 = vpop.permute.xlu0 %4390 }
 0x5b0   :  { %v4152_v7 = vmul.f32 %v6645_v43, %v4123_v41  ;;  %v4037_v22 = vadd.f32 %v4018_v45, %v3903_v4  ;;  %v4420_v16 = vmul.f32 %v6683_v44, %v4391_v53  ;;  %v4572_v13 = vadd.f32 %v4553_v9, %v4438_v35  ;;  %v6552_v53 = vld [vmem:[%s9924_s5 + $0x120] sm:$0xff] }
 0x5b1   :  { %v5042_v31 = vsel %vm5041_vm12, %v7324_v37, %v5038_v48  ;;  %v9708_v51 = vpop.permute.xlu2 %3858 }
 0x5b2   :  { %v5047_v2 = vsel %vm5044_vm13, %v5046_v30, %v5042_v31  ;;  %v4171_v52 = vadd.f32 %v4152_v7, %v4037_v22  ;;  %v4591_v20 = vmax.f32 %v4572_v13, 0.0  ;;  %v6551_v30 = vld [vmem:[%s9924_s5 + $0x118] sm:$0xff]  ;;  %v6570_v31 = vld [vmem:[%s9924_s5 + $0x1b0] sm:$0xff] }
 0x5b3   :  { %v5249_v6 = vmul.f32 27.0, %v5047_v2  ;;  %v3483_v2 = vmul.f32 %v6551_v30, %v3457_v27  ;;  %v3217_v27 = vld [vmem:[%s9925_s6 + $0x88] sm:$0xff] }
 0x5b5   :  { %5269 = vst.msk [vmem:[%s9929_s11 + $0x28] sm:$0xff] %vm5263_vm7, %v5249_v6 }
 0x5b7   :  { %v3321_v60 = vpop.permute.xlu0 %3320 }
 0x5b8   :  { %v4257_v61 = vpop.permute.xlu1 %4256  ;;  %v3349_v41 = vmul.f32 %v3321_v60, %v3235_v0  ;;  %v3885_v60 = vmul.f32 %v6608_v38, %v9708_v51  ;;  %v6609_v0 = vld [vmem:[%s9924_s5 + $0x2e8] sm:$0xff] }
 0x5b9   :  { %v4286_v36 = vmul.f32 %v6664_v12, %v4257_v61  ;;  %v6589_v12 = vld [vmem:[%s9924_s5 + $0x248] sm:$0xff] }
 0x5ba   :  { %v9715_v24 = vpop.permute.xlu2 %4260  ;;  %v3368_v15 = vadd.f32 %v3349_v41, %v3216_v19 }
 0x5bb   :  { %v4305_v10 = vadd.f32 %v4286_v36, %v4171_v52 }
 0x5bc   :  { %v3502_v7 = vadd.f32 %v3483_v2, %v3368_v15  ;;  %v6665_v15 = vld [vmem:[%s9924_s5 + $0x4a8] sm:$0xff] }
 0x5bd   :  { %v4439_v11 = vadd.f32 %v4420_v16, %v4305_v10  ;;  %v6627_v16 = vld [vmem:[%s9924_s5 + $0x378] sm:$0xff] }
 0x5bf   :  { %v4573_v54 = vadd.f32 %v4554_v57, %v4439_v11  ;;  %v3725_v63 = vpop.permute.xlu0 %3724 }
 0x5c0   :  { %v4706_v37 = vpop.f32.mrf.mxu3  ;;  %v3751_v52 = vmul.f32 %v6589_v12, %v3725_v63 }
 0x5c1   :  { %v4592_v40 = vmax.f32 %v4573_v54, 0.0  ;;  %v3591_v1 = vpop.permute.xlu1 %3590  ;;  %v4707_v18 = vadd.f32 %v9589_v50, %v4706_v37 }
 0x5c2   :  { %v3617_v4 = vmul.f32 %v6570_v31, %v3591_v1 }
 0x5c3   :  { %v4603_v5 = vpack.c.bf16 %v4592_v40, %v4591_v20  ;;  %v4740_v56 = vmax.f32 %v4707_v18, 0.0  ;;  %v9730_v8 = vpop.permute.xlu2 %4394  ;;  %v6571_v40 = vld [vmem:[%s9924_s5 + $0x1b8] sm:$0xff] }
 0x5c4   :  { %v3636_v22 = vadd.f32 %v3617_v4, %v3502_v7  ;;  %v6628_v4 = vld [vmem:[%s9924_s5 + $0x380] sm:$0xff] }
 0x5c5   :  { %6729 = vmatmul.msk.bf16.gmra.mxu3 %vm2533_vm0, %v4603_v5  ;;  %v6590_v5 = vld [vmem:[%s9924_s5 + $0x250] sm:$0xff] }
 0x5c6   :  { %v3770_v54 = vadd.f32 %v3751_v52, %v3636_v22 }
 0x5c7   :  { %v9738_v59 = vpop.permute.xlu0 %4126 }
 0x5c8   :  { %v4708_v23 = vpop.f32.mrf.mxu3 }
 0x5c9   :  { %v4709_v25 = vadd.f32 %v9589_v50, %v4708_v23 }
 0x5ca   :  { %v9713_v29 = vpop.permute.xlu1 %3992  ;;  %v4849_v62 = vpop.f32.mrf.mxu1 }
 0x5cb   :  { %v4741_v42 = vmax.f32 %v4709_v25, 0.0  ;;  %v4850_v32 = vadd.f32 %v9720_v14, %v4849_v62  ;;  %v4019_v18 = vmul.f32 %v6627_v16, %v9713_v29  ;;  %v6704_v16 = vld [vmem:[%s9924_s5 + $0x5e0] sm:$0xff] }
 0x5cc   :  { %v3595_v45 = vpop.permute.xlu2 %3594 }
 0x5cd   :  { %v4754_v47 = vpack.c.bf16 %v4741_v42, %v4740_v56  ;;  %v6764_v17 = vmul.f32 -1.442695, %v4850_v32  ;;  %v3904_v32 = vadd.f32 %v3885_v60, %v3770_v54  ;;  %v6553_v60 = vld [vmem:[%s9924_s5 + $0x128] sm:$0x3f] }
 0x5cf   :  { %7325 = vpow2.f32 %v6764_v17  ;;  %6753 = vmatmul.msk.bf16.gmra.mxu1 %vm2533_vm0, %v4754_v47  ;;  %v3461_v61 = vpop.permute.xlu0 %3460  ;;  %v3618_v47 = vmul.f32 %v6571_v40, %v3595_v45  ;;  %v6684_v45 = vld [vmem:[%s9924_s5 + $0x540] sm:$0xff] }
 0x5d0   :  { %v3484_v11 = vmul.f32 %v6552_v53, %v3461_v61  ;;  %v4421_v22 = vmul.f32 %v6684_v45, %v9730_v8  ;;  %v6685_v53 = vld [vmem:[%s9924_s5 + $0x548] sm:$0xff] }
 0x5d2   :  { %v4851_v46 = vpop.f32.mrf.mxu1 }
 0x5d3   :  { %v4852_v21 = vadd.f32 %v9720_v14, %v4851_v46  ;;  %v9725_v28 = vpop.permute.xlu1 %4528  ;;  %v6646_v46 = vld [vmem:[%s9924_s5 + $0x410] sm:$0xff] }
 0x5d4   :  { %v4153_v41 = vmul.f32 %v6646_v46, %v9738_v59  ;;  %v6647_v59 = vld [vmem:[%s9924_s5 + $0x418] sm:$0xff] }
 0x5d5   :  { %v7326_v55 = vpop.eup %7325  ;;  %v6765_v48 = vmul.f32 -1.442695, %v4852_v21  ;;  %v3997_v42 = vpop.permute.xlu2 %3996  ;;  %v4038_v21 = vadd.f32 %v4019_v18, %v3904_v32 }
 0x5d6   :  { %v4946_v3 = vadd.f32 1.0, %v7326_v55  ;;  %v4020_v12 = vmul.f32 %v6628_v4, %v3997_v42 }
 0x5d7   :  { %7327 = vpow2.f32 %v6765_v48  ;;  %v3863_v48 = vpop.permute.xlu0 %3862 }
 0x5d8   :  { %7329 = vrcp.f32 %v4946_v3  ;;  %v5060_v44 = vand.u32 2147483648, %v4946_v3  ;;  %v5058_v9 = vand.u32 2147483647, %v4946_v3  ;;  %vm5054_vm15 = vweird.f32 %v4946_v3 }
 0x5da   :  { %v5061_v37 = vor.u32 1.1754944e-38, %v5060_v44  ;;  %vm5059_vm2 = vcmp.eq.f32.partialorder %v5058_v9, 8.507059e+37 }
 0x5dc   :  { %v3326_v39 = vpop.permute.xlu1 %3325 }
 0x5dd   :  { %v7328_v43 = vpop.eup %7327  ;;  %v3350_v49 = vmul.f32 %v3326_v39, %v3236_v34  ;;  %v3886_v39 = vmul.f32 %v6609_v0, %v3863_v48  ;;  %v6591_v48 = vld [vmem:[%s9924_s5 + $0x258] sm:$0x3f] }
 0x5de   :  { %v7330_v6 = vpop.eup %7329  ;;  %v9746_v33 = vadd.f32 1.0, %v7328_v43  ;;  %v4172_v43 = vadd.f32 %v4153_v41, %v4038_v21  ;;  %v4533_v7 = vpop.permute.xlu2 %4532  ;;  %v6610_v41 = vld [vmem:[%s9924_s5 + $0x2f0] sm:$0x3f] }
 0x5df   :  { %v5050_v58 = vmul.f32 %v7330_v6, %v4946_v3  ;;  %vm5055_vm14 = vweird.f32 %v7330_v6  ;;  %v3369_v36 = vadd.f32 %v3350_v49, %v3217_v27  ;;  %v6703_v27 = vld [vmem:[%s9924_s5 + $0x5d8] sm:$0xff]  ;;  %v4399_v61 = vpop.permute.xlu0 %4398  ;;  %v4556_v8 = vmul.f32 %v6704_v16, %v4533_v7 }
 0x5e0   :  { %7331 = vrcp.f32 %v9746_v33  ;;  %vm5056_vm1 = vmor %vm5054_vm15, %vm5055_vm14  ;;  %v5075_v17 = vand.u32 2147483648, %v9746_v33  ;;  %v5073_v29 = vand.u32 2147483647, %v9746_v33  ;;  %vm5069_vm4 = vweird.f32 %v9746_v33 }
 0x5e1   :  { %v5051_v26 = vsub.f32 1.0, %v5050_v58  ;;  %v3503_v25 = vadd.f32 %v3484_v11, %v3369_v36  ;;  %v4555_v52 = vmul.f32 %v6703_v27, %v9725_v28 }
 0x5e2   :  { %v5076_v19 = vor.u32 1.1754944e-38, %v5075_v17  ;;  %vm5074_vm6 = vcmp.eq.f32.partialorder %v5073_v29, 8.507059e+37  ;;  %v6572_v17 = vld [vmem:[%s9924_s5 + $0x1c0] sm:$0x3f] }
 0x5e3   :  { %v5052_v35 = vmul.f32 %v7330_v6, %v5051_v26  ;;  %v3637_v55 = vadd.f32 %v3618_v47, %v3503_v25  ;;  %v3218_v25 = vld [vmem:[%s9925_s6 + $0x90] sm:$0x3f] }
 0x5e5   :  { %v5053_v10 = vadd.f32 %v7330_v6, %v5052_v35  ;;  %v3729_v13 = vpop.permute.xlu1 %3728 }
 0x5e6   :  { %v7332_v57 = vpop.eup %7331  ;;  %v3752_v63 = vmul.f32 %v6590_v5, %v3729_v13 }
 0x5e7   :  { %v5057_v20 = vsel %vm5056_vm1, %v7330_v6, %v5053_v10  ;;  %v5065_v1 = vmul.f32 %v7332_v57, %v9746_v33  ;;  %vm5070_vm3 = vweird.f32 %v7332_v57  ;;  %v4287_v33 = vmul.f32 %v6665_v15, %v9715_v24  ;;  %v6666_v24 = vld [vmem:[%s9924_s5 + $0x4b0] sm:$0xff]  ;;  %v3331_v54 = vpop.permute.xlu2 %3330  ;;  %v3599_v21 = vpop.permute.xlu0 %3598 }
 0x5e8   :  { %v5062_v23 = vsel %vm5059_vm2, %v5061_v37, %v5057_v20  ;;  %vm5071_vm5 = vmor %vm5069_vm4, %vm5070_vm3  ;;  %v3771_v30 = vadd.f32 %v3752_v63, %v3637_v55  ;;  %v4422_v10 = vmul.f32 %v6685_v53, %v4399_v61  ;;  %v3619_v0 = vmul.f32 %v6572_v17, %v3599_v21 }
 0x5e9   :  { %v5250_v62 = vmul.f32 27.0, %v5062_v23  ;;  %v5066_v56 = vsub.f32 1.0, %v5065_v1  ;;  %v4306_v49 = vadd.f32 %v4287_v33, %v4172_v43  ;;  %v3237_v1 = vld [vmem:[%s9924_s5 + $0x90] sm:$0x3f] }
 0x5ea   :  { %v3905_v58 = vadd.f32 %v3886_v39, %v3771_v30  ;;  %v3351_v23 = vmul.f32 %v3331_v54, %v3237_v1  ;;  %v6629_v39 = vld [vmem:[%s9924_s5 + $0x388] sm:$0x3f] }
 0x5eb   :  { %5270 = vst.msk [vmem:[%s9929_s11 + $0x30] sm:$0xff] %vm5263_vm7, %v5250_v62  ;;  %v5067_v51 = vmul.f32 %v7332_v57, %v5066_v56  ;;  %v4440_v9 = vadd.f32 %v4421_v22, %v4306_v49  ;;  %v6667_v49 = vld [vmem:[%s9924_s5 + $0x4b8] sm:$0x3f]  ;;  %v6686_v22 = vld [vmem:[%s9924_s5 + $0x550] sm:$0x3f] }
 0x5ec   :  { %v4039_v44 = vadd.f32 %v4020_v12, %v3905_v58  ;;  %v3370_v42 = vadd.f32 %v3351_v23, %v3218_v25 }
 0x5ed   :  { %v5068_v3 = vadd.f32 %v7332_v57, %v5067_v51 }
 0x5ee   :  { %v4131_v31 = vpop.permute.xlu1 %4130 }
 0x5ef   :  { %v5072_v2 = vsel %vm5071_vm5, %v7332_v57, %v5068_v3  ;;  %v4154_v26 = vmul.f32 %v6647_v59, %v4131_v31  ;;  %v4574_v57 = vadd.f32 %v4555_v52, %v4440_v9  ;;  %v6648_v59 = vld [vmem:[%s9924_s5 + $0x420] sm:$0x3f]  ;;  %v4269_v12 = vpop.permute.xlu0 %4268 }
 0x5f0   :  { %v5077_v34 = vsel %vm5074_vm6, %v5076_v19, %v5072_v2  ;;  %v3733_v32 = vpop.permute.xlu2 %3732  ;;  %v4289_v53 = vmul.f32 %v6667_v49, %v4269_v12 }
 0x5f1   :  { %v5251_v6 = vmul.f32 27.0, %v5077_v34  ;;  %v4173_v36 = vadd.f32 %v4154_v26, %v4039_v44  ;;  %v4593_v40 = vmax.f32 %v4574_v57, 0.0  ;;  %v3753_v30 = vmul.f32 %v6591_v48, %v3733_v32 }
 0x5f3   :  { %5271 = vst.msk [vmem:[%s9929_s11 + $0x38] sm:$0xff] %vm5263_vm7, %v5251_v6 }
 0x5f7   :  { %v4265_v35 = vpop.permute.xlu1 %4264 }
 0x5f8   :  { %v4288_v38 = vmul.f32 %v6666_v24, %v4265_v35  ;;  %v6705_v35 = vld [vmem:[%s9924_s5 + $0x5e8] sm:$0x3f] }
 0x5f9   :  { %v4135_v43 = vpop.permute.xlu2 %4134 }
 0x5fa   :  { %v4307_v13 = vadd.f32 %v4288_v38, %v4173_v36  ;;  %v4155_v7 = vmul.f32 %v6648_v59, %v4135_v43 }
 0x5fc   :  { %v4441_v11 = vadd.f32 %v4422_v10, %v4307_v13 }
 0x5fe   :  { %v4575_v37 = vadd.f32 %v4556_v8, %v4441_v11 }
 0x5ff   :  { %v4711_v20 = vpop.f32.mrf.mxu3 }
 0x600   :  { %v4594_v28 = vmax.f32 %v4575_v37, 0.0  ;;  %v3465_v5 = vpop.permute.xlu1 %3464  ;;  %v4712_v56 = vadd.f32 %v9589_v50, %v4711_v20 }
 0x601   :  { %v3485_v62 = vmul.f32 %v6553_v60, %v3465_v5 }
 0x602   :  { %v4604_v18 = vpack.c.bf16 %v4594_v28, %v4593_v40  ;;  %v4742_v29 = vmax.f32 %v4712_v56, 0.0  ;;  %v4537_v9 = vpop.permute.xlu2 %4536 }
 0x603   :  { %v3504_v46 = vadd.f32 %v3485_v62, %v3370_v42  ;;  %v4557_v10 = vmul.f32 %v6705_v35, %v4537_v9 }
 0x604   :  { %6730 = vmatmul.msk.bf16.gmra.mxu3 %vm2533_vm0, %v4604_v18 }
 0x605   :  { %v3638_v19 = vadd.f32 %v3619_v0, %v3504_v46 }
 0x607   :  { %v4713_v47 = vpop.f32.mrf.mxu3  ;;  %v3772_v34 = vadd.f32 %v3753_v30, %v3638_v19 }
 0x608   :  { %v4714_v63 = vadd.f32 %v9589_v50, %v4713_v47 }
 0x609   :  { %v3867_v51 = vpop.permute.xlu1 %3866 }
 0x60a   :  { %v4743_v55 = vmax.f32 %v4714_v63, 0.0  ;;  %v3887_v31 = vmul.f32 %v6610_v41, %v3867_v51 }
 0x60c   :  { %v4755_v3 = vpack.c.bf16 %v4743_v55, %v4742_v29  ;;  %v3906_v33 = vadd.f32 %v3887_v31, %v3772_v34 }
 0x60e   :  { %6754 = vmatmul.msk.bf16.gmra.mxu1 %vm2533_vm0, %v4755_v3 }
 0x60f   :  { %v4854_v15 = vpop.f32.mrf.mxu1 }
 0x610   :  { %v4855_v2 = vadd.f32 %v9720_v14, %v4854_v15 }
 0x612   :  { %v6766_v6 = vmul.f32 -1.442695, %v4855_v2  ;;  %v4001_v4 = vpop.permute.xlu1 %4000 }
 0x613   :  { %v4021_v58 = vmul.f32 %v6629_v39, %v4001_v4 }
 0x614   :  { %7333 = vpow2.f32 %v6766_v6 }
 0x615   :  { %v4040_v45 = vadd.f32 %v4021_v58, %v3906_v33 }
 0x617   :  { %v4856_v26 = vpop.f32.mrf.mxu1  ;;  %v4174_v27 = vadd.f32 %v4155_v7, %v4040_v45 }
 0x618   :  { %v4857_v24 = vadd.f32 %v9720_v14, %v4856_v26 }
 0x619   :  { %v4308_v38 = vadd.f32 %v4289_v53, %v4174_v27 }
 0x61a   :  { %v7334_v44 = vpop.eup %7333  ;;  %v6767_v61 = vmul.f32 -1.442695, %v4857_v24 }
 0x61b   :  { %v4948_v52 = vadd.f32 1.0, %v7334_v44  ;;  %v4403_v36 = vpop.permute.xlu1 %4402 }
 0x61c   :  { %7335 = vpow2.f32 %v6767_v61  ;;  %v4423_v16 = vmul.f32 %v6686_v22, %v4403_v36 }
 0x61d   :  { %7337 = vrcp.f32 %v4948_v52  ;;  %v5090_v28 = vand.u32 2147483648, %v4948_v52  ;;  %v5088_v60 = vand.u32 2147483647, %v4948_v52  ;;  %vm5084_vm9 = vweird.f32 %v4948_v52 }
 0x61e   :  { %v4442_v13 = vadd.f32 %v4423_v16, %v4308_v38 }
 0x61f   :  { %v5091_v25 = vor.u32 1.1754944e-38, %v5090_v28  ;;  %vm5089_vm11 = vcmp.eq.f32.partialorder %v5088_v60, 8.507059e+37 }
 0x620   :  { %v4576_v57 = vadd.f32 %v4557_v10, %v4442_v13 }
 0x622   :  { %v7336_v8 = vpop.eup %7335  ;;  %v4595_v11 = vmax.f32 %v4576_v57, 0.0 }
 0x623   :  { %v7338_v54 = vpop.eup %7337  ;;  %v4949_v37 = vadd.f32 1.0, %v7336_v8 }
 0x624   :  { %v5080_v20 = vmul.f32 %v7338_v54, %v4948_v52  ;;  %v4605_v40 = vpack.c.bf16 %v4595_v11, %v4595_v11  ;;  %vm5085_vm8 = vweird.f32 %v7338_v54 }
 0x625   :  { %7339 = vrcp.f32 %v4949_v37  ;;  %vm5086_vm10 = vmor %vm5084_vm9, %vm5085_vm8  ;;  %v5105_v17 = vand.u32 2147483648, %v4949_v37  ;;  %v5103_v46 = vand.u32 2147483647, %v4949_v37  ;;  %vm5099_vm13 = vweird.f32 %v4949_v37 }
 0x626   :  { %v5081_v1 = vsub.f32 1.0, %v5080_v20  ;;  %6731 = vmatmul.msk.bf16.gmra.mxu3 %vm2533_vm0, %v4605_v40 }
 0x627   :  { %v5106_v29 = vor.u32 1.1754944e-38, %v5105_v17  ;;  %vm5104_vm15 = vcmp.eq.f32.partialorder %v5103_v46, 8.507059e+37 }
 0x628   :  { %v5082_v5 = vmul.f32 %v7338_v54, %v5081_v1 }
 0x62a   :  { %v5083_v18 = vadd.f32 %v7338_v54, %v5082_v5 }
 0x62b   :  { %v7340_v23 = vpop.eup %7339 }
 0x62c   :  { %v5087_v62 = vsel %vm5086_vm10, %v7338_v54, %v5083_v18  ;;  %v5095_v56 = vmul.f32 %v7340_v23, %v4949_v37  ;;  %vm5100_vm12 = vweird.f32 %v7340_v23 }
 0x62d   :  { %v5092_v42 = vsel %vm5089_vm11, %v5091_v25, %v5087_v62  ;;  %vm5101_vm14 = vmor %vm5099_vm13, %vm5100_vm12 }
 0x62e   :  { %v5252_v32 = vmul.f32 27.0, %v5092_v42  ;;  %v5096_v47 = vsub.f32 1.0, %v5095_v56 }
 0x630   :  { %5272 = vst.msk [vmem:[%s9929_s11 + $0x40] sm:$0xff] %vm5263_vm7, %v5252_v32  ;;  %v5097_v63 = vmul.f32 %v7340_v23, %v5096_v47 }
 0x632   :  { %v5098_v51 = vadd.f32 %v7340_v23, %v5097_v63 }
 0x634   :  { %v5102_v21 = vsel %vm5101_vm14, %v7340_v23, %v5098_v51 }
 0x635   :  { %v5107_v55 = vsel %vm5104_vm15, %v5106_v29, %v5102_v21 }
 0x636   :  { %v5253_v0 = vmul.f32 27.0, %v5107_v55 }
 0x638   :  { %5273 = vst.msk [vmem:[%s9929_s11 + $0x48] sm:$0xff] %vm5263_vm7, %v5253_v0 }
 0x648   :  { %v4716_v48 = vpop.f32.mrf.mxu3 }
 0x649   :  { %v4717_v19 = vadd.f32 %v9589_v50, %v4716_v48 }
 0x64b   :  { %v4744_v2 = vmax.f32 %v4717_v19, 0.0 }
 0x64c   :  { %v4859_v3 = vpop.f32.mrf.mxu1 }
 0x64d   :  { %v4860_v41 = vadd.f32 %v9720_v14, %v4859_v3 }
 0x64f   :  { %v6768_v30 = vmul.f32 -1.442695, %v4860_v41 }
 0x650   :  { %v4718_v31 = vpop.f32.mrf.mxu3 }
 0x651   :  { %7341 = vpow2.f32 %v6768_v30  ;;  %v4719_v15 = vadd.f32 %v9589_v50, %v4718_v31 }
 0x653   :  { %v4745_v39 = vmax.f32 %v4719_v15, 0.0 }
 0x654   :  { %v4861_v43 = vpop.f32.mrf.mxu1 }
 0x655   :  { %v4756_v34 = vpack.c.bf16 %v4745_v39, %v4744_v2  ;;  %v4862_v6 = vadd.f32 %v9720_v14, %v4861_v43 }
 0x657   :  { %v7342_v4 = vpop.eup %7341  ;;  %v6769_v59 = vmul.f32 -1.442695, %v4862_v6  ;;  %6755 = vmatmul.msk.bf16.gmra.mxu1 %vm2533_vm0, %v4756_v34 }
 0x658   :  { %v4950_v33 = vadd.f32 1.0, %v7342_v4 }
 0x659   :  { %7343 = vpow2.f32 %v6769_v59 }
 0x65a   :  { %7345 = vrcp.f32 %v4950_v33  ;;  %v5120_v26 = vand.u32 2147483648, %v4950_v33  ;;  %v5118_v24 = vand.u32 2147483647, %v4950_v33  ;;  %vm5114_vm2 = vweird.f32 %v4950_v33 }
 0x65c   :  { %v5121_v53 = vor.u32 1.1754944e-38, %v5120_v26  ;;  %vm5119_vm4 = vcmp.eq.f32.partialorder %v5118_v24, 8.507059e+37 }
 0x65f   :  { %v7344_v58 = vpop.eup %7343 }
 0x660   :  { %v7346_v45 = vpop.eup %7345  ;;  %v4951_v7 = vadd.f32 1.0, %v7344_v58 }
 0x661   :  { %v5110_v49 = vmul.f32 %v7346_v45, %v4950_v33  ;;  %vm5115_vm1 = vweird.f32 %v7346_v45 }
 0x662   :  { %7347 = vrcp.f32 %v4951_v7  ;;  %vm5116_vm3 = vmor %vm5114_vm2, %vm5115_vm1  ;;  %v5135_v38 = vand.u32 2147483648, %v4951_v7  ;;  %v5133_v10 = vand.u32 2147483647, %v4951_v7  ;;  %vm5129_vm6 = vweird.f32 %v4951_v7 }
 0x663   :  { %v5111_v12 = vsub.f32 1.0, %v5110_v49 }
 0x664   :  { %v5136_v57 = vor.u32 1.1754944e-38, %v5135_v38  ;;  %vm5134_vm9 = vcmp.eq.f32.partialorder %v5133_v10, 8.507059e+37 }
 0x665   :  { %v5112_v27 = vmul.f32 %v7346_v45, %v5111_v12 }
 0x667   :  { %v5113_v22 = vadd.f32 %v7346_v45, %v5112_v27 }
 0x668   :  { %v7348_v44 = vpop.eup %7347 }
 0x669   :  { %v5117_v61 = vsel %vm5116_vm3, %v7346_v45, %v5113_v22  ;;  %v5125_v35 = vmul.f32 %v7348_v44, %v4951_v7  ;;  %vm5130_vm5 = vweird.f32 %v7348_v44 }
 0x66a   :  { %v5122_v9 = vsel %vm5119_vm4, %v5121_v53, %v5117_v61  ;;  %vm5131_vm8 = vmor %vm5129_vm6, %vm5130_vm5 }
 0x66b   :  { %v5254_v52 = vmul.f32 27.0, %v5122_v9  ;;  %v5126_v36 = vsub.f32 1.0, %v5125_v35 }
 0x66d   :  { %5274 = vst.msk [vmem:[%s9929_s11 + $0x50] sm:$0xff] %vm5263_vm7, %v5254_v52  ;;  %v5127_v16 = vmul.f32 %v7348_v44, %v5126_v36 }
 0x66f   :  { %v5128_v13 = vadd.f32 %v7348_v44, %v5127_v16 }
 0x671   :  { %v5132_v8 = vsel %vm5131_vm8, %v7348_v44, %v5128_v13 }
 0x672   :  { %v5137_v11 = vsel %vm5134_vm9, %v5136_v57, %v5132_v8 }
 0x673   :  { %v5255_v54 = vmul.f32 27.0, %v5137_v11 }
 0x675   :  { %5275 = vst.msk [vmem:[%s9929_s11 + $0x58] sm:$0xff] %vm5263_vm7, %v5255_v54 }
 0x687   :  { %v4721_v37 = vpop.f32.mrf.mxu3 }
 0x688   :  { %v4722_v1 = vadd.f32 %v9589_v50, %v4721_v37 }
 0x68a   :  { %v4746_v18 = vmax.f32 %v4722_v1, 0.0 }
 0x68b   :  { %v4864_v20 = vpop.f32.mrf.mxu1 }
 0x68c   :  { %v4865_v40 = vadd.f32 %v9720_v14, %v4864_v20 }
 0x68e   :  { %v6770_v28 = vmul.f32 -1.442695, %v4865_v40 }
 0x68f   :  { %v4723_v5 = vpop.f32.mrf.mxu3 }
 0x690   :  { %7349 = vpow2.f32 %v6770_v28  ;;  %v4724_v60 = vadd.f32 %v9589_v50, %v4723_v5 }
 0x692   :  { %v4747_v23 = vmax.f32 %v4724_v60, 0.0 }
 0x693   :  { %v4866_v25 = vpop.f32.mrf.mxu1 }
 0x694   :  { %v4757_v62 = vpack.c.bf16 %v4747_v23, %v4746_v18  ;;  %v4867_v56 = vadd.f32 %v9720_v14, %v4866_v25 }
 0x696   :  { %v7350_v42 = vpop.eup %7349  ;;  %v6771_v32 = vmul.f32 -1.442695, %v4867_v56  ;;  %6756 = vmatmul.msk.bf16.gmra.mxu1 %vm2533_vm0, %v4757_v62 }
 0x697   :  { %v4952_v47 = vadd.f32 1.0, %v7350_v42 }
 0x698   :  { %7351 = vpow2.f32 %v6771_v32 }
 0x699   :  { %7353 = vrcp.f32 %v4952_v47  ;;  %v5150_v21 = vand.u32 2147483648, %v4952_v47  ;;  %v5148_v0 = vand.u32 2147483647, %v4952_v47  ;;  %vm5144_vm11 = vweird.f32 %v4952_v47 }
 0x69b   :  { %v5151_v41 = vor.u32 1.1754944e-38, %v5150_v21  ;;  %vm5149_vm13 = vcmp.eq.f32.partialorder %v5148_v0, 8.507059e+37 }
 0x69e   :  { %v7352_v17 = vpop.eup %7351 }
 0x69f   :  { %v7354_v63 = vpop.eup %7353  ;;  %v4953_v46 = vadd.f32 1.0, %v7352_v17 }
 0x6a0   :  { %v5140_v51 = vmul.f32 %v7354_v63, %v4952_v47  ;;  %vm5145_vm10 = vweird.f32 %v7354_v63 }
 0x6a1   :  { %7355 = vrcp.f32 %v4953_v46  ;;  %vm5146_vm12 = vmor %vm5144_vm11, %vm5145_vm10  ;;  %v5165_v34 = vand.u32 2147483648, %v4953_v46  ;;  %v5163_v4 = vand.u32 2147483647, %v4953_v46  ;;  %vm5159_vm15 = vweird.f32 %v4953_v46 }
 0x6a2   :  { %v5141_v29 = vsub.f32 1.0, %v5140_v51 }
 0x6a3   :  { %v5166_v45 = vor.u32 1.1754944e-38, %v5165_v34  ;;  %vm5164_vm2 = vcmp.eq.f32.partialorder %v5163_v4, 8.507059e+37 }
 0x6a4   :  { %v5142_v55 = vmul.f32 %v7354_v63, %v5141_v29 }
 0x6a6   :  { %v5143_v48 = vadd.f32 %v7354_v63, %v5142_v55 }
 0x6a7   :  { %v7356_v3 = vpop.eup %7355 }
 0x6a8   :  { %v5147_v19 = vsel %vm5146_vm12, %v7354_v63, %v5143_v48  ;;  %v5155_v30 = vmul.f32 %v7356_v3, %v4953_v46  ;;  %vm5160_vm14 = vweird.f32 %v7356_v3 }
 0x6a9   :  { %v5152_v31 = vsel %vm5149_vm13, %v5151_v41, %v5147_v19  ;;  %v4726_v15 = vpop.f32.mrf.mxu3  ;;  %vm5161_vm1 = vmor %vm5159_vm15, %vm5160_vm14 }
 0x6aa   :  { %v5256_v2 = vmul.f32 27.0, %v5152_v31  ;;  %v5156_v39 = vsub.f32 1.0, %v5155_v30  ;;  %v4727_v43 = vadd.f32 %v9589_v50, %v4726_v15 }
 0x6ac   :  { %5276 = vst.msk [vmem:[%s9929_s11 + $0x60] sm:$0xff] %vm5263_vm7, %v5256_v2  ;;  %v5157_v6 = vmul.f32 %v7356_v3, %v5156_v39  ;;  %v4748_v59 = vmax.f32 %v4727_v43, 0.0 }
 0x6ae   :  { %v5158_v33 = vadd.f32 %v7356_v3, %v5157_v6  ;;  %v4758_v58 = vpack.c.bf16 %v4748_v59, %v4748_v59 }
 0x6b0   :  { %v5162_v7 = vsel %vm5161_vm1, %v7356_v3, %v5158_v33  ;;  %6757 = vmatmul.msk.bf16.gmra.mxu1 %vm2533_vm0, %v4758_v58 }
 0x6b1   :  { %v5167_v50 = vsel %vm5164_vm2, %v5166_v45, %v5162_v7  ;;  %v4728_v49 = vpop.f32.mrf.mxu3 }
 0x6b2   :  { %v5257_v12 = vmul.f32 27.0, %v5167_v50 }
 0x6b4   :  { %5277 = vst.msk [vmem:[%s9929_s11 + $0x68] sm:$0xff] %vm5263_vm7, %v5257_v12 }
 0x6d4   :  { %v4869_v26 = vpop.f32.mrf.mxu1 }
 0x6d5   :  { %v4870_v27 = vadd.f32 %v9720_v14, %v4869_v26 }
 0x6d7   :  { %v6772_v24 = vmul.f32 -1.442695, %v4870_v27 }
 0x6d9   :  { %7357 = vpow2.f32 %v6772_v24 }
 0x6dc   :  { %v4871_v22 = vpop.f32.mrf.mxu1 }
 0x6dd   :  { %v4872_v44 = vadd.f32 %v9720_v14, %v4871_v22 }
 0x6df   :  { %v7358_v53 = vpop.eup %7357  ;;  %v6773_v61 = vmul.f32 -1.442695, %v4872_v44 }
 0x6e0   :  { %v4954_v35 = vadd.f32 1.0, %v7358_v53 }
 0x6e1   :  { %7359 = vpow2.f32 %v6773_v61 }
 0x6e2   :  { %7361 = vrcp.f32 %v4954_v35  ;;  %v5180_v10 = vand.u32 2147483648, %v4954_v35  ;;  %v5178_v57 = vand.u32 2147483647, %v4954_v35  ;;  %vm5174_vm3 = vweird.f32 %v4954_v35 }
 0x6e4   :  { %v5181_v54 = vor.u32 1.1754944e-38, %v5180_v10  ;;  %vm5179_vm5 = vcmp.eq.f32.partialorder %v5178_v57, 8.507059e+37 }
 0x6e7   :  { %v7360_v9 = vpop.eup %7359 }
 0x6e8   :  { %v7362_v52 = vpop.eup %7361  ;;  %v4955_v36 = vadd.f32 1.0, %v7360_v9 }
 0x6e9   :  { %v5170_v38 = vmul.f32 %v7362_v52, %v4954_v35  ;;  %vm5175_vm0 = vweird.f32 %v7362_v52 }
 0x6ea   :  { %7363 = vrcp.f32 %v4955_v36  ;;  %vm5176_vm4 = vmor %vm5174_vm3, %vm5175_vm0  ;;  %v5195_v5 = vand.u32 2147483648, %v4955_v36  ;;  %v5193_v18 = vand.u32 2147483647, %v4955_v36  ;;  %vm5189_vm8 = vweird.f32 %v4955_v36 }
 0x6eb   :  { %v5171_v16 = vsub.f32 1.0, %v5170_v38 }
 0x6ec   :  { %v5196_v25 = vor.u32 1.1754944e-38, %v5195_v5  ;;  %vm5194_vm10 = vcmp.eq.f32.partialorder %v5193_v18, 8.507059e+37 }
 0x6ed   :  { %v5172_v13 = vmul.f32 %v7362_v52, %v5171_v16 }
 0x6ef   :  { %v5173_v8 = vadd.f32 %v7362_v52, %v5172_v13 }
 0x6f0   :  { %v7364_v11 = vpop.eup %7363 }
 0x6f1   :  { %v5177_v37 = vsel %vm5176_vm4, %v7362_v52, %v5173_v8  ;;  %v5185_v20 = vmul.f32 %v7364_v11, %v4955_v36  ;;  %vm5190_vm6 = vweird.f32 %v7364_v11 }
 0x6f2   :  { %v5182_v40 = vsel %vm5179_vm5, %v5181_v54, %v5177_v37  ;;  %vm5191_vm9 = vmor %vm5189_vm8, %vm5190_vm6  ;;  %vm5282_vm8 = vcmask 29696  }
 0x6f3   :  { %v5258_v1 = vmul.f32 27.0, %v5182_v40  ;;  %v5186_v28 = vsub.f32 1.0, %v5185_v20 }
 0x6f5   :  { %5278 = vst.msk [vmem:[%s9929_s11 + $0x70] sm:$0xff] %vm5263_vm7, %v5258_v1  ;;  %v5187_v60 = vmul.f32 %v7364_v11, %v5186_v28 }
 0x6f7   :  { %v5188_v23 = vadd.f32 %v7364_v11, %v5187_v60 }
 0x6f9   :  { %v5192_v62 = vsel %vm5191_vm9, %v7364_v11, %v5188_v23 }
 0x6fa   :  { %v5197_v56 = vsel %vm5194_vm10, %v5196_v25, %v5192_v62 }
 0x6fb   :  { %v5259_v42 = vmul.f32 27.0, %v5197_v56 }
 0x6fd   :  { %5279 = vst.msk [vmem:[%s9929_s11 + $0x78] sm:$0xff] %vm5263_vm7, %v5259_v42 }
 0x713   :  { %v4874_v32 = vpop.f32.mrf.mxu1 }
 0x714   :  { %v4875_v47 = vadd.f32 %v9720_v14, %v4874_v32 }
 0x716   :  { %v6774_v17 = vmul.f32 -1.442695, %v4875_v47 }
 0x718   :  { %7365 = vpow2.f32 %v6774_v17 }
 0x71b   :  { %v4876_v63 = vpop.f32.mrf.mxu1 }
 0x71c   :  { %v4877_v46 = vadd.f32 %v9720_v14, %v4876_v63 }
 0x71e   :  { %v7366_v51 = vpop.eup %7365  ;;  %v6775_v29 = vmul.f32 -1.442695, %v4877_v46 }
 0x71f   :  { %v4956_v21 = vadd.f32 1.0, %v7366_v51 }
 0x720   :  { %7367 = vpow2.f32 %v6775_v29 }
 0x721   :  { %7369 = vrcp.f32 %v4956_v21  ;;  %v5210_v19 = vand.u32 2147483648, %v4956_v21  ;;  %v5208_v31 = vand.u32 2147483647, %v4956_v21  ;;  %vm5204_vm12 = vweird.f32 %v4956_v21 }
 0x723   :  { %v5211_v34 = vor.u32 1.1754944e-38, %v5210_v19  ;;  %vm5209_vm14 = vcmp.eq.f32.partialorder %v5208_v31, 8.507059e+37 }
 0x726   :  { %v7368_v55 = vpop.eup %7367 }
 0x727   :  { %v7370_v0 = vpop.eup %7369  ;;  %v4957_v48 = vadd.f32 1.0, %v7368_v55 }
 0x728   :  { %v5200_v3 = vmul.f32 %v7370_v0, %v4956_v21  ;;  %vm5205_vm11 = vweird.f32 %v7370_v0 }
 0x729   :  { %7371 = vrcp.f32 %v4957_v48  ;;  %vm5206_vm13 = vmor %vm5204_vm12, %vm5205_vm11  ;;  %v5225_v7 = vand.u32 2147483648, %v4957_v48  ;;  %vm5219_vm1 = vweird.f32 %v4957_v48 }
 0x72a   :  { %v5201_v41 = vsub.f32 1.0, %v5200_v3 }
 0x72b   :  { %v5226_v26 = vor.u32 1.1754944e-38, %v5225_v7 }
 0x72c   :  { %v5202_v30 = vmul.f32 %v7370_v0, %v5201_v41 }
 0x72d   :  { %v4879_v15 = vpop.f32.mrf.mxu1 }
 0x72e   :  { %v5203_v2 = vadd.f32 %v7370_v0, %v5202_v30  ;;  %v4880_v39 = vadd.f32 %v9720_v14, %v4879_v15  ;;  %v5223_v14 = vand.u32 2147483647, %v4957_v48 }
 0x72f   :  { %v7372_v43 = vpop.eup %7371 }
 0x730   :  { %v5207_v6 = vsel %vm5206_vm13, %v7370_v0, %v5203_v2  ;;  %v5215_v4 = vmul.f32 %v7372_v43, %v4957_v48  ;;  %v6776_v59 = vmul.f32 -1.442695, %v4880_v39  ;;  %vm5220_vm15 = vweird.f32 %v7372_v43 }
 0x731   :  { %v5212_v33 = vsel %vm5209_vm14, %v5211_v34, %v5207_v6  ;;  %vm5221_vm2 = vmor %vm5219_vm1, %vm5220_vm15  ;;  %vm5224_vm0 = vcmp.eq.f32.partialorder %v5223_v14, 8.507059e+37 }
 0x732   :  { %v5260_v58 = vmul.f32 27.0, %v5212_v33  ;;  %v5216_v45 = vsub.f32 1.0, %v5215_v4  ;;  %7373 = vpow2.f32 %v6776_v59 }
 0x734   :  { %5280 = vst.msk [vmem:[%s9929_s11 + $0x80] sm:$0xff] %vm5263_vm7, %v5260_v58  ;;  %v5217_v50 = vmul.f32 %v7372_v43, %v5216_v45 }
 0x735   :  { %v4881_v49 = vpop.f32.mrf.mxu1 }
 0x736   :  { %v5218_v12 = vadd.f32 %v7372_v43, %v5217_v50 }
 0x738   :  { %v7374_v27 = vpop.eup %7373  ;;  %v5222_v24 = vsel %vm5221_vm2, %v7372_v43, %v5218_v12 }
 0x739   :  { %v5227_v22 = vsel %vm5224_vm0, %v5226_v26, %v5222_v24  ;;  %v4958_v44 = vadd.f32 1.0, %v7374_v27 }
 0x73a   :  { %v5261_v53 = vmul.f32 27.0, %v5227_v22 }
 0x73b   :  { %7375 = vrcp.f32 %v4958_v44  ;;  %v5240_v52 = vand.u32 2147483648, %v4958_v44  ;;  %v5238_v38 = vand.u32 2147483647, %v4958_v44  ;;  %vm5234_vm4 = vweird.f32 %v4958_v44 }
 0x73c   :  { %5281 = vst.msk [vmem:[%s9929_s11 + $0x88] sm:$0xff] %vm5263_vm7, %v5261_v53 }
 0x73d   :  { %v5241_v10 = vor.u32 1.1754944e-38, %v5240_v52  ;;  %vm5239_vm6 = vcmp.eq.f32.partialorder %v5238_v38, 8.507059e+37 }
 0x741   :  { %v7376_v61 = vpop.eup %7375 }
 0x742   :  { %v5230_v35 = vmul.f32 %v7376_v61, %v4958_v44  ;;  %vm5235_vm3 = vweird.f32 %v7376_v61 }
 0x743   :  { %vm5236_vm5 = vmor %vm5234_vm4, %vm5235_vm3 }
 0x744   :  { %v5231_v9 = vsub.f32 1.0, %v5230_v35 }
 0x746   :  { %v5232_v36 = vmul.f32 %v7376_v61, %v5231_v9 }
 0x748   :  { %v5233_v16 = vadd.f32 %v7376_v61, %v5232_v36 }
 0x74a   :  { %v5237_v13 = vsel %vm5236_vm5, %v7376_v61, %v5233_v16 }
 0x74b   :  { %v5242_v57 = vsel %vm5239_vm6, %v5241_v10, %v5237_v13 }
 0x74c   :  { %v5262_v8 = vmul.f32 27.0, %v5242_v57 }
 0x74e   :  { %5283 = vst.msk [vmem:[%s9929_s11 + $0x90] sm:$0x3f] %vm5282_vm8, %v5262_v8 }

</bundles_post_ra>
